<compile_context>
chip_gen: v7x
topology: tpu7x:2x2x1
jax: 0.10.0
libtpu: 0.0.40
codegen_flags: <defaults>
</compile_context>

<pallas_src>
import jax
import jax.numpy as jnp
from jax import lax
from jax.experimental import pallas as pl
from jax.experimental.pallas import tpu as pltpu


# ---------------------------------------------------------------------------
# One bidirectional LSTM layer, time-chunked.
# Grid = (T / Tc,), "arbitrary": (h, c) of both directions carried in VMEM
# scratch across grid steps.  Forward walks chunk c ascending; backward walks
# chunk (n_chunks-1-c) descending.  Per chunk: two (Tc*B, Din)@(Din, 4H) bf16
# projections into f32 scratch, then Tc interleaved fwd/bwd recurrent steps,
# each a single (B, H)@(H, 4H) bf16 matmul per direction.
# ---------------------------------------------------------------------------
def _lstm_bidir_chunk_kernel(len_ref, xf_ref, xb_ref,
                             wih_f_ref, wih_b_ref, whh_f_ref, whh_b_ref,
                             b_f_ref, b_b_ref,
                             out_f_ref, out_b_ref,
                             pf_sc, pb_sc, of_sc, ob_sc,
                             hf_sc, cf_sc, hb_sc, cb_sc):
    ci = pl.program_id(0)
    nc = pl.num_programs(0)
    Tc, B, Hp = out_f_ref.shape          # Hp % 128 == 0, B % 8 == 0

    # Zero the carried (h, c) state on the first chunk only.
    @pl.when(ci == 0)
    def _init():
        hf_sc[...] = jnp.zeros_like(hf_sc)
        cf_sc[...] = jnp.zeros_like(cf_sc)
        hb_sc[...] = jnp.zeros_like(hb_sc)
        cb_sc[...] = jnp.zeros_like(cb_sc)

    # Per-chunk time-parallel input projections (bf16 MXU, f32 accumulate),
    # fused gate layout (i | f | o | g) along the last axis.
    pf_sc[...] = jnp.dot(xf_ref[...], wih_f_ref[...],
                         preferred_element_type=jnp.float32) + b_f_ref[...]
    pb_sc[...] = jnp.dot(xb_ref[...], wih_b_ref[...],
                         preferred_element_type=jnp.float32) + b_b_ref[...]

    lens = len_ref[...]                  # (B, 1) int32
    whh_f = whh_f_ref[...]               # (Hp, 4Hp) bf16, resident
    whh_b = whh_b_ref[...]
    t0_f = ci * Tc                       # global start time of the fwd chunk
    t0_b = (nc - 1 - ci) * Tc            # global start time of the bwd chunk

    def cell(p_rows, h_prev, c_prev, whh):
        # gates = (x_t @ W_ih + b) + h @ W_hh          -> (B, 4Hp), f32
        gates = p_rows + jnp.dot(h_prev.astype(jnp.bfloat16), whh,
                                 preferred_element_type=jnp.float32)
        ifo = jax.nn.sigmoid(gates[:, :3 * Hp])        # one contiguous sigmoid
        g = jnp.tanh(gates[:, 3 * Hp:])                # one contiguous tanh
        i_g = ifo[:, :Hp]
        f_g = ifo[:, Hp:2 * Hp]
        o_g = ifo[:, 2 * Hp:]
        c_new = f_g * c_prev + i_g * g
        h_new = o_g * jnp.tanh(c_new)
        return h_new, c_new

    def step(j, carry):
        h_f, c_f, h_b, c_b = carry
        # ---- forward: within-chunk row j -> global time t0_f + j ----
        rf = pl.multiple_of(j * B, B)
        hf_new, cf_new = cell(pf_sc[pl.ds(rf, B)], h_f, c_f, whh_f)
        valid_f = (t0_f + j) < lens                    # packed-seq mask
        h_f = jnp.where(valid_f, hf_new, h_f)
        c_f = jnp.where(valid_f, cf_new, c_f)
        of_sc[pl.ds(j, 1)] = h_f[None]
        # ---- backward: within-chunk row (Tc-1-j), descending time ----
        jb = Tc - 1 - j
        rb = pl.multiple_of(jb * B, B)
        hb_new, cb_new = cell(pb_sc[pl.ds(rb, B)], h_b, c_b, whh_b)
        valid_b = (t0_b + jb) < lens
        h_b = jnp.where(valid_b, hb_new, h_b)
        c_b = jnp.where(valid_b, cb_new, c_b)
        ob_sc[pl.ds(jb, 1)] = h_b[None]
        return h_f, c_f, h_b, c_b

    carry0 = (hf_sc[...], cf_sc[...], hb_sc[...], cb_sc[...])
    h_f, c_f, h_b, c_b = lax.fori_loop(0, Tc, step, carry0,
                                       unroll=min(8, Tc))

    # One lane-dense bf16 store per chunk per direction.
    out_f_ref[...] = of_sc[...].astype(out_f_ref.dtype)
    out_b_ref[...] = ob_sc[...].astype(out_b_ref.dtype)
    # Persist the carried state for the next chunk.
    hf_sc[...] = h_f
    cf_sc[...] = c_f
    hb_sc[...] = h_b
    cb_sc[...] = c_b


def lstm_bidir_layer(x, lengths_col, w_ih_f, w_ih_b, w_hh_f, w_hh_b,
                     b_f, b_b, *, t_chunk):
    """x: (T, B, Din); W_ih: (Din, 4Hp); W_hh: (Hp, 4Hp); b: (1, 4Hp).

    Returns (out_fwd, out_bwd), each (T, B, Hp) bf16.
    """
    T, B, Din = x.shape
    Hp = w_hh_f.shape[0]
    G = 4 * Hp
    assert T % t_chunk == 0 and B % 8 == 0 and Hp % 128 == 0
    n_chunks = T // t_chunk
    rows = t_chunk * B

    x2d = x.reshape(T * B, Din).astype(jnp.bfloat16)
    w_ih_f = w_ih_f.astype(jnp.bfloat16)
    w_ih_b = w_ih_b.astype(jnp.bfloat16)
    w_hh_f = w_hh_f.astype(jnp.bfloat16)
    w_hh_b = w_hh_b.astype(jnp.bfloat16)

    out_f, out_b = pl.pallas_call(
        _lstm_bidir_chunk_kernel,
        out_shape=(jax.ShapeDtypeStruct((T, B, Hp), jnp.bfloat16),
                   jax.ShapeDtypeStruct((T, B, Hp), jnp.bfloat16)),
        grid=(n_chunks,),
        in_specs=[
            pl.BlockSpec((B, 1), lambda c: (0, 0)),                    # lengths
            pl.BlockSpec((rows, Din), lambda c: (c, 0)),               # x, fwd chunk
            pl.BlockSpec((rows, Din), lambda c: (n_chunks - 1 - c, 0)),  # x, bwd chunk
            pl.BlockSpec((Din, G), lambda c: (0, 0)),                  # W_ih fwd
            pl.BlockSpec((Din, G), lambda c: (0, 0)),                  # W_ih bwd
            pl.BlockSpec((Hp, G), lambda c: (0, 0)),                   # W_hh fwd
            pl.BlockSpec((Hp, G), lambda c: (0, 0)),                   # W_hh bwd
            pl.BlockSpec((1, G), lambda c: (0, 0)),                    # bias fwd
            pl.BlockSpec((1, G), lambda c: (0, 0)),                    # bias bwd
        ],
        out_specs=(
            pl.BlockSpec((t_chunk, B, Hp), lambda c: (c, 0, 0)),
            pl.BlockSpec((t_chunk, B, Hp), lambda c: (n_chunks - 1 - c, 0, 0)),
        ),
        scratch_shapes=[
            pltpu.VMEM((rows, G), jnp.float32),       # fwd projection chunk
            pltpu.VMEM((rows, G), jnp.float32),       # bwd projection chunk
            pltpu.VMEM((t_chunk, B, Hp), jnp.float32),  # fwd out staging
            pltpu.VMEM((t_chunk, B, Hp), jnp.float32),  # bwd out staging
            pltpu.VMEM((B, Hp), jnp.float32),         # h fwd carry
            pltpu.VMEM((B, Hp), jnp.float32),         # c fwd carry
            pltpu.VMEM((B, Hp), jnp.float32),         # h bwd carry
            pltpu.VMEM((B, Hp), jnp.float32),         # c bwd carry
        ],
        compiler_params=pltpu.CompilerParams(
            dimension_semantics=("arbitrary",),       # sequential carry over chunks
            vmem_limit_bytes=48 * 1024 * 1024),
    )(lengths_col, x2d, x2d, w_ih_f, w_ih_b, w_hh_f, w_hh_b, b_f, b_b)
    return out_f, out_b


# ---------------------------------------------------------------------------
# Full forward pass (glue in plain JAX: embedding gather, concat, final FC).
# ---------------------------------------------------------------------------
def lstm_sentiment_forward(params, text, text_lengths, *, t_chunk=4):
    """text: (T, B) int32 token ids, text_lengths: (B,) int32."""
    T, B = text.shape

    # Embedding lookup (gather) — glue in plain JAX; dropout = identity (eval).
    x = jnp.take(params["embedding"], text, axis=0)              # (T, B, E_pad)

    # Pad batch to a multiple of 8 and T to a multiple of the time chunk.
    B_pad = max(8, ((B + 7) // 8) * 8)
    T_pad = ((T + t_chunk - 1) // t_chunk) * t_chunk
    lengths = text_lengths.astype(jnp.int32)
    x = jnp.pad(x, ((0, T_pad - T), (0, B_pad - B), (0, 0)))
    lengths = jnp.pad(lengths, (0, B_pad - B))                   # pad rows: len 0
    lengths_col = lengths[:, None]                               # (B_pad, 1)

    x = x.astype(jnp.bfloat16)
    h_fwd_final = h_bwd_final = None
    for layer in params["lstm"]:
        out_f, out_b = lstm_bidir_layer(
            x, lengths_col,
            layer["w_ih_f"], layer["w_ih_b"],
            layer["w_hh_f"], layer["w_hh_b"],
            layer["b_f"], layer["b_b"], t_chunk=t_chunk)         # (T_pad,B_pad,Hp) x2
        # Packed-sequence final hidden states:
        #   forward  -> carried value at t = T_pad-1 == h(len-1)
        #   backward -> value written at t = 0
        h_fwd_final = out_f[T_pad - 1]                           # (B_pad, Hp) bf16
        h_bwd_final = out_b[0]                                   # (B_pad, Hp) bf16
        # Next-layer input (inter-layer dropout = identity in eval mode).
        x = jnp.concatenate([out_f, out_b], axis=-1)             # (T_pad,B_pad,2Hp)

    hidden = jnp.concatenate([h_fwd_final, h_bwd_final], axis=-1)[:B]
    # dropout(hidden): identity in eval mode.
    # Final Linear (output_dim=2): plain XLA dot — a Pallas call here would be
    # pure launch + masked-store overhead. fc_w is zero-padded to 2*Hp rows.
    return hidden.astype(jnp.float32) @ params["fc_w"] + params["fc_b"]


# ---------------------------------------------------------------------------
# Deterministic parameter initialization. Fused per-direction layouts:
#   W_ih (Din_pad, 4*Hp), W_hh (Hp, 4*Hp), b = b_ih + b_hh (1, 4*Hp),
# gate order (i, f, o, g).  Hp = H padded to 128; padded rows/cols/bias are
# zero, which keeps the padded hidden/cell entries exactly 0 (inert padding).
# ---------------------------------------------------------------------------
def _uniform(key, shape, scale):
    return jax.random.uniform(key, shape, jnp.float32, -scale, scale)


def _pack_direction(key, in_segments, din_pad, hid, hid_pad, scale):
    n_seg = len(in_segments)
    keys = jax.random.split(key, 4 * (n_seg + 2))
    w_ih = jnp.zeros((din_pad, 4 * hid_pad), jnp.float32)
    w_hh = jnp.zeros((hid_pad, 4 * hid_pad), jnp.float32)
    b = jnp.zeros((1, 4 * hid_pad), jnp.float32)
    ki = iter(keys)
    for g in range(4):                         # gate order (i, f, o, g)
        col = g * hid_pad
        for row_off, n_rows in in_segments:
            w_ih = w_ih.at[row_off:row_off + n_rows, col:col + hid].set(
                _uniform(next(ki), (n_rows, hid), scale))
        w_hh = w_hh.at[:hid, col:col + hid].set(
            _uniform(next(ki), (hid, hid), scale))
        b = b.at[:, col:col + hid].set(_uniform(next(ki), (1, hid), scale))
    return w_ih, w_hh, b


def init_params(key, vocab, emb, hid, out, n_layers, pad_idx, *,
                emb_pad, hid_pad):
    keys = jax.random.split(key, 2 + n_layers)
    k_emb, k_fc, k_layers = keys[0], keys[1], keys[2:]
    scale = 1.0 / (hid ** 0.5)

    embedding = jax.random.normal(k_emb, (vocab, emb), jnp.float32) * 0.1
    embedding = embedding.at[pad_idx].set(0.0)        # padding_idx row is zero
    embedding = jnp.pad(embedding, ((0, 0), (0, emb_pad - emb)))  # lane-dense

    layers = []
    for l in range(n_layers):
        if l == 0:
            segs, din_pad = [(0, emb)], emb_pad
        else:  # input = concat(fwd_h, bwd_h): valid rows [0:hid] and [Hp:Hp+hid]
            segs, din_pad = [(0, hid), (hid_pad, hid)], 2 * hid_pad
        kf, kb = jax.random.split(k_layers[l])
        w_ih_f, w_hh_f, b_f = _pack_direction(kf, segs, din_pad, hid, hid_pad, scale)
        w_ih_b, w_hh_b, b_b = _pack_direction(kb, segs, din_pad, hid, hid_pad, scale)
        layers.append(dict(w_ih_f=w_ih_f, w_hh_f=w_hh_f, b_f=b_f,
                           w_ih_b=w_ih_b, w_hh_b=w_hh_b, b_b=b_b))

    k_fc_f, k_fc_b = jax.random.split(k_fc)
    fc_w = jnp.zeros((2 * hid_pad, out), jnp.float32)
    fc_w = fc_w.at[:hid, :].set(_uniform(k_fc_f, (hid, out), scale))
    fc_w = fc_w.at[hid_pad:hid_pad + hid, :].set(_uniform(k_fc_b, (hid, out), scale))
    fc_b = jnp.zeros((out,), jnp.float32)
    return dict(embedding=embedding, lstm=layers, fc_w=fc_w, fc_b=fc_b)


if __name__ == "__main__":
    VOCAB, EMB, HID, OUT = 50, 32, 32, 2
    N_LAYERS, PAD_IDX = 2, 0
    T, B = 8, 4
    EMB_PAD, HID_PAD = 128, 128            # lane-dense feature / hidden dims

    key = jax.random.PRNGKey(0)
    k_params, k_text = jax.random.split(key)
    params = init_params(k_params, VOCAB, EMB, HID, OUT, N_LAYERS, PAD_IDX,
                         emb_pad=EMB_PAD, hid_pad=HID_PAD)

    # pack_padded_sequence expects lengths sorted in decreasing order.
    lengths = jnp.array([8, 7, 5, 3], dtype=jnp.int32)           # (B,)
    text = jax.random.randint(k_text, (T, B), 1, VOCAB, dtype=jnp.int32)
    pad_mask = jnp.arange(T, dtype=jnp.int32)[:, None] < lengths[None, :]
    text = jnp.where(pad_mask, text, PAD_IDX)                    # (T, B)

    out = jax.jit(lstm_sentiment_forward)(params, text, lengths)
    jax.block_until_ready(out)
    assert out.shape == (B, OUT) and out.dtype == jnp.float32
    assert bool(jnp.all(jnp.isfinite(out)))
    print("KERNEL_OK")
</pallas_src>

<mosaic_0001>
module attributes {stable_mosaic.version = 11 : i64} {
  func.func @_lstm_bidir_chunk_kernel(%arg0: i32, %arg1: memref<8x1xi32, #tpu.memory_space<vmem>>, %arg2: memref<32x128xbf16, #tpu.memory_space<vmem>>, %arg3: memref<32x128xbf16, #tpu.memory_space<vmem>>, %arg4: memref<128x512xbf16, #tpu.memory_space<vmem>>, %arg5: memref<128x512xbf16, #tpu.memory_space<vmem>>, %arg6: memref<128x512xbf16, #tpu.memory_space<vmem>>, %arg7: memref<128x512xbf16, #tpu.memory_space<vmem>>, %arg8: memref<1x512xf32, #tpu.memory_space<vmem>>, %arg9: memref<1x512xf32, #tpu.memory_space<vmem>>, %arg10: memref<4x8x128xbf16, #tpu.memory_space<vmem>>, %arg11: memref<4x8x128xbf16, #tpu.memory_space<vmem>>, %arg12: memref<32x512xf32, #tpu.memory_space<vmem>>, %arg13: memref<32x512xf32, #tpu.memory_space<vmem>>, %arg14: memref<4x8x128xf32, #tpu.memory_space<vmem>>, %arg15: memref<4x8x128xf32, #tpu.memory_space<vmem>>, %arg16: memref<8x128xf32, #tpu.memory_space<vmem>>, %arg17: memref<8x128xf32, #tpu.memory_space<vmem>>, %arg18: memref<8x128xf32, #tpu.memory_space<vmem>>, %arg19: memref<8x128xf32, #tpu.memory_space<vmem>>) attributes {dimension_semantics = [#tpu.dimension_semantics<arbitrary>], iteration_bounds = array<i64: 2>, scalar_prefetch = 0 : i64, scratch_operands = 8 : i64, tpu.core_type = #tpu.core_type<tc>, window_params = [{pipeline_mode = #tpu.pipeline_mode<synchronous>, transform_indices = @transform_0, window_bounds = array<i64: 8, 1>}, {transform_indices = @transform_1, window_bounds = array<i64: 32, 128>}, {transform_indices = @transform_2, window_bounds = array<i64: 32, 128>}, {pipeline_mode = #tpu.pipeline_mode<synchronous>, transform_indices = @transform_3, window_bounds = array<i64: 128, 512>}, {pipeline_mode = #tpu.pipeline_mode<synchronous>, transform_indices = @transform_4, window_bounds = array<i64: 128, 512>}, {pipeline_mode = #tpu.pipeline_mode<synchronous>, transform_indices = @transform_5, window_bounds = array<i64: 128, 512>}, {pipeline_mode = #tpu.pipeline_mode<synchronous>, transform_indices = @transform_6, window_bounds = array<i64: 128, 512>}, {pipeline_mode = #tpu.pipeline_mode<synchronous>, transform_indices = @transform_7, window_bounds = array<i64: 1, 512>}, {pipeline_mode = #tpu.pipeline_mode<synchronous>, transform_indices = @transform_8, window_bounds = array<i64: 1, 512>}, {transform_indices = @transform_9, window_bounds = array<i64: 4, 8, 128>}, {transform_indices = @transform_10, window_bounds = array<i64: 4, 8, 128>}]} {
    %c0_i32 = arith.constant 0 : i32
    %0 = arith.cmpi eq, %arg0, %c0_i32 : i32
    %1 = arith.extui %0 : i1 to i32
    %c0_i32_0 = arith.constant 0 : i32
    %2 = arith.cmpi ne, %1, %c0_i32_0 : i32
    scf.if %2 {
      %cst_106 = arith.constant 0.000000e+00 : f32
      %321 = vector.broadcast %cst_106 : f32 to vector<8x128xf32>
      %c0_107 = arith.constant 0 : index
      %c0_108 = arith.constant 0 : index
      %322 = vector.load %arg16[%c0_107, %c0_108] : memref<8x128xf32, #tpu.memory_space<vmem>>, vector<8x128xf32>
      tpu.vector_store %arg16[%c0_107, %c0_108], %321 {strides = array<i32>} : memref<8x128xf32, #tpu.memory_space<vmem>>, vector<8x128xf32>,
      %cst_109 = arith.constant 0.000000e+00 : f32
      %323 = vector.broadcast %cst_109 : f32 to vector<8x128xf32>
      %c0_110 = arith.constant 0 : index
      %c0_111 = arith.constant 0 : index
      %324 = vector.load %arg17[%c0_110, %c0_111] : memref<8x128xf32, #tpu.memory_space<vmem>>, vector<8x128xf32>
      tpu.vector_store %arg17[%c0_110, %c0_111], %323 {strides = array<i32>} : memref<8x128xf32, #tpu.memory_space<vmem>>, vector<8x128xf32>,
      %cst_112 = arith.constant 0.000000e+00 : f32
      %325 = vector.broadcast %cst_112 : f32 to vector<8x128xf32>
      %c0_113 = arith.constant 0 : index
      %c0_114 = arith.constant 0 : index
      %326 = vector.load %arg18[%c0_113, %c0_114] : memref<8x128xf32, #tpu.memory_space<vmem>>, vector<8x128xf32>
      tpu.vector_store %arg18[%c0_113, %c0_114], %325 {strides = array<i32>} : memref<8x128xf32, #tpu.memory_space<vmem>>, vector<8x128xf32>,
      %cst_115 = arith.constant 0.000000e+00 : f32
      %327 = vector.broadcast %cst_115 : f32 to vector<8x128xf32>
      %c0_116 = arith.constant 0 : index
      %c0_117 = arith.constant 0 : index
      %328 = vector.load %arg19[%c0_116, %c0_117] : memref<8x128xf32, #tpu.memory_space<vmem>>, vector<8x128xf32>
      tpu.vector_store %arg19[%c0_116, %c0_117], %327 {strides = array<i32>} : memref<8x128xf32, #tpu.memory_space<vmem>>, vector<8x128xf32>,
    } else {
    }
    %c0 = arith.constant 0 : index
    %c0_1 = arith.constant 0 : index
    %3 = vector.load %arg2[%c0, %c0_1] : memref<32x128xbf16, #tpu.memory_space<vmem>>, vector<32x128xbf16>
    %c0_2 = arith.constant 0 : index
    %c0_3 = arith.constant 0 : index
    %4 = vector.load %arg4[%c0_2, %c0_3] : memref<128x512xbf16, #tpu.memory_space<vmem>>, vector<128x512xbf16>
    %cst = arith.constant dense<0.000000e+00> : vector<32x512xf32>
    %5 = tpu.matmul %3, %4, %cst {dimension_numbers = #tpu.dot_dimension_numbers<[1], [0], [0], [1], [0, 0, 1, 1], [], []>} : vector<32x128xbf16>, vector<128x512xbf16>, vector<32x512xf32> -> vector<32x512xf32>
    %c0_4 = arith.constant 0 : index
    %c0_5 = arith.constant 0 : index
    %6 = vector.load %arg8[%c0_4, %c0_5] : memref<1x512xf32, #tpu.memory_space<vmem>>, vector<1x512xf32>
    %7 = vector.broadcast %6 : vector<1x512xf32> to vector<32x512xf32>
    %8 = arith.addf %5, %7 : vector<32x512xf32>
    %c0_6 = arith.constant 0 : index
    %c0_7 = arith.constant 0 : index
    %9 = vector.load %arg12[%c0_6, %c0_7] : memref<32x512xf32, #tpu.memory_space<vmem>>, vector<32x512xf32>
    tpu.vector_store %arg12[%c0_6, %c0_7], %8 {strides = array<i32>} : memref<32x512xf32, #tpu.memory_space<vmem>>, vector<32x512xf32>,
    %c0_8 = arith.constant 0 : index
    %c0_9 = arith.constant 0 : index
    %10 = vector.load %arg3[%c0_8, %c0_9] : memref<32x128xbf16, #tpu.memory_space<vmem>>, vector<32x128xbf16>
    %c0_10 = arith.constant 0 : index
    %c0_11 = arith.constant 0 : index
    %11 = vector.load %arg5[%c0_10, %c0_11] : memref<128x512xbf16, #tpu.memory_space<vmem>>, vector<128x512xbf16>
    %cst_12 = arith.constant dense<0.000000e+00> : vector<32x512xf32>
    %12 = tpu.matmul %10, %11, %cst_12 {dimension_numbers = #tpu.dot_dimension_numbers<[1], [0], [0], [1], [0, 0, 1, 1], [], []>} : vector<32x128xbf16>, vector<128x512xbf16>, vector<32x512xf32> -> vector<32x512xf32>
    %c0_13 = arith.constant 0 : index
    %c0_14 = arith.constant 0 : index
    %13 = vector.load %arg9[%c0_13, %c0_14] : memref<1x512xf32, #tpu.memory_space<vmem>>, vector<1x512xf32>
    %14 = vector.broadcast %13 : vector<1x512xf32> to vector<32x512xf32>
    %15 = arith.addf %12, %14 : vector<32x512xf32>
    %c0_15 = arith.constant 0 : index
    %c0_16 = arith.constant 0 : index
    %16 = vector.load %arg13[%c0_15, %c0_16] : memref<32x512xf32, #tpu.memory_space<vmem>>, vector<32x512xf32>
    tpu.vector_store %arg13[%c0_15, %c0_16], %15 {strides = array<i32>} : memref<32x512xf32, #tpu.memory_space<vmem>>, vector<32x512xf32>,
    %c0_17 = arith.constant 0 : index
    %c0_18 = arith.constant 0 : index
    %17 = vector.load %arg1[%c0_17, %c0_18] : memref<8x1xi32, #tpu.memory_space<vmem>>, vector<8x1xi32>
    %c0_19 = arith.constant 0 : index
    %c0_20 = arith.constant 0 : index
    %18 = vector.load %arg6[%c0_19, %c0_20] : memref<128x512xbf16, #tpu.memory_space<vmem>>, vector<128x512xbf16>
    %c0_21 = arith.constant 0 : index
    %c0_22 = arith.constant 0 : index
    %19 = vector.load %arg7[%c0_21, %c0_22] : memref<128x512xbf16, #tpu.memory_space<vmem>>, vector<128x512xbf16>
    %c4_i32 = arith.constant 4 : i32
    %20 = arith.muli %arg0, %c4_i32 : i32
    %c1_i32 = arith.constant 1 : i32
    %21 = arith.subi %c1_i32, %arg0 : i32
    %c4_i32_23 = arith.constant 4 : i32
    %22 = arith.muli %21, %c4_i32_23 : i32
    %c0_24 = arith.constant 0 : index
    %c0_25 = arith.constant 0 : index
    %23 = vector.load %arg16[%c0_24, %c0_25] : memref<8x128xf32, #tpu.memory_space<vmem>>, vector<8x128xf32>
    %c0_26 = arith.constant 0 : index
    %c0_27 = arith.constant 0 : index
    %24 = vector.load %arg17[%c0_26, %c0_27] : memref<8x128xf32, #tpu.memory_space<vmem>>, vector<8x128xf32>
    %c0_28 = arith.constant 0 : index
    %c0_29 = arith.constant 0 : index
    %25 = vector.load %arg18[%c0_28, %c0_29] : memref<8x128xf32, #tpu.memory_space<vmem>>, vector<8x128xf32>
    %c0_30 = arith.constant 0 : index
    %c0_31 = arith.constant 0 : index
    %26 = vector.load %arg19[%c0_30, %c0_31] : memref<8x128xf32, #tpu.memory_space<vmem>>, vector<8x128xf32>
    %c0_i32_32 = arith.constant 0 : i32
    %c8_i32 = arith.constant 8 : i32
    %27 = arith.muli %c0_i32_32, %c8_i32 : i32
    %28 = tpu.assume_multiple %27, 8 : i32
    %29 = arith.index_cast %28 : i32 to index
    %c0_33 = arith.constant 0 : index
    %30 = vector.load %arg12[%29, %c0_33] : memref<32x512xf32, #tpu.memory_space<vmem>>, vector<8x512xf32>
    %31 = arith.truncf %23 : vector<8x128xf32> to vector<8x128xbf16>
    %cst_34 = arith.constant dense<0.000000e+00> : vector<8x512xf32>
    %32 = tpu.matmul %31, %18, %cst_34 {dimension_numbers = #tpu.dot_dimension_numbers<[1], [0], [0], [1], [0, 0, 1, 1], [], []>} : vector<8x128xbf16>, vector<128x512xbf16>, vector<8x512xf32> -> vector<8x512xf32>
    %33 = arith.addf %30, %32 : vector<8x512xf32>
    %34 = vector.extract_strided_slice %33 {offsets = [0, 0], sizes = [8, 384], strides = [1, 1]} : vector<8x512xf32> to vector<8x384xf32>
    %35 = arith.negf %34 : vector<8x384xf32>
    %36 = math.exp %35 : vector<8x384xf32>
    %cst_35 = arith.constant 1.000000e+00 : f32
    %37 = vector.broadcast %cst_35 : f32 to vector<8x384xf32>
    %38 = arith.addf %37, %36 : vector<8x384xf32>
    %39 = arith.divf %37, %38 : vector<8x384xf32>
    %40 = vector.extract_strided_slice %33 {offsets = [0, 384], sizes = [8, 128], strides = [1, 1]} : vector<8x512xf32> to vector<8x128xf32>
    %41 = math.tanh %40 : vector<8x128xf32>
    %42 = vector.extract_strided_slice %39 {offsets = [0, 0], sizes = [8, 128], strides = [1, 1]} : vector<8x384xf32> to vector<8x128xf32>
    %43 = vector.extract_strided_slice %39 {offsets = [0, 128], sizes = [8, 128], strides = [1, 1]} : vector<8x384xf32> to vector<8x128xf32>
    %44 = vector.extract_strided_slice %39 {offsets = [0, 256], sizes = [8, 128], strides = [1, 1]} : vector<8x384xf32> to vector<8x128xf32>
    %45 = arith.mulf %43, %24 : vector<8x128xf32>
    %46 = arith.mulf %42, %41 : vector<8x128xf32>
    %47 = arith.addf %45, %46 : vector<8x128xf32>
    %48 = math.tanh %47 : vector<8x128xf32>
    %49 = arith.mulf %44, %48 : vector<8x128xf32>
    %50 = arith.addi %20, %c0_i32_32 : i32
    %51 = vector.broadcast %50 : i32 to vector<8x1xi32>
    %52 = arith.cmpi slt, %51, %17 : vector<8x1xi32>
    %53 = vector.shape_cast %52 : vector<8x1xi1> to vector<8x1xi1>
    %54 = vector.broadcast %53 : vector<8x1xi1> to vector<8x128xi1>
    %55 = arith.select %54, %49, %23 : vector<8x128xi1>, vector<8x128xf32>
    %56 = vector.shape_cast %52 : vector<8x1xi1> to vector<8x1xi1>
    %57 = vector.broadcast %56 : vector<8x1xi1> to vector<8x128xi1>
    %58 = arith.select %57, %47, %24 : vector<8x128xi1>, vector<8x128xf32>
    %59 = vector.shape_cast %55 : vector<8x128xf32> to vector<1x8x128xf32>
    %60 = arith.index_cast %c0_i32_32 : i32 to index
    %c0_36 = arith.constant 0 : index
    %c0_37 = arith.constant 0 : index
    %61 = vector.load %arg14[%60, %c0_36, %c0_37] : memref<4x8x128xf32, #tpu.memory_space<vmem>>, vector<1x8x128xf32>
    tpu.vector_store %arg14[%60, %c0_36, %c0_37], %59 {strides = array<i32>} : memref<4x8x128xf32, #tpu.memory_space<vmem>>, vector<1x8x128xf32>,
    %c3_i32 = arith.constant 3 : i32
    %62 = arith.subi %c3_i32, %c0_i32_32 : i32
    %c8_i32_38 = arith.constant 8 : i32
    %63 = arith.muli %62, %c8_i32_38 : i32
    %64 = tpu.assume_multiple %63, 8 : i32
    %65 = arith.index_cast %64 : i32 to index
    %c0_39 = arith.constant 0 : index
    %66 = vector.load %arg13[%65, %c0_39] : memref<32x512xf32, #tpu.memory_space<vmem>>, vector<8x512xf32>
    %67 = arith.truncf %25 : vector<8x128xf32> to vector<8x128xbf16>
    %cst_40 = arith.constant dense<0.000000e+00> : vector<8x512xf32>
    %68 = tpu.matmul %67, %19, %cst_40 {dimension_numbers = #tpu.dot_dimension_numbers<[1], [0], [0], [1], [0, 0, 1, 1], [], []>} : vector<8x128xbf16>, vector<128x512xbf16>, vector<8x512xf32> -> vector<8x512xf32>
    %69 = arith.addf %66, %68 : vector<8x512xf32>
    %70 = vector.extract_strided_slice %69 {offsets = [0, 0], sizes = [8, 384], strides = [1, 1]} : vector<8x512xf32> to vector<8x384xf32>
    %71 = arith.negf %70 : vector<8x384xf32>
    %72 = math.exp %71 : vector<8x384xf32>
    %cst_41 = arith.constant 1.000000e+00 : f32
    %73 = vector.broadcast %cst_41 : f32 to vector<8x384xf32>
    %74 = arith.addf %73, %72 : vector<8x384xf32>
    %75 = arith.divf %73, %74 : vector<8x384xf32>
    %76 = vector.extract_strided_slice %69 {offsets = [0, 384], sizes = [8, 128], strides = [1, 1]} : vector<8x512xf32> to vector<8x128xf32>
    %77 = math.tanh %76 : vector<8x128xf32>
    %78 = vector.extract_strided_slice %75 {offsets = [0, 0], sizes = [8, 128], strides = [1, 1]} : vector<8x384xf32> to vector<8x128xf32>
    %79 = vector.extract_strided_slice %75 {offsets = [0, 128], sizes = [8, 128], strides = [1, 1]} : vector<8x384xf32> to vector<8x128xf32>
    %80 = vector.extract_strided_slice %75 {offsets = [0, 256], sizes = [8, 128], strides = [1, 1]} : vector<8x384xf32> to vector<8x128xf32>
    %81 = arith.mulf %79, %26 : vector<8x128xf32>
    %82 = arith.mulf %78, %77 : vector<8x128xf32>
    %83 = arith.addf %81, %82 : vector<8x128xf32>
    %84 = math.tanh %83 : vector<8x128xf32>
    %85 = arith.mulf %80, %84 : vector<8x128xf32>
    %86 = arith.addi %22, %62 : i32
    %87 = vector.broadcast %86 : i32 to vector<8x1xi32>
    %88 = arith.cmpi slt, %87, %17 : vector<8x1xi32>
    %89 = vector.shape_cast %88 : vector<8x1xi1> to vector<8x1xi1>
    %90 = vector.broadcast %89 : vector<8x1xi1> to vector<8x128xi1>
    %91 = arith.select %90, %85, %25 : vector<8x128xi1>, vector<8x128xf32>
    %92 = vector.shape_cast %88 : vector<8x1xi1> to vector<8x1xi1>
    %93 = vector.broadcast %92 : vector<8x1xi1> to vector<8x128xi1>
    %94 = arith.select %93, %83, %26 : vector<8x128xi1>, vector<8x128xf32>
    %95 = vector.shape_cast %91 : vector<8x128xf32> to vector<1x8x128xf32>
    %96 = arith.index_cast %62 : i32 to index
    %c0_42 = arith.constant 0 : index
    %c0_43 = arith.constant 0 : index
    %97 = vector.load %arg15[%96, %c0_42, %c0_43] : memref<4x8x128xf32, #tpu.memory_space<vmem>>, vector<1x8x128xf32>
    tpu.vector_store %arg15[%96, %c0_42, %c0_43], %95 {strides = array<i32>} : memref<4x8x128xf32, #tpu.memory_space<vmem>>, vector<1x8x128xf32>,
    %c1_i32_44 = arith.constant 1 : i32
    %c8_i32_45 = arith.constant 8 : i32
    %98 = arith.muli %c1_i32_44, %c8_i32_45 : i32
    %99 = tpu.assume_multiple %98, 8 : i32
    %100 = arith.index_cast %99 : i32 to index
    %c0_46 = arith.constant 0 : index
    %101 = vector.load %arg12[%100, %c0_46] : memref<32x512xf32, #tpu.memory_space<vmem>>, vector<8x512xf32>
    %102 = arith.truncf %55 : vector<8x128xf32> to vector<8x128xbf16>
    %cst_47 = arith.constant dense<0.000000e+00> : vector<8x512xf32>
    %103 = tpu.matmul %102, %18, %cst_47 {dimension_numbers = #tpu.dot_dimension_numbers<[1], [0], [0], [1], [0, 0, 1, 1], [], []>} : vector<8x128xbf16>, vector<128x512xbf16>, vector<8x512xf32> -> vector<8x512xf32>
    %104 = arith.addf %101, %103 : vector<8x512xf32>
    %105 = vector.extract_strided_slice %104 {offsets = [0, 0], sizes = [8, 384], strides = [1, 1]} : vector<8x512xf32> to vector<8x384xf32>
    %106 = arith.negf %105 : vector<8x384xf32>
    %107 = math.exp %106 : vector<8x384xf32>
    %cst_48 = arith.constant 1.000000e+00 : f32
    %108 = vector.broadcast %cst_48 : f32 to vector<8x384xf32>
    %109 = arith.addf %108, %107 : vector<8x384xf32>
    %110 = arith.divf %108, %109 : vector<8x384xf32>
    %111 = vector.extract_strided_slice %104 {offsets = [0, 384], sizes = [8, 128], strides = [1, 1]} : vector<8x512xf32> to vector<8x128xf32>
    %112 = math.tanh %111 : vector<8x128xf32>
    %113 = vector.extract_strided_slice %110 {offsets = [0, 0], sizes = [8, 128], strides = [1, 1]} : vector<8x384xf32> to vector<8x128xf32>
    %114 = vector.extract_strided_slice %110 {offsets = [0, 128], sizes = [8, 128], strides = [1, 1]} : vector<8x384xf32> to vector<8x128xf32>
    %115 = vector.extract_strided_slice %110 {offsets = [0, 256], sizes = [8, 128], strides = [1, 1]} : vector<8x384xf32> to vector<8x128xf32>
    %116 = arith.mulf %114, %58 : vector<8x128xf32>
    %117 = arith.mulf %113, %112 : vector<8x128xf32>
    %118 = arith.addf %116, %117 : vector<8x128xf32>
    %119 = math.tanh %118 : vector<8x128xf32>
    %120 = arith.mulf %115, %119 : vector<8x128xf32>
    %121 = arith.addi %20, %c1_i32_44 : i32
    %122 = vector.broadcast %121 : i32 to vector<8x1xi32>
    %123 = arith.cmpi slt, %122, %17 : vector<8x1xi32>
    %124 = vector.shape_cast %123 : vector<8x1xi1> to vector<8x1xi1>
    %125 = vector.broadcast %124 : vector<8x1xi1> to vector<8x128xi1>
    %126 = arith.select %125, %120, %55 : vector<8x128xi1>, vector<8x128xf32>
    %127 = vector.shape_cast %123 : vector<8x1xi1> to vector<8x1xi1>
    %128 = vector.broadcast %127 : vector<8x1xi1> to vector<8x128xi1>
    %129 = arith.select %128, %118, %58 : vector<8x128xi1>, vector<8x128xf32>
    %130 = vector.shape_cast %126 : vector<8x128xf32> to vector<1x8x128xf32>
    %131 = arith.index_cast %c1_i32_44 : i32 to index
    %c0_49 = arith.constant 0 : index
    %c0_50 = arith.constant 0 : index
    %132 = vector.load %arg14[%131, %c0_49, %c0_50] : memref<4x8x128xf32, #tpu.memory_space<vmem>>, vector<1x8x128xf32>
    tpu.vector_store %arg14[%131, %c0_49, %c0_50], %130 {strides = array<i32>} : memref<4x8x128xf32, #tpu.memory_space<vmem>>, vector<1x8x128xf32>,
    %c3_i32_51 = arith.constant 3 : i32
    %133 = arith.subi %c3_i32_51, %c1_i32_44 : i32
    %c8_i32_52 = arith.constant 8 : i32
    %134 = arith.muli %133, %c8_i32_52 : i32
    %135 = tpu.assume_multiple %134, 8 : i32
    %136 = arith.index_cast %135 : i32 to index
    %c0_53 = arith.constant 0 : index
    %137 = vector.load %arg13[%136, %c0_53] : memref<32x512xf32, #tpu.memory_space<vmem>>, vector<8x512xf32>
    %138 = arith.truncf %91 : vector<8x128xf32> to vector<8x128xbf16>
    %cst_54 = arith.constant dense<0.000000e+00> : vector<8x512xf32>
    %139 = tpu.matmul %138, %19, %cst_54 {dimension_numbers = #tpu.dot_dimension_numbers<[1], [0], [0], [1], [0, 0, 1, 1], [], []>} : vector<8x128xbf16>, vector<128x512xbf16>, vector<8x512xf32> -> vector<8x512xf32>
    %140 = arith.addf %137, %139 : vector<8x512xf32>
    %141 = vector.extract_strided_slice %140 {offsets = [0, 0], sizes = [8, 384], strides = [1, 1]} : vector<8x512xf32> to vector<8x384xf32>
    %142 = arith.negf %141 : vector<8x384xf32>
    %143 = math.exp %142 : vector<8x384xf32>
    %cst_55 = arith.constant 1.000000e+00 : f32
    %144 = vector.broadcast %cst_55 : f32 to vector<8x384xf32>
    %145 = arith.addf %144, %143 : vector<8x384xf32>
    %146 = arith.divf %144, %145 : vector<8x384xf32>
    %147 = vector.extract_strided_slice %140 {offsets = [0, 384], sizes = [8, 128], strides = [1, 1]} : vector<8x512xf32> to vector<8x128xf32>
    %148 = math.tanh %147 : vector<8x128xf32>
    %149 = vector.extract_strided_slice %146 {offsets = [0, 0], sizes = [8, 128], strides = [1, 1]} : vector<8x384xf32> to vector<8x128xf32>
    %150 = vector.extract_strided_slice %146 {offsets = [0, 128], sizes = [8, 128], strides = [1, 1]} : vector<8x384xf32> to vector<8x128xf32>
    %151 = vector.extract_strided_slice %146 {offsets = [0, 256], sizes = [8, 128], strides = [1, 1]} : vector<8x384xf32> to vector<8x128xf32>
    %152 = arith.mulf %150, %94 : vector<8x128xf32>
    %153 = arith.mulf %149, %148 : vector<8x128xf32>
    %154 = arith.addf %152, %153 : vector<8x128xf32>
    %155 = math.tanh %154 : vector<8x128xf32>
    %156 = arith.mulf %151, %155 : vector<8x128xf32>
    %157 = arith.addi %22, %133 : i32
    %158 = vector.broadcast %157 : i32 to vector<8x1xi32>
    %159 = arith.cmpi slt, %158, %17 : vector<8x1xi32>
    %160 = vector.shape_cast %159 : vector<8x1xi1> to vector<8x1xi1>
    %161 = vector.broadcast %160 : vector<8x1xi1> to vector<8x128xi1>
    %162 = arith.select %161, %156, %91 : vector<8x128xi1>, vector<8x128xf32>
    %163 = vector.shape_cast %159 : vector<8x1xi1> to vector<8x1xi1>
    %164 = vector.broadcast %163 : vector<8x1xi1> to vector<8x128xi1>
    %165 = arith.select %164, %154, %94 : vector<8x128xi1>, vector<8x128xf32>
    %166 = vector.shape_cast %162 : vector<8x128xf32> to vector<1x8x128xf32>
    %167 = arith.index_cast %133 : i32 to index
    %c0_56 = arith.constant 0 : index
    %c0_57 = arith.constant 0 : index
    %168 = vector.load %arg15[%167, %c0_56, %c0_57] : memref<4x8x128xf32, #tpu.memory_space<vmem>>, vector<1x8x128xf32>
    tpu.vector_store %arg15[%167, %c0_56, %c0_57], %166 {strides = array<i32>} : memref<4x8x128xf32, #tpu.memory_space<vmem>>, vector<1x8x128xf32>,
    %c2_i32 = arith.constant 2 : i32
    %c8_i32_58 = arith.constant 8 : i32
    %169 = arith.muli %c2_i32, %c8_i32_58 : i32
    %170 = tpu.assume_multiple %169, 8 : i32
    %171 = arith.index_cast %170 : i32 to index
    %c0_59 = arith.constant 0 : index
    %172 = vector.load %arg12[%171, %c0_59] : memref<32x512xf32, #tpu.memory_space<vmem>>, vector<8x512xf32>
    %173 = arith.truncf %126 : vector<8x128xf32> to vector<8x128xbf16>
    %cst_60 = arith.constant dense<0.000000e+00> : vector<8x512xf32>
    %174 = tpu.matmul %173, %18, %cst_60 {dimension_numbers = #tpu.dot_dimension_numbers<[1], [0], [0], [1], [0, 0, 1, 1], [], []>} : vector<8x128xbf16>, vector<128x512xbf16>, vector<8x512xf32> -> vector<8x512xf32>
    %175 = arith.addf %172, %174 : vector<8x512xf32>
    %176 = vector.extract_strided_slice %175 {offsets = [0, 0], sizes = [8, 384], strides = [1, 1]} : vector<8x512xf32> to vector<8x384xf32>
    %177 = arith.negf %176 : vector<8x384xf32>
    %178 = math.exp %177 : vector<8x384xf32>
    %cst_61 = arith.constant 1.000000e+00 : f32
    %179 = vector.broadcast %cst_61 : f32 to vector<8x384xf32>
    %180 = arith.addf %179, %178 : vector<8x384xf32>
    %181 = arith.divf %179, %180 : vector<8x384xf32>
    %182 = vector.extract_strided_slice %175 {offsets = [0, 384], sizes = [8, 128], strides = [1, 1]} : vector<8x512xf32> to vector<8x128xf32>
    %183 = math.tanh %182 : vector<8x128xf32>
    %184 = vector.extract_strided_slice %181 {offsets = [0, 0], sizes = [8, 128], strides = [1, 1]} : vector<8x384xf32> to vector<8x128xf32>
    %185 = vector.extract_strided_slice %181 {offsets = [0, 128], sizes = [8, 128], strides = [1, 1]} : vector<8x384xf32> to vector<8x128xf32>
    %186 = vector.extract_strided_slice %181 {offsets = [0, 256], sizes = [8, 128], strides = [1, 1]} : vector<8x384xf32> to vector<8x128xf32>
    %187 = arith.mulf %185, %129 : vector<8x128xf32>
    %188 = arith.mulf %184, %183 : vector<8x128xf32>
    %189 = arith.addf %187, %188 : vector<8x128xf32>
    %190 = math.tanh %189 : vector<8x128xf32>
    %191 = arith.mulf %186, %190 : vector<8x128xf32>
    %192 = arith.addi %20, %c2_i32 : i32
    %193 = vector.broadcast %192 : i32 to vector<8x1xi32>
    %194 = arith.cmpi slt, %193, %17 : vector<8x1xi32>
    %195 = vector.shape_cast %194 : vector<8x1xi1> to vector<8x1xi1>
    %196 = vector.broadcast %195 : vector<8x1xi1> to vector<8x128xi1>
    %197 = arith.select %196, %191, %126 : vector<8x128xi1>, vector<8x128xf32>
    %198 = vector.shape_cast %194 : vector<8x1xi1> to vector<8x1xi1>
    %199 = vector.broadcast %198 : vector<8x1xi1> to vector<8x128xi1>
    %200 = arith.select %199, %189, %129 : vector<8x128xi1>, vector<8x128xf32>
    %201 = vector.shape_cast %197 : vector<8x128xf32> to vector<1x8x128xf32>
    %202 = arith.index_cast %c2_i32 : i32 to index
    %c0_62 = arith.constant 0 : index
    %c0_63 = arith.constant 0 : index
    %203 = vector.load %arg14[%202, %c0_62, %c0_63] : memref<4x8x128xf32, #tpu.memory_space<vmem>>, vector<1x8x128xf32>
    tpu.vector_store %arg14[%202, %c0_62, %c0_63], %201 {strides = array<i32>} : memref<4x8x128xf32, #tpu.memory_space<vmem>>, vector<1x8x128xf32>,
    %c3_i32_64 = arith.constant 3 : i32
    %204 = arith.subi %c3_i32_64, %c2_i32 : i32
    %c8_i32_65 = arith.constant 8 : i32
    %205 = arith.muli %204, %c8_i32_65 : i32
    %206 = tpu.assume_multiple %205, 8 : i32
    %207 = arith.index_cast %206 : i32 to index
    %c0_66 = arith.constant 0 : index
    %208 = vector.load %arg13[%207, %c0_66] : memref<32x512xf32, #tpu.memory_space<vmem>>, vector<8x512xf32>
    %209 = arith.truncf %162 : vector<8x128xf32> to vector<8x128xbf16>
    %cst_67 = arith.constant dense<0.000000e+00> : vector<8x512xf32>
    %210 = tpu.matmul %209, %19, %cst_67 {dimension_numbers = #tpu.dot_dimension_numbers<[1], [0], [0], [1], [0, 0, 1, 1], [], []>} : vector<8x128xbf16>, vector<128x512xbf16>, vector<8x512xf32> -> vector<8x512xf32>
    %211 = arith.addf %208, %210 : vector<8x512xf32>
    %212 = vector.extract_strided_slice %211 {offsets = [0, 0], sizes = [8, 384], strides = [1, 1]} : vector<8x512xf32> to vector<8x384xf32>
    %213 = arith.negf %212 : vector<8x384xf32>
    %214 = math.exp %213 : vector<8x384xf32>
    %cst_68 = arith.constant 1.000000e+00 : f32
    %215 = vector.broadcast %cst_68 : f32 to vector<8x384xf32>
    %216 = arith.addf %215, %214 : vector<8x384xf32>
    %217 = arith.divf %215, %216 : vector<8x384xf32>
    %218 = vector.extract_strided_slice %211 {offsets = [0, 384], sizes = [8, 128], strides = [1, 1]} : vector<8x512xf32> to vector<8x128xf32>
    %219 = math.tanh %218 : vector<8x128xf32>
    %220 = vector.extract_strided_slice %217 {offsets = [0, 0], sizes = [8, 128], strides = [1, 1]} : vector<8x384xf32> to vector<8x128xf32>
    %221 = vector.extract_strided_slice %217 {offsets = [0, 128], sizes = [8, 128], strides = [1, 1]} : vector<8x384xf32> to vector<8x128xf32>
    %222 = vector.extract_strided_slice %217 {offsets = [0, 256], sizes = [8, 128], strides = [1, 1]} : vector<8x384xf32> to vector<8x128xf32>
    %223 = arith.mulf %221, %165 : vector<8x128xf32>
    %224 = arith.mulf %220, %219 : vector<8x128xf32>
    %225 = arith.addf %223, %224 : vector<8x128xf32>
    %226 = math.tanh %225 : vector<8x128xf32>
    %227 = arith.mulf %222, %226 : vector<8x128xf32>
    %228 = arith.addi %22, %204 : i32
    %229 = vector.broadcast %228 : i32 to vector<8x1xi32>
    %230 = arith.cmpi slt, %229, %17 : vector<8x1xi32>
    %231 = vector.shape_cast %230 : vector<8x1xi1> to vector<8x1xi1>
    %232 = vector.broadcast %231 : vector<8x1xi1> to vector<8x128xi1>
    %233 = arith.select %232, %227, %162 : vector<8x128xi1>, vector<8x128xf32>
    %234 = vector.shape_cast %230 : vector<8x1xi1> to vector<8x1xi1>
    %235 = vector.broadcast %234 : vector<8x1xi1> to vector<8x128xi1>
    %236 = arith.select %235, %225, %165 : vector<8x128xi1>, vector<8x128xf32>
    %237 = vector.shape_cast %233 : vector<8x128xf32> to vector<1x8x128xf32>
    %238 = arith.index_cast %204 : i32 to index
    %c0_69 = arith.constant 0 : index
    %c0_70 = arith.constant 0 : index
    %239 = vector.load %arg15[%238, %c0_69, %c0_70] : memref<4x8x128xf32, #tpu.memory_space<vmem>>, vector<1x8x128xf32>
    tpu.vector_store %arg15[%238, %c0_69, %c0_70], %237 {strides = array<i32>} : memref<4x8x128xf32, #tpu.memory_space<vmem>>, vector<1x8x128xf32>,
    %c3_i32_71 = arith.constant 3 : i32
    %c8_i32_72 = arith.constant 8 : i32
    %240 = arith.muli %c3_i32_71, %c8_i32_72 : i32
    %241 = tpu.assume_multiple %240, 8 : i32
    %242 = arith.index_cast %241 : i32 to index
    %c0_73 = arith.constant 0 : index
    %243 = vector.load %arg12[%242, %c0_73] : memref<32x512xf32, #tpu.memory_space<vmem>>, vector<8x512xf32>
    %244 = arith.truncf %197 : vector<8x128xf32> to vector<8x128xbf16>
    %cst_74 = arith.constant dense<0.000000e+00> : vector<8x512xf32>
    %245 = tpu.matmul %244, %18, %cst_74 {dimension_numbers = #tpu.dot_dimension_numbers<[1], [0], [0], [1], [0, 0, 1, 1], [], []>} : vector<8x128xbf16>, vector<128x512xbf16>, vector<8x512xf32> -> vector<8x512xf32>
    %246 = arith.addf %243, %245 : vector<8x512xf32>
    %247 = vector.extract_strided_slice %246 {offsets = [0, 0], sizes = [8, 384], strides = [1, 1]} : vector<8x512xf32> to vector<8x384xf32>
    %248 = arith.negf %247 : vector<8x384xf32>
    %249 = math.exp %248 : vector<8x384xf32>
    %cst_75 = arith.constant 1.000000e+00 : f32
    %250 = vector.broadcast %cst_75 : f32 to vector<8x384xf32>
    %251 = arith.addf %250, %249 : vector<8x384xf32>
    %252 = arith.divf %250, %251 : vector<8x384xf32>
    %253 = vector.extract_strided_slice %246 {offsets = [0, 384], sizes = [8, 128], strides = [1, 1]} : vector<8x512xf32> to vector<8x128xf32>
    %254 = math.tanh %253 : vector<8x128xf32>
    %255 = vector.extract_strided_slice %252 {offsets = [0, 0], sizes = [8, 128], strides = [1, 1]} : vector<8x384xf32> to vector<8x128xf32>
    %256 = vector.extract_strided_slice %252 {offsets = [0, 128], sizes = [8, 128], strides = [1, 1]} : vector<8x384xf32> to vector<8x128xf32>
    %257 = vector.extract_strided_slice %252 {offsets = [0, 256], sizes = [8, 128], strides = [1, 1]} : vector<8x384xf32> to vector<8x128xf32>
    %258 = arith.mulf %256, %200 : vector<8x128xf32>
    %259 = arith.mulf %255, %254 : vector<8x128xf32>
    %260 = arith.addf %258, %259 : vector<8x128xf32>
    %261 = math.tanh %260 : vector<8x128xf32>
    %262 = arith.mulf %257, %261 : vector<8x128xf32>
    %263 = arith.addi %20, %c3_i32_71 : i32
    %264 = vector.broadcast %263 : i32 to vector<8x1xi32>
    %265 = arith.cmpi slt, %264, %17 : vector<8x1xi32>
    %266 = vector.shape_cast %265 : vector<8x1xi1> to vector<8x1xi1>
    %267 = vector.broadcast %266 : vector<8x1xi1> to vector<8x128xi1>
    %268 = arith.select %267, %262, %197 : vector<8x128xi1>, vector<8x128xf32>
    %269 = vector.shape_cast %265 : vector<8x1xi1> to vector<8x1xi1>
    %270 = vector.broadcast %269 : vector<8x1xi1> to vector<8x128xi1>
    %271 = arith.select %270, %260, %200 : vector<8x128xi1>, vector<8x128xf32>
    %272 = vector.shape_cast %268 : vector<8x128xf32> to vector<1x8x128xf32>
    %273 = arith.index_cast %c3_i32_71 : i32 to index
    %c0_76 = arith.constant 0 : index
    %c0_77 = arith.constant 0 : index
    %274 = vector.load %arg14[%273, %c0_76, %c0_77] : memref<4x8x128xf32, #tpu.memory_space<vmem>>, vector<1x8x128xf32>
    tpu.vector_store %arg14[%273, %c0_76, %c0_77], %272 {strides = array<i32>} : memref<4x8x128xf32, #tpu.memory_space<vmem>>, vector<1x8x128xf32>,
    %c3_i32_78 = arith.constant 3 : i32
    %275 = arith.subi %c3_i32_78, %c3_i32_71 : i32
    %c8_i32_79 = arith.constant 8 : i32
    %276 = arith.muli %275, %c8_i32_79 : i32
    %277 = tpu.assume_multiple %276, 8 : i32
    %278 = arith.index_cast %277 : i32 to index
    %c0_80 = arith.constant 0 : index
    %279 = vector.load %arg13[%278, %c0_80] : memref<32x512xf32, #tpu.memory_space<vmem>>, vector<8x512xf32>
    %280 = arith.truncf %233 : vector<8x128xf32> to vector<8x128xbf16>
    %cst_81 = arith.constant dense<0.000000e+00> : vector<8x512xf32>
    %281 = tpu.matmul %280, %19, %cst_81 {dimension_numbers = #tpu.dot_dimension_numbers<[1], [0], [0], [1], [0, 0, 1, 1], [], []>} : vector<8x128xbf16>, vector<128x512xbf16>, vector<8x512xf32> -> vector<8x512xf32>
    %282 = arith.addf %279, %281 : vector<8x512xf32>
    %283 = vector.extract_strided_slice %282 {offsets = [0, 0], sizes = [8, 384], strides = [1, 1]} : vector<8x512xf32> to vector<8x384xf32>
    %284 = arith.negf %283 : vector<8x384xf32>
    %285 = math.exp %284 : vector<8x384xf32>
    %cst_82 = arith.constant 1.000000e+00 : f32
    %286 = vector.broadcast %cst_82 : f32 to vector<8x384xf32>
    %287 = arith.addf %286, %285 : vector<8x384xf32>
    %288 = arith.divf %286, %287 : vector<8x384xf32>
    %289 = vector.extract_strided_slice %282 {offsets = [0, 384], sizes = [8, 128], strides = [1, 1]} : vector<8x512xf32> to vector<8x128xf32>
    %290 = math.tanh %289 : vector<8x128xf32>
    %291 = vector.extract_strided_slice %288 {offsets = [0, 0], sizes = [8, 128], strides = [1, 1]} : vector<8x384xf32> to vector<8x128xf32>
    %292 = vector.extract_strided_slice %288 {offsets = [0, 128], sizes = [8, 128], strides = [1, 1]} : vector<8x384xf32> to vector<8x128xf32>
    %293 = vector.extract_strided_slice %288 {offsets = [0, 256], sizes = [8, 128], strides = [1, 1]} : vector<8x384xf32> to vector<8x128xf32>
    %294 = arith.mulf %292, %236 : vector<8x128xf32>
    %295 = arith.mulf %291, %290 : vector<8x128xf32>
    %296 = arith.addf %294, %295 : vector<8x128xf32>
    %297 = math.tanh %296 : vector<8x128xf32>
    %298 = arith.mulf %293, %297 : vector<8x128xf32>
    %299 = arith.addi %22, %275 : i32
    %300 = vector.broadcast %299 : i32 to vector<8x1xi32>
    %301 = arith.cmpi slt, %300, %17 : vector<8x1xi32>
    %302 = vector.shape_cast %301 : vector<8x1xi1> to vector<8x1xi1>
    %303 = vector.broadcast %302 : vector<8x1xi1> to vector<8x128xi1>
    %304 = arith.select %303, %298, %233 : vector<8x128xi1>, vector<8x128xf32>
    %305 = vector.shape_cast %301 : vector<8x1xi1> to vector<8x1xi1>
    %306 = vector.broadcast %305 : vector<8x1xi1> to vector<8x128xi1>
    %307 = arith.select %306, %296, %236 : vector<8x128xi1>, vector<8x128xf32>
    %308 = vector.shape_cast %304 : vector<8x128xf32> to vector<1x8x128xf32>
    %309 = arith.index_cast %275 : i32 to index
    %c0_83 = arith.constant 0 : index
    %c0_84 = arith.constant 0 : index
    %310 = vector.load %arg15[%309, %c0_83, %c0_84] : memref<4x8x128xf32, #tpu.memory_space<vmem>>, vector<1x8x128xf32>
    tpu.vector_store %arg15[%309, %c0_83, %c0_84], %308 {strides = array<i32>} : memref<4x8x128xf32, #tpu.memory_space<vmem>>, vector<1x8x128xf32>,
    %c4_i32_85 = arith.constant 4 : i32
    %c0_86 = arith.constant 0 : index
    %c0_87 = arith.constant 0 : index
    %c0_88 = arith.constant 0 : index
    %311 = vector.load %arg14[%c0_86, %c0_87, %c0_88] : memref<4x8x128xf32, #tpu.memory_space<vmem>>, vector<4x8x128xf32>
    %312 = arith.truncf %311 : vector<4x8x128xf32> to vector<4x8x128xbf16>
    %c0_89 = arith.constant 0 : index
    %c0_90 = arith.constant 0 : index
    %c0_91 = arith.constant 0 : index
    %313 = vector.load %arg10[%c0_89, %c0_90, %c0_91] : memref<4x8x128xbf16, #tpu.memory_space<vmem>>, vector<4x8x128xbf16>
    tpu.vector_store %arg10[%c0_89, %c0_90, %c0_91], %312 {strides = array<i32>} : memref<4x8x128xbf16, #tpu.memory_space<vmem>>, vector<4x8x128xbf16>,
    %c0_92 = arith.constant 0 : index
    %c0_93 = arith.constant 0 : index
    %c0_94 = arith.constant 0 : index
    %314 = vector.load %arg15[%c0_92, %c0_93, %c0_94] : memref<4x8x128xf32, #tpu.memory_space<vmem>>, vector<4x8x128xf32>
    %315 = arith.truncf %314 : vector<4x8x128xf32> to vector<4x8x128xbf16>
    %c0_95 = arith.constant 0 : index
    %c0_96 = arith.constant 0 : index
    %c0_97 = arith.constant 0 : index
    %316 = vector.load %arg11[%c0_95, %c0_96, %c0_97] : memref<4x8x128xbf16, #tpu.memory_space<vmem>>, vector<4x8x128xbf16>
    tpu.vector_store %arg11[%c0_95, %c0_96, %c0_97], %315 {strides = array<i32>} : memref<4x8x128xbf16, #tpu.memory_space<vmem>>, vector<4x8x128xbf16>,
    %c0_98 = arith.constant 0 : index
    %c0_99 = arith.constant 0 : index
    %317 = vector.load %arg16[%c0_98, %c0_99] : memref<8x128xf32, #tpu.memory_space<vmem>>, vector<8x128xf32>
    tpu.vector_store %arg16[%c0_98, %c0_99], %268 {strides = array<i32>} : memref<8x128xf32, #tpu.memory_space<vmem>>, vector<8x128xf32>,
    %c0_100 = arith.constant 0 : index
    %c0_101 = arith.constant 0 : index
    %318 = vector.load %arg17[%c0_100, %c0_101] : memref<8x128xf32, #tpu.memory_space<vmem>>, vector<8x128xf32>
    tpu.vector_store %arg17[%c0_100, %c0_101], %271 {strides = array<i32>} : memref<8x128xf32, #tpu.memory_space<vmem>>, vector<8x128xf32>,
    %c0_102 = arith.constant 0 : index
    %c0_103 = arith.constant 0 : index
    %319 = vector.load %arg18[%c0_102, %c0_103] : memref<8x128xf32, #tpu.memory_space<vmem>>, vector<8x128xf32>
    tpu.vector_store %arg18[%c0_102, %c0_103], %304 {strides = array<i32>} : memref<8x128xf32, #tpu.memory_space<vmem>>, vector<8x128xf32>,
    %c0_104 = arith.constant 0 : index
    %c0_105 = arith.constant 0 : index
    %320 = vector.load %arg19[%c0_104, %c0_105] : memref<8x128xf32, #tpu.memory_space<vmem>>, vector<8x128xf32>
    tpu.vector_store %arg19[%c0_104, %c0_105], %307 {strides = array<i32>} : memref<8x128xf32, #tpu.memory_space<vmem>>, vector<8x128xf32>,
    return
  }
  func.func @transform_0(%arg0: i32) -> (i32, i32) {
    %c0_i32 = arith.constant 0 : i32
    %c0_i32_0 = arith.constant 0 : i32
    %c0_i32_1 = arith.constant 0 : i32
    return %c0_i32, %c0_i32_0 : i32, i32
  }
  func.func @transform_1(%arg0: i32) -> (i32, i32) {
    %c0_i32 = arith.constant 0 : i32
    %c0_i32_0 = arith.constant 0 : i32
    return %arg0, %c0_i32 : i32, i32
  }
  func.func @transform_2(%arg0: i32) -> (i32, i32) {
    %c1_i32 = arith.constant 1 : i32
    %0 = arith.subi %c1_i32, %arg0 : i32
    %c0_i32 = arith.constant 0 : i32
    %c0_i32_0 = arith.constant 0 : i32
    return %0, %c0_i32 : i32, i32
  }
  func.func @transform_3(%arg0: i32) -> (i32, i32) {
    %c0_i32 = arith.constant 0 : i32
    %c0_i32_0 = arith.constant 0 : i32
    %c0_i32_1 = arith.constant 0 : i32
    return %c0_i32, %c0_i32_0 : i32, i32
  }
  func.func @transform_4(%arg0: i32) -> (i32, i32) {
    %c0_i32 = arith.constant 0 : i32
    %c0_i32_0 = arith.constant 0 : i32
    %c0_i32_1 = arith.constant 0 : i32
    return %c0_i32, %c0_i32_0 : i32, i32
  }
  func.func @transform_5(%arg0: i32) -> (i32, i32) {
    %c0_i32 = arith.constant 0 : i32
    %c0_i32_0 = arith.constant 0 : i32
    %c0_i32_1 = arith.constant 0 : i32
    return %c0_i32, %c0_i32_0 : i32, i32
  }
  func.func @transform_6(%arg0: i32) -> (i32, i32) {
    %c0_i32 = arith.constant 0 : i32
    %c0_i32_0 = arith.constant 0 : i32
    %c0_i32_1 = arith.constant 0 : i32
    return %c0_i32, %c0_i32_0 : i32, i32
  }
  func.func @transform_7(%arg0: i32) -> (i32, i32) {
    %c0_i32 = arith.constant 0 : i32
    %c0_i32_0 = arith.constant 0 : i32
    %c0_i32_1 = arith.constant 0 : i32
    return %c0_i32, %c0_i32_0 : i32, i32
  }
  func.func @transform_8(%arg0: i32) -> (i32, i32) {
    %c0_i32 = arith.constant 0 : i32
    %c0_i32_0 = arith.constant 0 : i32
    %c0_i32_1 = arith.constant 0 : i32
    return %c0_i32, %c0_i32_0 : i32, i32
  }
  func.func @transform_9(%arg0: i32) -> (i32, i32, i32) {
    %c0_i32 = arith.constant 0 : i32
    %c0_i32_0 = arith.constant 0 : i32
    %c0_i32_1 = arith.constant 0 : i32
    return %arg0, %c0_i32, %c0_i32_0 : i32, i32, i32
  }
  func.func @transform_10(%arg0: i32) -> (i32, i32, i32) {
    %c1_i32 = arith.constant 1 : i32
    %0 = arith.subi %c1_i32, %arg0 : i32
    %c0_i32 = arith.constant 0 : i32
    %c0_i32_0 = arith.constant 0 : i32
    %c0_i32_1 = arith.constant 0 : i32
    return %0, %c0_i32, %c0_i32_0 : i32, i32, i32
  }
}

module attributes {stable_mosaic.version = 11 : i64} {
  func.func @_lstm_bidir_chunk_kernel(%arg0: i32, %arg1: memref<8x1xi32, #tpu.memory_space<vmem>>, %arg2: memref<32x256xbf16, #tpu.memory_space<vmem>>, %arg3: memref<32x256xbf16, #tpu.memory_space<vmem>>, %arg4: memref<256x512xbf16, #tpu.memory_space<vmem>>, %arg5: memref<256x512xbf16, #tpu.memory_space<vmem>>, %arg6: memref<128x512xbf16, #tpu.memory_space<vmem>>, %arg7: memref<128x512xbf16, #tpu.memory_space<vmem>>, %arg8: memref<1x512xf32, #tpu.memory_space<vmem>>, %arg9: memref<1x512xf32, #tpu.memory_space<vmem>>, %arg10: memref<4x8x128xbf16, #tpu.memory_space<vmem>>, %arg11: memref<4x8x128xbf16, #tpu.memory_space<vmem>>, %arg12: memref<32x512xf32, #tpu.memory_space<vmem>>, %arg13: memref<32x512xf32, #tpu.memory_space<vmem>>, %arg14: memref<4x8x128xf32, #tpu.memory_space<vmem>>, %arg15: memref<4x8x128xf32, #tpu.memory_space<vmem>>, %arg16: memref<8x128xf32, #tpu.memory_space<vmem>>, %arg17: memref<8x128xf32, #tpu.memory_space<vmem>>, %arg18: memref<8x128xf32, #tpu.memory_space<vmem>>, %arg19: memref<8x128xf32, #tpu.memory_space<vmem>>) attributes {dimension_semantics = [#tpu.dimension_semantics<arbitrary>], iteration_bounds = array<i64: 2>, scalar_prefetch = 0 : i64, scratch_operands = 8 : i64, tpu.core_type = #tpu.core_type<tc>, window_params = [{pipeline_mode = #tpu.pipeline_mode<synchronous>, transform_indices = @transform_0, window_bounds = array<i64: 8, 1>}, {transform_indices = @transform_1, window_bounds = array<i64: 32, 256>}, {transform_indices = @transform_2, window_bounds = array<i64: 32, 256>}, {pipeline_mode = #tpu.pipeline_mode<synchronous>, transform_indices = @transform_3, window_bounds = array<i64: 256, 512>}, {pipeline_mode = #tpu.pipeline_mode<synchronous>, transform_indices = @transform_4, window_bounds = array<i64: 256, 512>}, {pipeline_mode = #tpu.pipeline_mode<synchronous>, transform_indices = @transform_5, window_bounds = array<i64: 128, 512>}, {pipeline_mode = #tpu.pipeline_mode<synchronous>, transform_indices = @transform_6, window_bounds = array<i64: 128, 512>}, {pipeline_mode = #tpu.pipeline_mode<synchronous>, transform_indices = @transform_7, window_bounds = array<i64: 1, 512>}, {pipeline_mode = #tpu.pipeline_mode<synchronous>, transform_indices = @transform_8, window_bounds = array<i64: 1, 512>}, {transform_indices = @transform_9, window_bounds = array<i64: 4, 8, 128>}, {transform_indices = @transform_10, window_bounds = array<i64: 4, 8, 128>}]} {
    %c0_i32 = arith.constant 0 : i32
    %0 = arith.cmpi eq, %arg0, %c0_i32 : i32
    %1 = arith.extui %0 : i1 to i32
    %c0_i32_0 = arith.constant 0 : i32
    %2 = arith.cmpi ne, %1, %c0_i32_0 : i32
    scf.if %2 {
      %cst_106 = arith.constant 0.000000e+00 : f32
      %321 = vector.broadcast %cst_106 : f32 to vector<8x128xf32>
      %c0_107 = arith.constant 0 : index
      %c0_108 = arith.constant 0 : index
      %322 = vector.load %arg16[%c0_107, %c0_108] : memref<8x128xf32, #tpu.memory_space<vmem>>, vector<8x128xf32>
      tpu.vector_store %arg16[%c0_107, %c0_108], %321 {strides = array<i32>} : memref<8x128xf32, #tpu.memory_space<vmem>>, vector<8x128xf32>,
      %cst_109 = arith.constant 0.000000e+00 : f32
      %323 = vector.broadcast %cst_109 : f32 to vector<8x128xf32>
      %c0_110 = arith.constant 0 : index
      %c0_111 = arith.constant 0 : index
      %324 = vector.load %arg17[%c0_110, %c0_111] : memref<8x128xf32, #tpu.memory_space<vmem>>, vector<8x128xf32>
      tpu.vector_store %arg17[%c0_110, %c0_111], %323 {strides = array<i32>} : memref<8x128xf32, #tpu.memory_space<vmem>>, vector<8x128xf32>,
      %cst_112 = arith.constant 0.000000e+00 : f32
      %325 = vector.broadcast %cst_112 : f32 to vector<8x128xf32>
      %c0_113 = arith.constant 0 : index
      %c0_114 = arith.constant 0 : index
      %326 = vector.load %arg18[%c0_113, %c0_114] : memref<8x128xf32, #tpu.memory_space<vmem>>, vector<8x128xf32>
      tpu.vector_store %arg18[%c0_113, %c0_114], %325 {strides = array<i32>} : memref<8x128xf32, #tpu.memory_space<vmem>>, vector<8x128xf32>,
      %cst_115 = arith.constant 0.000000e+00 : f32
      %327 = vector.broadcast %cst_115 : f32 to vector<8x128xf32>
      %c0_116 = arith.constant 0 : index
      %c0_117 = arith.constant 0 : index
      %328 = vector.load %arg19[%c0_116, %c0_117] : memref<8x128xf32, #tpu.memory_space<vmem>>, vector<8x128xf32>
      tpu.vector_store %arg19[%c0_116, %c0_117], %327 {strides = array<i32>} : memref<8x128xf32, #tpu.memory_space<vmem>>, vector<8x128xf32>,
    } else {
    }
    %c0 = arith.constant 0 : index
    %c0_1 = arith.constant 0 : index
    %3 = vector.load %arg2[%c0, %c0_1] : memref<32x256xbf16, #tpu.memory_space<vmem>>, vector<32x256xbf16>
    %c0_2 = arith.constant 0 : index
    %c0_3 = arith.constant 0 : index
    %4 = vector.load %arg4[%c0_2, %c0_3] : memref<256x512xbf16, #tpu.memory_space<vmem>>, vector<256x512xbf16>
    %cst = arith.constant dense<0.000000e+00> : vector<32x512xf32>
    %5 = tpu.matmul %3, %4, %cst {dimension_numbers = #tpu.dot_dimension_numbers<[1], [0], [0], [1], [0, 0, 1, 1], [], []>} : vector<32x256xbf16>, vector<256x512xbf16>, vector<32x512xf32> -> vector<32x512xf32>
    %c0_4 = arith.constant 0 : index
    %c0_5 = arith.constant 0 : index
    %6 = vector.load %arg8[%c0_4, %c0_5] : memref<1x512xf32, #tpu.memory_space<vmem>>, vector<1x512xf32>
    %7 = vector.broadcast %6 : vector<1x512xf32> to vector<32x512xf32>
    %8 = arith.addf %5, %7 : vector<32x512xf32>
    %c0_6 = arith.constant 0 : index
    %c0_7 = arith.constant 0 : index
    %9 = vector.load %arg12[%c0_6, %c0_7] : memref<32x512xf32, #tpu.memory_space<vmem>>, vector<32x512xf32>
    tpu.vector_store %arg12[%c0_6, %c0_7], %8 {strides = array<i32>} : memref<32x512xf32, #tpu.memory_space<vmem>>, vector<32x512xf32>,
    %c0_8 = arith.constant 0 : index
    %c0_9 = arith.constant 0 : index
    %10 = vector.load %arg3[%c0_8, %c0_9] : memref<32x256xbf16, #tpu.memory_space<vmem>>, vector<32x256xbf16>
    %c0_10 = arith.constant 0 : index
    %c0_11 = arith.constant 0 : index
    %11 = vector.load %arg5[%c0_10, %c0_11] : memref<256x512xbf16, #tpu.memory_space<vmem>>, vector<256x512xbf16>
    %cst_12 = arith.constant dense<0.000000e+00> : vector<32x512xf32>
    %12 = tpu.matmul %10, %11, %cst_12 {dimension_numbers = #tpu.dot_dimension_numbers<[1], [0], [0], [1], [0, 0, 1, 1], [], []>} : vector<32x256xbf16>, vector<256x512xbf16>, vector<32x512xf32> -> vector<32x512xf32>
    %c0_13 = arith.constant 0 : index
    %c0_14 = arith.constant 0 : index
    %13 = vector.load %arg9[%c0_13, %c0_14] : memref<1x512xf32, #tpu.memory_space<vmem>>, vector<1x512xf32>
    %14 = vector.broadcast %13 : vector<1x512xf32> to vector<32x512xf32>
    %15 = arith.addf %12, %14 : vector<32x512xf32>
    %c0_15 = arith.constant 0 : index
    %c0_16 = arith.constant 0 : index
    %16 = vector.load %arg13[%c0_15, %c0_16] : memref<32x512xf32, #tpu.memory_space<vmem>>, vector<32x512xf32>
    tpu.vector_store %arg13[%c0_15, %c0_16], %15 {strides = array<i32>} : memref<32x512xf32, #tpu.memory_space<vmem>>, vector<32x512xf32>,
    %c0_17 = arith.constant 0 : index
    %c0_18 = arith.constant 0 : index
    %17 = vector.load %arg1[%c0_17, %c0_18] : memref<8x1xi32, #tpu.memory_space<vmem>>, vector<8x1xi32>
    %c0_19 = arith.constant 0 : index
    %c0_20 = arith.constant 0 : index
    %18 = vector.load %arg6[%c0_19, %c0_20] : memref<128x512xbf16, #tpu.memory_space<vmem>>, vector<128x512xbf16>
    %c0_21 = arith.constant 0 : index
    %c0_22 = arith.constant 0 : index
    %19 = vector.load %arg7[%c0_21, %c0_22] : memref<128x512xbf16, #tpu.memory_space<vmem>>, vector<128x512xbf16>
    %c4_i32 = arith.constant 4 : i32
    %20 = arith.muli %arg0, %c4_i32 : i32
    %c1_i32 = arith.constant 1 : i32
    %21 = arith.subi %c1_i32, %arg0 : i32
    %c4_i32_23 = arith.constant 4 : i32
    %22 = arith.muli %21, %c4_i32_23 : i32
    %c0_24 = arith.constant 0 : index
    %c0_25 = arith.constant 0 : index
    %23 = vector.load %arg16[%c0_24, %c0_25] : memref<8x128xf32, #tpu.memory_space<vmem>>, vector<8x128xf32>
    %c0_26 = arith.constant 0 : index
    %c0_27 = arith.constant 0 : index
    %24 = vector.load %arg17[%c0_26, %c0_27] : memref<8x128xf32, #tpu.memory_space<vmem>>, vector<8x128xf32>
    %c0_28 = arith.constant 0 : index
    %c0_29 = arith.constant 0 : index
    %25 = vector.load %arg18[%c0_28, %c0_29] : memref<8x128xf32, #tpu.memory_space<vmem>>, vector<8x128xf32>
    %c0_30 = arith.constant 0 : index
    %c0_31 = arith.constant 0 : index
    %26 = vector.load %arg19[%c0_30, %c0_31] : memref<8x128xf32, #tpu.memory_space<vmem>>, vector<8x128xf32>
    %c0_i32_32 = arith.constant 0 : i32
    %c8_i32 = arith.constant 8 : i32
    %27 = arith.muli %c0_i32_32, %c8_i32 : i32
    %28 = tpu.assume_multiple %27, 8 : i32
    %29 = arith.index_cast %28 : i32 to index
    %c0_33 = arith.constant 0 : index
    %30 = vector.load %arg12[%29, %c0_33] : memref<32x512xf32, #tpu.memory_space<vmem>>, vector<8x512xf32>
    %31 = arith.truncf %23 : vector<8x128xf32> to vector<8x128xbf16>
    %cst_34 = arith.constant dense<0.000000e+00> : vector<8x512xf32>
    %32 = tpu.matmul %31, %18, %cst_34 {dimension_numbers = #tpu.dot_dimension_numbers<[1], [0], [0], [1], [0, 0, 1, 1], [], []>} : vector<8x128xbf16>, vector<128x512xbf16>, vector<8x512xf32> -> vector<8x512xf32>
    %33 = arith.addf %30, %32 : vector<8x512xf32>
    %34 = vector.extract_strided_slice %33 {offsets = [0, 0], sizes = [8, 384], strides = [1, 1]} : vector<8x512xf32> to vector<8x384xf32>
    %35 = arith.negf %34 : vector<8x384xf32>
    %36 = math.exp %35 : vector<8x384xf32>
    %cst_35 = arith.constant 1.000000e+00 : f32
    %37 = vector.broadcast %cst_35 : f32 to vector<8x384xf32>
    %38 = arith.addf %37, %36 : vector<8x384xf32>
    %39 = arith.divf %37, %38 : vector<8x384xf32>
    %40 = vector.extract_strided_slice %33 {offsets = [0, 384], sizes = [8, 128], strides = [1, 1]} : vector<8x512xf32> to vector<8x128xf32>
    %41 = math.tanh %40 : vector<8x128xf32>
    %42 = vector.extract_strided_slice %39 {offsets = [0, 0], sizes = [8, 128], strides = [1, 1]} : vector<8x384xf32> to vector<8x128xf32>
    %43 = vector.extract_strided_slice %39 {offsets = [0, 128], sizes = [8, 128], strides = [1, 1]} : vector<8x384xf32> to vector<8x128xf32>
    %44 = vector.extract_strided_slice %39 {offsets = [0, 256], sizes = [8, 128], strides = [1, 1]} : vector<8x384xf32> to vector<8x128xf32>
    %45 = arith.mulf %43, %24 : vector<8x128xf32>
    %46 = arith.mulf %42, %41 : vector<8x128xf32>
    %47 = arith.addf %45, %46 : vector<8x128xf32>
    %48 = math.tanh %47 : vector<8x128xf32>
    %49 = arith.mulf %44, %48 : vector<8x128xf32>
    %50 = arith.addi %20, %c0_i32_32 : i32
    %51 = vector.broadcast %50 : i32 to vector<8x1xi32>
    %52 = arith.cmpi slt, %51, %17 : vector<8x1xi32>
    %53 = vector.shape_cast %52 : vector<8x1xi1> to vector<8x1xi1>
    %54 = vector.broadcast %53 : vector<8x1xi1> to vector<8x128xi1>
    %55 = arith.select %54, %49, %23 : vector<8x128xi1>, vector<8x128xf32>
    %56 = vector.shape_cast %52 : vector<8x1xi1> to vector<8x1xi1>
    %57 = vector.broadcast %56 : vector<8x1xi1> to vector<8x128xi1>
    %58 = arith.select %57, %47, %24 : vector<8x128xi1>, vector<8x128xf32>
    %59 = vector.shape_cast %55 : vector<8x128xf32> to vector<1x8x128xf32>
    %60 = arith.index_cast %c0_i32_32 : i32 to index
    %c0_36 = arith.constant 0 : index
    %c0_37 = arith.constant 0 : index
    %61 = vector.load %arg14[%60, %c0_36, %c0_37] : memref<4x8x128xf32, #tpu.memory_space<vmem>>, vector<1x8x128xf32>
    tpu.vector_store %arg14[%60, %c0_36, %c0_37], %59 {strides = array<i32>} : memref<4x8x128xf32, #tpu.memory_space<vmem>>, vector<1x8x128xf32>,
    %c3_i32 = arith.constant 3 : i32
    %62 = arith.subi %c3_i32, %c0_i32_32 : i32
    %c8_i32_38 = arith.constant 8 : i32
    %63 = arith.muli %62, %c8_i32_38 : i32
    %64 = tpu.assume_multiple %63, 8 : i32
    %65 = arith.index_cast %64 : i32 to index
    %c0_39 = arith.constant 0 : index
    %66 = vector.load %arg13[%65, %c0_39] : memref<32x512xf32, #tpu.memory_space<vmem>>, vector<8x512xf32>
    %67 = arith.truncf %25 : vector<8x128xf32> to vector<8x128xbf16>
    %cst_40 = arith.constant dense<0.000000e+00> : vector<8x512xf32>
    %68 = tpu.matmul %67, %19, %cst_40 {dimension_numbers = #tpu.dot_dimension_numbers<[1], [0], [0], [1], [0, 0, 1, 1], [], []>} : vector<8x128xbf16>, vector<128x512xbf16>, vector<8x512xf32> -> vector<8x512xf32>
    %69 = arith.addf %66, %68 : vector<8x512xf32>
    %70 = vector.extract_strided_slice %69 {offsets = [0, 0], sizes = [8, 384], strides = [1, 1]} : vector<8x512xf32> to vector<8x384xf32>
    %71 = arith.negf %70 : vector<8x384xf32>
    %72 = math.exp %71 : vector<8x384xf32>
    %cst_41 = arith.constant 1.000000e+00 : f32
    %73 = vector.broadcast %cst_41 : f32 to vector<8x384xf32>
    %74 = arith.addf %73, %72 : vector<8x384xf32>
    %75 = arith.divf %73, %74 : vector<8x384xf32>
    %76 = vector.extract_strided_slice %69 {offsets = [0, 384], sizes = [8, 128], strides = [1, 1]} : vector<8x512xf32> to vector<8x128xf32>
    %77 = math.tanh %76 : vector<8x128xf32>
    %78 = vector.extract_strided_slice %75 {offsets = [0, 0], sizes = [8, 128], strides = [1, 1]} : vector<8x384xf32> to vector<8x128xf32>
    %79 = vector.extract_strided_slice %75 {offsets = [0, 128], sizes = [8, 128], strides = [1, 1]} : vector<8x384xf32> to vector<8x128xf32>
    %80 = vector.extract_strided_slice %75 {offsets = [0, 256], sizes = [8, 128], strides = [1, 1]} : vector<8x384xf32> to vector<8x128xf32>
    %81 = arith.mulf %79, %26 : vector<8x128xf32>
    %82 = arith.mulf %78, %77 : vector<8x128xf32>
    %83 = arith.addf %81, %82 : vector<8x128xf32>
    %84 = math.tanh %83 : vector<8x128xf32>
    %85 = arith.mulf %80, %84 : vector<8x128xf32>
    %86 = arith.addi %22, %62 : i32
    %87 = vector.broadcast %86 : i32 to vector<8x1xi32>
    %88 = arith.cmpi slt, %87, %17 : vector<8x1xi32>
    %89 = vector.shape_cast %88 : vector<8x1xi1> to vector<8x1xi1>
    %90 = vector.broadcast %89 : vector<8x1xi1> to vector<8x128xi1>
    %91 = arith.select %90, %85, %25 : vector<8x128xi1>, vector<8x128xf32>
    %92 = vector.shape_cast %88 : vector<8x1xi1> to vector<8x1xi1>
    %93 = vector.broadcast %92 : vector<8x1xi1> to vector<8x128xi1>
    %94 = arith.select %93, %83, %26 : vector<8x128xi1>, vector<8x128xf32>
    %95 = vector.shape_cast %91 : vector<8x128xf32> to vector<1x8x128xf32>
    %96 = arith.index_cast %62 : i32 to index
    %c0_42 = arith.constant 0 : index
    %c0_43 = arith.constant 0 : index
    %97 = vector.load %arg15[%96, %c0_42, %c0_43] : memref<4x8x128xf32, #tpu.memory_space<vmem>>, vector<1x8x128xf32>
    tpu.vector_store %arg15[%96, %c0_42, %c0_43], %95 {strides = array<i32>} : memref<4x8x128xf32, #tpu.memory_space<vmem>>, vector<1x8x128xf32>,
    %c1_i32_44 = arith.constant 1 : i32
    %c8_i32_45 = arith.constant 8 : i32
    %98 = arith.muli %c1_i32_44, %c8_i32_45 : i32
    %99 = tpu.assume_multiple %98, 8 : i32
    %100 = arith.index_cast %99 : i32 to index
    %c0_46 = arith.constant 0 : index
    %101 = vector.load %arg12[%100, %c0_46] : memref<32x512xf32, #tpu.memory_space<vmem>>, vector<8x512xf32>
    %102 = arith.truncf %55 : vector<8x128xf32> to vector<8x128xbf16>
    %cst_47 = arith.constant dense<0.000000e+00> : vector<8x512xf32>
    %103 = tpu.matmul %102, %18, %cst_47 {dimension_numbers = #tpu.dot_dimension_numbers<[1], [0], [0], [1], [0, 0, 1, 1], [], []>} : vector<8x128xbf16>, vector<128x512xbf16>, vector<8x512xf32> -> vector<8x512xf32>
    %104 = arith.addf %101, %103 : vector<8x512xf32>
    %105 = vector.extract_strided_slice %104 {offsets = [0, 0], sizes = [8, 384], strides = [1, 1]} : vector<8x512xf32> to vector<8x384xf32>
    %106 = arith.negf %105 : vector<8x384xf32>
    %107 = math.exp %106 : vector<8x384xf32>
    %cst_48 = arith.constant 1.000000e+00 : f32
    %108 = vector.broadcast %cst_48 : f32 to vector<8x384xf32>
    %109 = arith.addf %108, %107 : vector<8x384xf32>
    %110 = arith.divf %108, %109 : vector<8x384xf32>
    %111 = vector.extract_strided_slice %104 {offsets = [0, 384], sizes = [8, 128], strides = [1, 1]} : vector<8x512xf32> to vector<8x128xf32>
    %112 = math.tanh %111 : vector<8x128xf32>
    %113 = vector.extract_strided_slice %110 {offsets = [0, 0], sizes = [8, 128], strides = [1, 1]} : vector<8x384xf32> to vector<8x128xf32>
    %114 = vector.extract_strided_slice %110 {offsets = [0, 128], sizes = [8, 128], strides = [1, 1]} : vector<8x384xf32> to vector<8x128xf32>
    %115 = vector.extract_strided_slice %110 {offsets = [0, 256], sizes = [8, 128], strides = [1, 1]} : vector<8x384xf32> to vector<8x128xf32>
    %116 = arith.mulf %114, %58 : vector<8x128xf32>
    %117 = arith.mulf %113, %112 : vector<8x128xf32>
    %118 = arith.addf %116, %117 : vector<8x128xf32>
    %119 = math.tanh %118 : vector<8x128xf32>
    %120 = arith.mulf %115, %119 : vector<8x128xf32>
    %121 = arith.addi %20, %c1_i32_44 : i32
    %122 = vector.broadcast %121 : i32 to vector<8x1xi32>
    %123 = arith.cmpi slt, %122, %17 : vector<8x1xi32>
    %124 = vector.shape_cast %123 : vector<8x1xi1> to vector<8x1xi1>
    %125 = vector.broadcast %124 : vector<8x1xi1> to vector<8x128xi1>
    %126 = arith.select %125, %120, %55 : vector<8x128xi1>, vector<8x128xf32>
    %127 = vector.shape_cast %123 : vector<8x1xi1> to vector<8x1xi1>
    %128 = vector.broadcast %127 : vector<8x1xi1> to vector<8x128xi1>
    %129 = arith.select %128, %118, %58 : vector<8x128xi1>, vector<8x128xf32>
    %130 = vector.shape_cast %126 : vector<8x128xf32> to vector<1x8x128xf32>
    %131 = arith.index_cast %c1_i32_44 : i32 to index
    %c0_49 = arith.constant 0 : index
    %c0_50 = arith.constant 0 : index
    %132 = vector.load %arg14[%131, %c0_49, %c0_50] : memref<4x8x128xf32, #tpu.memory_space<vmem>>, vector<1x8x128xf32>
    tpu.vector_store %arg14[%131, %c0_49, %c0_50], %130 {strides = array<i32>} : memref<4x8x128xf32, #tpu.memory_space<vmem>>, vector<1x8x128xf32>,
    %c3_i32_51 = arith.constant 3 : i32
    %133 = arith.subi %c3_i32_51, %c1_i32_44 : i32
    %c8_i32_52 = arith.constant 8 : i32
    %134 = arith.muli %133, %c8_i32_52 : i32
    %135 = tpu.assume_multiple %134, 8 : i32
    %136 = arith.index_cast %135 : i32 to index
    %c0_53 = arith.constant 0 : index
    %137 = vector.load %arg13[%136, %c0_53] : memref<32x512xf32, #tpu.memory_space<vmem>>, vector<8x512xf32>
    %138 = arith.truncf %91 : vector<8x128xf32> to vector<8x128xbf16>
    %cst_54 = arith.constant dense<0.000000e+00> : vector<8x512xf32>
    %139 = tpu.matmul %138, %19, %cst_54 {dimension_numbers = #tpu.dot_dimension_numbers<[1], [0], [0], [1], [0, 0, 1, 1], [], []>} : vector<8x128xbf16>, vector<128x512xbf16>, vector<8x512xf32> -> vector<8x512xf32>
    %140 = arith.addf %137, %139 : vector<8x512xf32>
    %141 = vector.extract_strided_slice %140 {offsets = [0, 0], sizes = [8, 384], strides = [1, 1]} : vector<8x512xf32> to vector<8x384xf32>
    %142 = arith.negf %141 : vector<8x384xf32>
    %143 = math.exp %142 : vector<8x384xf32>
    %cst_55 = arith.constant 1.000000e+00 : f32
    %144 = vector.broadcast %cst_55 : f32 to vector<8x384xf32>
    %145 = arith.addf %144, %143 : vector<8x384xf32>
    %146 = arith.divf %144, %145 : vector<8x384xf32>
    %147 = vector.extract_strided_slice %140 {offsets = [0, 384], sizes = [8, 128], strides = [1, 1]} : vector<8x512xf32> to vector<8x128xf32>
    %148 = math.tanh %147 : vector<8x128xf32>
    %149 = vector.extract_strided_slice %146 {offsets = [0, 0], sizes = [8, 128], strides = [1, 1]} : vector<8x384xf32> to vector<8x128xf32>
    %150 = vector.extract_strided_slice %146 {offsets = [0, 128], sizes = [8, 128], strides = [1, 1]} : vector<8x384xf32> to vector<8x128xf32>
    %151 = vector.extract_strided_slice %146 {offsets = [0, 256], sizes = [8, 128], strides = [1, 1]} : vector<8x384xf32> to vector<8x128xf32>
    %152 = arith.mulf %150, %94 : vector<8x128xf32>
    %153 = arith.mulf %149, %148 : vector<8x128xf32>
    %154 = arith.addf %152, %153 : vector<8x128xf32>
    %155 = math.tanh %154 : vector<8x128xf32>
    %156 = arith.mulf %151, %155 : vector<8x128xf32>
    %157 = arith.addi %22, %133 : i32
    %158 = vector.broadcast %157 : i32 to vector<8x1xi32>
    %159 = arith.cmpi slt, %158, %17 : vector<8x1xi32>
    %160 = vector.shape_cast %159 : vector<8x1xi1> to vector<8x1xi1>
    %161 = vector.broadcast %160 : vector<8x1xi1> to vector<8x128xi1>
    %162 = arith.select %161, %156, %91 : vector<8x128xi1>, vector<8x128xf32>
    %163 = vector.shape_cast %159 : vector<8x1xi1> to vector<8x1xi1>
    %164 = vector.broadcast %163 : vector<8x1xi1> to vector<8x128xi1>
    %165 = arith.select %164, %154, %94 : vector<8x128xi1>, vector<8x128xf32>
    %166 = vector.shape_cast %162 : vector<8x128xf32> to vector<1x8x128xf32>
    %167 = arith.index_cast %133 : i32 to index
    %c0_56 = arith.constant 0 : index
    %c0_57 = arith.constant 0 : index
    %168 = vector.load %arg15[%167, %c0_56, %c0_57] : memref<4x8x128xf32, #tpu.memory_space<vmem>>, vector<1x8x128xf32>
    tpu.vector_store %arg15[%167, %c0_56, %c0_57], %166 {strides = array<i32>} : memref<4x8x128xf32, #tpu.memory_space<vmem>>, vector<1x8x128xf32>,
    %c2_i32 = arith.constant 2 : i32
    %c8_i32_58 = arith.constant 8 : i32
    %169 = arith.muli %c2_i32, %c8_i32_58 : i32
    %170 = tpu.assume_multiple %169, 8 : i32
    %171 = arith.index_cast %170 : i32 to index
    %c0_59 = arith.constant 0 : index
    %172 = vector.load %arg12[%171, %c0_59] : memref<32x512xf32, #tpu.memory_space<vmem>>, vector<8x512xf32>
    %173 = arith.truncf %126 : vector<8x128xf32> to vector<8x128xbf16>
    %cst_60 = arith.constant dense<0.000000e+00> : vector<8x512xf32>
    %174 = tpu.matmul %173, %18, %cst_60 {dimension_numbers = #tpu.dot_dimension_numbers<[1], [0], [0], [1], [0, 0, 1, 1], [], []>} : vector<8x128xbf16>, vector<128x512xbf16>, vector<8x512xf32> -> vector<8x512xf32>
    %175 = arith.addf %172, %174 : vector<8x512xf32>
    %176 = vector.extract_strided_slice %175 {offsets = [0, 0], sizes = [8, 384], strides = [1, 1]} : vector<8x512xf32> to vector<8x384xf32>
    %177 = arith.negf %176 : vector<8x384xf32>
    %178 = math.exp %177 : vector<8x384xf32>
    %cst_61 = arith.constant 1.000000e+00 : f32
    %179 = vector.broadcast %cst_61 : f32 to vector<8x384xf32>
    %180 = arith.addf %179, %178 : vector<8x384xf32>
    %181 = arith.divf %179, %180 : vector<8x384xf32>
    %182 = vector.extract_strided_slice %175 {offsets = [0, 384], sizes = [8, 128], strides = [1, 1]} : vector<8x512xf32> to vector<8x128xf32>
    %183 = math.tanh %182 : vector<8x128xf32>
    %184 = vector.extract_strided_slice %181 {offsets = [0, 0], sizes = [8, 128], strides = [1, 1]} : vector<8x384xf32> to vector<8x128xf32>
    %185 = vector.extract_strided_slice %181 {offsets = [0, 128], sizes = [8, 128], strides = [1, 1]} : vector<8x384xf32> to vector<8x128xf32>
    %186 = vector.extract_strided_slice %181 {offsets = [0, 256], sizes = [8, 128], strides = [1, 1]} : vector<8x384xf32> to vector<8x128xf32>
    %187 = arith.mulf %185, %129 : vector<8x128xf32>
    %188 = arith.mulf %184, %183 : vector<8x128xf32>
    %189 = arith.addf %187, %188 : vector<8x128xf32>
    %190 = math.tanh %189 : vector<8x128xf32>
    %191 = arith.mulf %186, %190 : vector<8x128xf32>
    %192 = arith.addi %20, %c2_i32 : i32
    %193 = vector.broadcast %192 : i32 to vector<8x1xi32>
    %194 = arith.cmpi slt, %193, %17 : vector<8x1xi32>
    %195 = vector.shape_cast %194 : vector<8x1xi1> to vector<8x1xi1>
    %196 = vector.broadcast %195 : vector<8x1xi1> to vector<8x128xi1>
    %197 = arith.select %196, %191, %126 : vector<8x128xi1>, vector<8x128xf32>
    %198 = vector.shape_cast %194 : vector<8x1xi1> to vector<8x1xi1>
    %199 = vector.broadcast %198 : vector<8x1xi1> to vector<8x128xi1>
    %200 = arith.select %199, %189, %129 : vector<8x128xi1>, vector<8x128xf32>
    %201 = vector.shape_cast %197 : vector<8x128xf32> to vector<1x8x128xf32>
    %202 = arith.index_cast %c2_i32 : i32 to index
    %c0_62 = arith.constant 0 : index
    %c0_63 = arith.constant 0 : index
    %203 = vector.load %arg14[%202, %c0_62, %c0_63] : memref<4x8x128xf32, #tpu.memory_space<vmem>>, vector<1x8x128xf32>
    tpu.vector_store %arg14[%202, %c0_62, %c0_63], %201 {strides = array<i32>} : memref<4x8x128xf32, #tpu.memory_space<vmem>>, vector<1x8x128xf32>,
    %c3_i32_64 = arith.constant 3 : i32
    %204 = arith.subi %c3_i32_64, %c2_i32 : i32
    %c8_i32_65 = arith.constant 8 : i32
    %205 = arith.muli %204, %c8_i32_65 : i32
    %206 = tpu.assume_multiple %205, 8 : i32
    %207 = arith.index_cast %206 : i32 to index
    %c0_66 = arith.constant 0 : index
    %208 = vector.load %arg13[%207, %c0_66] : memref<32x512xf32, #tpu.memory_space<vmem>>, vector<8x512xf32>
    %209 = arith.truncf %162 : vector<8x128xf32> to vector<8x128xbf16>
    %cst_67 = arith.constant dense<0.000000e+00> : vector<8x512xf32>
    %210 = tpu.matmul %209, %19, %cst_67 {dimension_numbers = #tpu.dot_dimension_numbers<[1], [0], [0], [1], [0, 0, 1, 1], [], []>} : vector<8x128xbf16>, vector<128x512xbf16>, vector<8x512xf32> -> vector<8x512xf32>
    %211 = arith.addf %208, %210 : vector<8x512xf32>
    %212 = vector.extract_strided_slice %211 {offsets = [0, 0], sizes = [8, 384], strides = [1, 1]} : vector<8x512xf32> to vector<8x384xf32>
    %213 = arith.negf %212 : vector<8x384xf32>
    %214 = math.exp %213 : vector<8x384xf32>
    %cst_68 = arith.constant 1.000000e+00 : f32
    %215 = vector.broadcast %cst_68 : f32 to vector<8x384xf32>
    %216 = arith.addf %215, %214 : vector<8x384xf32>
    %217 = arith.divf %215, %216 : vector<8x384xf32>
    %218 = vector.extract_strided_slice %211 {offsets = [0, 384], sizes = [8, 128], strides = [1, 1]} : vector<8x512xf32> to vector<8x128xf32>
    %219 = math.tanh %218 : vector<8x128xf32>
    %220 = vector.extract_strided_slice %217 {offsets = [0, 0], sizes = [8, 128], strides = [1, 1]} : vector<8x384xf32> to vector<8x128xf32>
    %221 = vector.extract_strided_slice %217 {offsets = [0, 128], sizes = [8, 128], strides = [1, 1]} : vector<8x384xf32> to vector<8x128xf32>
    %222 = vector.extract_strided_slice %217 {offsets = [0, 256], sizes = [8, 128], strides = [1, 1]} : vector<8x384xf32> to vector<8x128xf32>
    %223 = arith.mulf %221, %165 : vector<8x128xf32>
    %224 = arith.mulf %220, %219 : vector<8x128xf32>
    %225 = arith.addf %223, %224 : vector<8x128xf32>
    %226 = math.tanh %225 : vector<8x128xf32>
    %227 = arith.mulf %222, %226 : vector<8x128xf32>
    %228 = arith.addi %22, %204 : i32
    %229 = vector.broadcast %228 : i32 to vector<8x1xi32>
    %230 = arith.cmpi slt, %229, %17 : vector<8x1xi32>
    %231 = vector.shape_cast %230 : vector<8x1xi1> to vector<8x1xi1>
    %232 = vector.broadcast %231 : vector<8x1xi1> to vector<8x128xi1>
    %233 = arith.select %232, %227, %162 : vector<8x128xi1>, vector<8x128xf32>
    %234 = vector.shape_cast %230 : vector<8x1xi1> to vector<8x1xi1>
    %235 = vector.broadcast %234 : vector<8x1xi1> to vector<8x128xi1>
    %236 = arith.select %235, %225, %165 : vector<8x128xi1>, vector<8x128xf32>
    %237 = vector.shape_cast %233 : vector<8x128xf32> to vector<1x8x128xf32>
    %238 = arith.index_cast %204 : i32 to index
    %c0_69 = arith.constant 0 : index
    %c0_70 = arith.constant 0 : index
    %239 = vector.load %arg15[%238, %c0_69, %c0_70] : memref<4x8x128xf32, #tpu.memory_space<vmem>>, vector<1x8x128xf32>
    tpu.vector_store %arg15[%238, %c0_69, %c0_70], %237 {strides = array<i32>} : memref<4x8x128xf32, #tpu.memory_space<vmem>>, vector<1x8x128xf32>,
    %c3_i32_71 = arith.constant 3 : i32
    %c8_i32_72 = arith.constant 8 : i32
    %240 = arith.muli %c3_i32_71, %c8_i32_72 : i32
    %241 = tpu.assume_multiple %240, 8 : i32
    %242 = arith.index_cast %241 : i32 to index
    %c0_73 = arith.constant 0 : index
    %243 = vector.load %arg12[%242, %c0_73] : memref<32x512xf32, #tpu.memory_space<vmem>>, vector<8x512xf32>
    %244 = arith.truncf %197 : vector<8x128xf32> to vector<8x128xbf16>
    %cst_74 = arith.constant dense<0.000000e+00> : vector<8x512xf32>
    %245 = tpu.matmul %244, %18, %cst_74 {dimension_numbers = #tpu.dot_dimension_numbers<[1], [0], [0], [1], [0, 0, 1, 1], [], []>} : vector<8x128xbf16>, vector<128x512xbf16>, vector<8x512xf32> -> vector<8x512xf32>
    %246 = arith.addf %243, %245 : vector<8x512xf32>
    %247 = vector.extract_strided_slice %246 {offsets = [0, 0], sizes = [8, 384], strides = [1, 1]} : vector<8x512xf32> to vector<8x384xf32>
    %248 = arith.negf %247 : vector<8x384xf32>
    %249 = math.exp %248 : vector<8x384xf32>
    %cst_75 = arith.constant 1.000000e+00 : f32
    %250 = vector.broadcast %cst_75 : f32 to vector<8x384xf32>
    %251 = arith.addf %250, %249 : vector<8x384xf32>
    %252 = arith.divf %250, %251 : vector<8x384xf32>
    %253 = vector.extract_strided_slice %246 {offsets = [0, 384], sizes = [8, 128], strides = [1, 1]} : vector<8x512xf32> to vector<8x128xf32>
    %254 = math.tanh %253 : vector<8x128xf32>
    %255 = vector.extract_strided_slice %252 {offsets = [0, 0], sizes = [8, 128], strides = [1, 1]} : vector<8x384xf32> to vector<8x128xf32>
    %256 = vector.extract_strided_slice %252 {offsets = [0, 128], sizes = [8, 128], strides = [1, 1]} : vector<8x384xf32> to vector<8x128xf32>
    %257 = vector.extract_strided_slice %252 {offsets = [0, 256], sizes = [8, 128], strides = [1, 1]} : vector<8x384xf32> to vector<8x128xf32>
    %258 = arith.mulf %256, %200 : vector<8x128xf32>
    %259 = arith.mulf %255, %254 : vector<8x128xf32>
    %260 = arith.addf %258, %259 : vector<8x128xf32>
    %261 = math.tanh %260 : vector<8x128xf32>
    %262 = arith.mulf %257, %261 : vector<8x128xf32>
    %263 = arith.addi %20, %c3_i32_71 : i32
    %264 = vector.broadcast %263 : i32 to vector<8x1xi32>
    %265 = arith.cmpi slt, %264, %17 : vector<8x1xi32>
    %266 = vector.shape_cast %265 : vector<8x1xi1> to vector<8x1xi1>
    %267 = vector.broadcast %266 : vector<8x1xi1> to vector<8x128xi1>
    %268 = arith.select %267, %262, %197 : vector<8x128xi1>, vector<8x128xf32>
    %269 = vector.shape_cast %265 : vector<8x1xi1> to vector<8x1xi1>
    %270 = vector.broadcast %269 : vector<8x1xi1> to vector<8x128xi1>
    %271 = arith.select %270, %260, %200 : vector<8x128xi1>, vector<8x128xf32>
    %272 = vector.shape_cast %268 : vector<8x128xf32> to vector<1x8x128xf32>
    %273 = arith.index_cast %c3_i32_71 : i32 to index
    %c0_76 = arith.constant 0 : index
    %c0_77 = arith.constant 0 : index
    %274 = vector.load %arg14[%273, %c0_76, %c0_77] : memref<4x8x128xf32, #tpu.memory_space<vmem>>, vector<1x8x128xf32>
    tpu.vector_store %arg14[%273, %c0_76, %c0_77], %272 {strides = array<i32>} : memref<4x8x128xf32, #tpu.memory_space<vmem>>, vector<1x8x128xf32>,
    %c3_i32_78 = arith.constant 3 : i32
    %275 = arith.subi %c3_i32_78, %c3_i32_71 : i32
    %c8_i32_79 = arith.constant 8 : i32
    %276 = arith.muli %275, %c8_i32_79 : i32
    %277 = tpu.assume_multiple %276, 8 : i32
    %278 = arith.index_cast %277 : i32 to index
    %c0_80 = arith.constant 0 : index
    %279 = vector.load %arg13[%278, %c0_80] : memref<32x512xf32, #tpu.memory_space<vmem>>, vector<8x512xf32>
    %280 = arith.truncf %233 : vector<8x128xf32> to vector<8x128xbf16>
    %cst_81 = arith.constant dense<0.000000e+00> : vector<8x512xf32>
    %281 = tpu.matmul %280, %19, %cst_81 {dimension_numbers = #tpu.dot_dimension_numbers<[1], [0], [0], [1], [0, 0, 1, 1], [], []>} : vector<8x128xbf16>, vector<128x512xbf16>, vector<8x512xf32> -> vector<8x512xf32>
    %282 = arith.addf %279, %281 : vector<8x512xf32>
    %283 = vector.extract_strided_slice %282 {offsets = [0, 0], sizes = [8, 384], strides = [1, 1]} : vector<8x512xf32> to vector<8x384xf32>
    %284 = arith.negf %283 : vector<8x384xf32>
    %285 = math.exp %284 : vector<8x384xf32>
    %cst_82 = arith.constant 1.000000e+00 : f32
    %286 = vector.broadcast %cst_82 : f32 to vector<8x384xf32>
    %287 = arith.addf %286, %285 : vector<8x384xf32>
    %288 = arith.divf %286, %287 : vector<8x384xf32>
    %289 = vector.extract_strided_slice %282 {offsets = [0, 384], sizes = [8, 128], strides = [1, 1]} : vector<8x512xf32> to vector<8x128xf32>
    %290 = math.tanh %289 : vector<8x128xf32>
    %291 = vector.extract_strided_slice %288 {offsets = [0, 0], sizes = [8, 128], strides = [1, 1]} : vector<8x384xf32> to vector<8x128xf32>
    %292 = vector.extract_strided_slice %288 {offsets = [0, 128], sizes = [8, 128], strides = [1, 1]} : vector<8x384xf32> to vector<8x128xf32>
    %293 = vector.extract_strided_slice %288 {offsets = [0, 256], sizes = [8, 128], strides = [1, 1]} : vector<8x384xf32> to vector<8x128xf32>
    %294 = arith.mulf %292, %236 : vector<8x128xf32>
    %295 = arith.mulf %291, %290 : vector<8x128xf32>
    %296 = arith.addf %294, %295 : vector<8x128xf32>
    %297 = math.tanh %296 : vector<8x128xf32>
    %298 = arith.mulf %293, %297 : vector<8x128xf32>
    %299 = arith.addi %22, %275 : i32
    %300 = vector.broadcast %299 : i32 to vector<8x1xi32>
    %301 = arith.cmpi slt, %300, %17 : vector<8x1xi32>
    %302 = vector.shape_cast %301 : vector<8x1xi1> to vector<8x1xi1>
    %303 = vector.broadcast %302 : vector<8x1xi1> to vector<8x128xi1>
    %304 = arith.select %303, %298, %233 : vector<8x128xi1>, vector<8x128xf32>
    %305 = vector.shape_cast %301 : vector<8x1xi1> to vector<8x1xi1>
    %306 = vector.broadcast %305 : vector<8x1xi1> to vector<8x128xi1>
    %307 = arith.select %306, %296, %236 : vector<8x128xi1>, vector<8x128xf32>
    %308 = vector.shape_cast %304 : vector<8x128xf32> to vector<1x8x128xf32>
    %309 = arith.index_cast %275 : i32 to index
    %c0_83 = arith.constant 0 : index
    %c0_84 = arith.constant 0 : index
    %310 = vector.load %arg15[%309, %c0_83, %c0_84] : memref<4x8x128xf32, #tpu.memory_space<vmem>>, vector<1x8x128xf32>
    tpu.vector_store %arg15[%309, %c0_83, %c0_84], %308 {strides = array<i32>} : memref<4x8x128xf32, #tpu.memory_space<vmem>>, vector<1x8x128xf32>,
    %c4_i32_85 = arith.constant 4 : i32
    %c0_86 = arith.constant 0 : index
    %c0_87 = arith.constant 0 : index
    %c0_88 = arith.constant 0 : index
    %311 = vector.load %arg14[%c0_86, %c0_87, %c0_88] : memref<4x8x128xf32, #tpu.memory_space<vmem>>, vector<4x8x128xf32>
    %312 = arith.truncf %311 : vector<4x8x128xf32> to vector<4x8x128xbf16>
    %c0_89 = arith.constant 0 : index
    %c0_90 = arith.constant 0 : index
    %c0_91 = arith.constant 0 : index
    %313 = vector.load %arg10[%c0_89, %c0_90, %c0_91] : memref<4x8x128xbf16, #tpu.memory_space<vmem>>, vector<4x8x128xbf16>
    tpu.vector_store %arg10[%c0_89, %c0_90, %c0_91], %312 {strides = array<i32>} : memref<4x8x128xbf16, #tpu.memory_space<vmem>>, vector<4x8x128xbf16>,
    %c0_92 = arith.constant 0 : index
    %c0_93 = arith.constant 0 : index
    %c0_94 = arith.constant 0 : index
    %314 = vector.load %arg15[%c0_92, %c0_93, %c0_94] : memref<4x8x128xf32, #tpu.memory_space<vmem>>, vector<4x8x128xf32>
    %315 = arith.truncf %314 : vector<4x8x128xf32> to vector<4x8x128xbf16>
    %c0_95 = arith.constant 0 : index
    %c0_96 = arith.constant 0 : index
    %c0_97 = arith.constant 0 : index
    %316 = vector.load %arg11[%c0_95, %c0_96, %c0_97] : memref<4x8x128xbf16, #tpu.memory_space<vmem>>, vector<4x8x128xbf16>
    tpu.vector_store %arg11[%c0_95, %c0_96, %c0_97], %315 {strides = array<i32>} : memref<4x8x128xbf16, #tpu.memory_space<vmem>>, vector<4x8x128xbf16>,
    %c0_98 = arith.constant 0 : index
    %c0_99 = arith.constant 0 : index
    %317 = vector.load %arg16[%c0_98, %c0_99] : memref<8x128xf32, #tpu.memory_space<vmem>>, vector<8x128xf32>
    tpu.vector_store %arg16[%c0_98, %c0_99], %268 {strides = array<i32>} : memref<8x128xf32, #tpu.memory_space<vmem>>, vector<8x128xf32>,
    %c0_100 = arith.constant 0 : index
    %c0_101 = arith.constant 0 : index
    %318 = vector.load %arg17[%c0_100, %c0_101] : memref<8x128xf32, #tpu.memory_space<vmem>>, vector<8x128xf32>
    tpu.vector_store %arg17[%c0_100, %c0_101], %271 {strides = array<i32>} : memref<8x128xf32, #tpu.memory_space<vmem>>, vector<8x128xf32>,
    %c0_102 = arith.constant 0 : index
    %c0_103 = arith.constant 0 : index
    %319 = vector.load %arg18[%c0_102, %c0_103] : memref<8x128xf32, #tpu.memory_space<vmem>>, vector<8x128xf32>
    tpu.vector_store %arg18[%c0_102, %c0_103], %304 {strides = array<i32>} : memref<8x128xf32, #tpu.memory_space<vmem>>, vector<8x128xf32>,
    %c0_104 = arith.constant 0 : index
    %c0_105 = arith.constant 0 : index
    %320 = vector.load %arg19[%c0_104, %c0_105] : memref<8x128xf32, #tpu.memory_space<vmem>>, vector<8x128xf32>
    tpu.vector_store %arg19[%c0_104, %c0_105], %307 {strides = array<i32>} : memref<8x128xf32, #tpu.memory_space<vmem>>, vector<8x128xf32>,
    return
  }
  func.func @transform_0(%arg0: i32) -> (i32, i32) {
    %c0_i32 = arith.constant 0 : i32
    %c0_i32_0 = arith.constant 0 : i32
    %c0_i32_1 = arith.constant 0 : i32
    return %c0_i32, %c0_i32_0 : i32, i32
  }
  func.func @transform_1(%arg0: i32) -> (i32, i32) {
    %c0_i32 = arith.constant 0 : i32
    %c0_i32_0 = arith.constant 0 : i32
    return %arg0, %c0_i32 : i32, i32
  }
  func.func @transform_2(%arg0: i32) -> (i32, i32) {
    %c1_i32 = arith.constant 1 : i32
    %0 = arith.subi %c1_i32, %arg0 : i32
    %c0_i32 = arith.constant 0 : i32
    %c0_i32_0 = arith.constant 0 : i32
    return %0, %c0_i32 : i32, i32
  }
  func.func @transform_3(%arg0: i32) -> (i32, i32) {
    %c0_i32 = arith.constant 0 : i32
    %c0_i32_0 = arith.constant 0 : i32
    %c0_i32_1 = arith.constant 0 : i32
    return %c0_i32, %c0_i32_0 : i32, i32
  }
  func.func @transform_4(%arg0: i32) -> (i32, i32) {
    %c0_i32 = arith.constant 0 : i32
    %c0_i32_0 = arith.constant 0 : i32
    %c0_i32_1 = arith.constant 0 : i32
    return %c0_i32, %c0_i32_0 : i32, i32
  }
  func.func @transform_5(%arg0: i32) -> (i32, i32) {
    %c0_i32 = arith.constant 0 : i32
    %c0_i32_0 = arith.constant 0 : i32
    %c0_i32_1 = arith.constant 0 : i32
    return %c0_i32, %c0_i32_0 : i32, i32
  }
  func.func @transform_6(%arg0: i32) -> (i32, i32) {
    %c0_i32 = arith.constant 0 : i32
    %c0_i32_0 = arith.constant 0 : i32
    %c0_i32_1 = arith.constant 0 : i32
    return %c0_i32, %c0_i32_0 : i32, i32
  }
  func.func @transform_7(%arg0: i32) -> (i32, i32) {
    %c0_i32 = arith.constant 0 : i32
    %c0_i32_0 = arith.constant 0 : i32
    %c0_i32_1 = arith.constant 0 : i32
    return %c0_i32, %c0_i32_0 : i32, i32
  }
  func.func @transform_8(%arg0: i32) -> (i32, i32) {
    %c0_i32 = arith.constant 0 : i32
    %c0_i32_0 = arith.constant 0 : i32
    %c0_i32_1 = arith.constant 0 : i32
    return %c0_i32, %c0_i32_0 : i32, i32
  }
  func.func @transform_9(%arg0: i32) -> (i32, i32, i32) {
    %c0_i32 = arith.constant 0 : i32
    %c0_i32_0 = arith.constant 0 : i32
    %c0_i32_1 = arith.constant 0 : i32
    return %arg0, %c0_i32, %c0_i32_0 : i32, i32, i32
  }
  func.func @transform_10(%arg0: i32) -> (i32, i32, i32) {
    %c1_i32 = arith.constant 1 : i32
    %0 = arith.subi %c1_i32, %arg0 : i32
    %c0_i32 = arith.constant 0 : i32
    %c0_i32_0 = arith.constant 0 : i32
    %c0_i32_1 = arith.constant 0 : i32
    return %0, %c0_i32, %c0_i32_0 : i32, i32, i32
  }
}

</mosaic_0001>

<bundles_post_ra>
// kernel: lstm_sentiment_forward.2
= control target key start
LH: loop header
LB: loop body
LE: loop exit
PB: predicated region body
PF: predicated region fallthrough
CT: control target
= control target key end

     0   :  { %s3348_s13 = smov 0   ;;  %s4568_s0 = inlined_call_operand.vmem [shape: s32[8,1], index: 0, kind: input, shape index: {}]   ;;  %s4569_s1 = inlined_call_operand.vmem [shape: bf16[64,128], index: 1, kind: input, shape index: {}, may-alias: {1,2}]   ;;  %s4570_s2 = inlined_call_operand.vmem [shape: bf16[64,128], index: 2, kind: input, shape index: {}, may-alias: {1,2}]   ;;  %s4571_s3 = inlined_call_operand.vmem [shape: bf16[128,512], index: 3, kind: input, shape index: {}]   ;;  %s4572_s4 = inlined_call_operand.vmem [shape: bf16[128,512], index: 4, kind: input, shape index: {}]   ;;  %s4573_s5 = inlined_call_operand.vmem [shape: bf16[128,512], index: 5, kind: input, shape index: {}]   ;;  %s4574_s6 = inlined_call_operand.vmem [shape: bf16[128,512], index: 6, kind: input, shape index: {}]   ;;  %s4575_s7 = inlined_call_operand.vmem [shape: f32[1,512], index: 7, kind: input, shape index: {}]   ;;  %s4576_s8 = inlined_call_operand.vmem [shape: f32[1,512], index: 8, kind: input, shape index: {}]   ;;  %s4577_s9 = inlined_call_operand.vmem [shape: bf16[8,8,128], index: 9, kind: output, shape index: {0}]   ;;  %s4578_s10 = inlined_call_operand.vmem [shape: bf16[8,8,128], index: 10, kind: output, shape index: {1}]  }
   0x1 LB: > { %s2687_s14 = sadd.s32 4294967295, %s3289_s13   ;;  %p2691_p0 = scmp.ge.s32.totalorder %s3289_s13, 1  ;;  %s3289_s13 = sphi %s3348_s13, %s21_s13  }
   0x2   : > { %p333_p1 = scmp.lt.s32.totalorder %s3289_s13, 3 }
   0x4   : > { %p334_p2 = pnand %p2691_p0, %p333_p1 }
   0x6   : > { %337 = sbr.rel (%p334_p2) target bundleno = 1201 (0x4b1), region = 56 }
   0xd   : > { %s3356_s15 = sshll.u32 %s2687_s14, 2  ;;  %s389_s16 = ssub.s32 1, %s2687_s14 }
   0xe   : > { %p384_p3 = scmp.lt.s32.totalorder %s3356_s15, 7  ;;  %s3359_s17 = sshll.u32 %s389_s16, 2 }
   0xf   : > { %p391_p4 = scmp.lt.s32.totalorder %s3359_s17, 7  ;;  %p2700_p5 = scmp.ne.s32.totalorder %s2687_s14, 0 }
  0x10   : > { %s385_s18 = scalar_select %p384_p3, %s3356_s15, 7 }
  0x11   : > { %s392_s19 = scalar_select %p391_p4, %s3359_s17, 7 }
  0x12   : > { %s2693_s20 = sshll.u32 %s385_s18, 2  ;;  %415 = sbr.rel (%p2700_p5) target bundleno = 25 (0x19), region = 60  ;;  %v3291_v0 = vmov (!%p2700_p5), 0.0  }
  0x13   : > { %s3367_s23 = scalar_lea.vmem %s4569_s1, %s2693_s20  ;;  %s2695_s24 = sshll.u32 %s392_s19, 2  ;;  %416 = vst [vmem:[#allocation6] sm:$0xff] (!%p2700_p5), %v3291_v0  ;;  %417 = vst [vmem:[#allocation7] sm:$0xff] (!%p2700_p5), %v3291_v0 }
  0x14   : > { %s3372_s27 = scalar_lea.vmem %s4570_s2, %s2695_s24  ;;  %s3377_s30 = scalar_lea.vmem %s4577_s9, %s2693_s20  ;;  %418 = vst [vmem:[#allocation8] sm:$0xff] (!%p2700_p5), %v3291_v0  ;;  %419 = vst [vmem:[#allocation9] sm:$0xff] (!%p2700_p5), %v3291_v0 }
  0x15   : > { %s3382_s16 = scalar_lea.vmem %s4578_s10, %s2695_s24 }
  0x19 PF: > { %v2895_v1 = vld [vmem:[%s4571_s3 + $0x4] ss:$16 sps:$4 sm:$0xff]   ;;  %v2897_v2 = vld [vmem:[%s4571_s3 + $0xc] ss:$16 sps:$4 sm:$0xff]   ;;  %v4579_v3 = vmov 0   ;;  %s1762_s21 = sadd.s32 3, %s3359_s17 }
  0x1a   : > { %682 = vmatprep.mubr.bf16.mxu0 %v4579_v3  ;;  %735 = vmatprep.mubr.bf16.mxu1 %v4579_v3  ;;  %v2899_v4 = vld [vmem:[%s4571_s3] ss:$16 sps:$4 sm:$0xff]   ;;  %v2900_v5 = vld [vmem:[%s4571_s3 + $0x8] ss:$16 sps:$4 sm:$0xff]   ;;  %v2901_v6 = vld [vmem:[%s4571_s3 + $0x24] ss:$16 sps:$4 sm:$0xff]  }
  0x1b   : > { %650 = vmatprep.subr.bf16.mxu0 %v2895_v1  ;;  %2893 = vset.pattern.permute.xlu0 %v4579_v3  ;;  %v2903_v7 = vld [vmem:[%s4571_s3 + $0x2c] ss:$16 sps:$4 sm:$0xff]   ;;  %v2905_v8 = vld [vmem:[%s4571_s3 + $0x20] ss:$16 sps:$4 sm:$0xff]   ;;  %v2906_v9 = vld [vmem:[%s4571_s3 + $0x28] ss:$16 sps:$4 sm:$0xff]  }
  0x1c   : > { %703 = vmatprep.subr.bf16.mxu1 %v2897_v2  ;;  %2894 = vset.pattern.permute.xlu1 %v4579_v3  ;;  %v2907_v10 = vld [vmem:[%s4571_s3 + $0x44] ss:$16 sps:$4 sm:$0xff]   ;;  %v2909_v11 = vld [vmem:[%s4571_s3 + $0x4c] ss:$16 sps:$4 sm:$0xff]   ;;  %v2911_v12 = vld [vmem:[%s4571_s3 + $0x40] ss:$16 sps:$4 sm:$0xff]  }
  0x1d   : > { %651 = vmatpush1.bf16.msra.mxu0 %v2899_v4  ;;  %704 = vmatpush1.bf16.msra.mxu1 %v2900_v5  ;;  %v2912_v13 = vld [vmem:[%s4571_s3 + $0x48] ss:$16 sps:$4 sm:$0xff]   ;;  %v2913_v14 = vld [vmem:[%s4571_s3 + $0x64] ss:$16 sps:$4 sm:$0xff]   ;;  %v2915_v15 = vld [vmem:[%s4571_s3 + $0x6c] ss:$16 sps:$4 sm:$0xff]  }
  0x1e   : > { %652 = vmatprep.subr.bf16.mxu0 %v2901_v6  ;;  %705 = vmatprep.subr.bf16.mxu1 %v2903_v7  ;;  %v2917_v16 = vld [vmem:[%s4571_s3 + $0x60] ss:$16 sps:$4 sm:$0xff]   ;;  %v2918_v17 = vld [vmem:[%s4571_s3 + $0x68] ss:$16 sps:$4 sm:$0xff]   ;;  %v2919_v18 = vld [vmem:[%s4571_s3 + $0x84] ss:$16 sps:$4 sm:$0xff]  }
  0x1f   : > { %v2921_v19 = vld [vmem:[%s4571_s3 + $0x8c] ss:$16 sps:$4 sm:$0xff]   ;;  %v2923_v20 = vld [vmem:[%s4571_s3 + $0x80] ss:$16 sps:$4 sm:$0xff]   ;;  %v2924_v21 = vld [vmem:[%s4571_s3 + $0x88] ss:$16 sps:$4 sm:$0xff]  }
  0x20   : > { %v2925_v22 = vld [vmem:[%s4571_s3 + $0xa4] ss:$16 sps:$4 sm:$0xff]   ;;  %v2927_v23 = vld [vmem:[%s4571_s3 + $0xac] ss:$16 sps:$4 sm:$0xff]   ;;  %v2929_v24 = vld [vmem:[%s4571_s3 + $0xa0] ss:$16 sps:$4 sm:$0xff]  }
  0x21   : > { %653 = vmatpush1.bf16.msra.mxu0 %v2905_v8  ;;  %706 = vmatpush1.bf16.msra.mxu1 %v2906_v9  ;;  %v2930_v25 = vld [vmem:[%s4571_s3 + $0xa8] ss:$16 sps:$4 sm:$0xff]   ;;  %v2931_v26 = vld [vmem:[%s4571_s3 + $0xc4] ss:$16 sps:$4 sm:$0xff]   ;;  %v2933_v27 = vld [vmem:[%s4571_s3 + $0xcc] ss:$16 sps:$4 sm:$0xff]  }
  0x22   : > { %654 = vmatprep.subr.bf16.mxu0 %v2907_v10  ;;  %707 = vmatprep.subr.bf16.mxu1 %v2909_v11  ;;  %v2935_v28 = vld [vmem:[%s4571_s3 + $0xc0] ss:$16 sps:$4 sm:$0xff]   ;;  %v2936_v29 = vld [vmem:[%s4571_s3 + $0xc8] ss:$16 sps:$4 sm:$0xff]   ;;  %v2937_v30 = vld [vmem:[%s4571_s3 + $0xe4] ss:$16 sps:$4 sm:$0xff]  }
  0x23   : > { %v2939_v31 = vld [vmem:[%s4571_s3 + $0xec] ss:$16 sps:$4 sm:$0xff]   ;;  %v2941_v32 = vld [vmem:[%s4571_s3 + $0xe0] ss:$16 sps:$4 sm:$0xff]   ;;  %v2942_v33 = vld [vmem:[%s4571_s3 + $0xe8] ss:$16 sps:$4 sm:$0xff]  }
  0x24   : > { %v2946_v34 = vld [vmem:[%s4572_s4 + $0x4] ss:$16 sps:$4 sm:$0xff]   ;;  %v2949_v35 = vld [vmem:[%s4572_s4 + $0xc] ss:$16 sps:$4 sm:$0xff]   ;;  %v2944_v37 = vld [vmem:[%s4572_s4] ss:$16 sps:$4 sm:$0xff]  }
  0x25   : > { %655 = vmatpush1.bf16.msra.mxu0 %v2911_v12  ;;  %708 = vmatpush1.bf16.msra.mxu1 %v2912_v13  ;;  %v2943_v36 = vld [vmem:[%s3367_s23] sm:$0xff]   ;;  %v2947_v38 = vld [vmem:[%s4572_s4 + $0x8] ss:$16 sps:$4 sm:$0xff]   ;;  %v2955_v40 = vld [vmem:[%s4572_s4 + $0x2c] ss:$16 sps:$4 sm:$0xff]   ;;  %s2151_s12 = sadd.s32 2, %s3356_s15 }
  0x26   : > { %656 = vmatprep.subr.bf16.mxu0 %v2913_v14  ;;  %709 = vmatprep.subr.bf16.mxu1 %v2915_v15  ;;  %v2952_v39 = vld [vmem:[%s4572_s4 + $0x24] ss:$16 sps:$4 sm:$0xff]   ;;  %v2950_v41 = vld [vmem:[%s4572_s4 + $0x20] ss:$16 sps:$4 sm:$0xff]   ;;  %v2953_v42 = vld [vmem:[%s4572_s4 + $0x28] ss:$16 sps:$4 sm:$0xff]  }
  0x27   : > { %v2958_v43 = vld [vmem:[%s4572_s4 + $0x44] ss:$16 sps:$4 sm:$0xff]   ;;  %v2961_v44 = vld [vmem:[%s4572_s4 + $0x4c] ss:$16 sps:$4 sm:$0xff]   ;;  %v2956_v46 = vld [vmem:[%s4572_s4 + $0x40] ss:$16 sps:$4 sm:$0xff]  }
  0x28   : > { %v2980_v45 = vld [vmem:[%s3367_s23 + $0x8] sm:$0xff]   ;;  %v2964_v48 = vld [vmem:[%s4572_s4 + $0x64] ss:$16 sps:$4 sm:$0xff]   ;;  %v2962_v50 = vld [vmem:[%s4572_s4 + $0x60] ss:$16 sps:$4 sm:$0xff]   ;;  %s1892_s26 = sadd.s32 1, %s3356_s15 }
  0x29   : > { %657 = vmatpush1.bf16.msra.mxu0 %v2917_v16  ;;  %710 = vmatpush1.bf16.msra.mxu1 %v2918_v17  ;;  %v2959_v47 = vld [vmem:[%s4572_s4 + $0x48] ss:$16 sps:$4 sm:$0xff]   ;;  %v2967_v49 = vld [vmem:[%s4572_s4 + $0x6c] ss:$16 sps:$4 sm:$0xff]   ;;  %v2970_v52 = vld [vmem:[%s4572_s4 + $0x84] ss:$16 sps:$4 sm:$0xff]  }
  0x2a   : > { %658 = vmatprep.subr.bf16.mxu0 %v2919_v18  ;;  %711 = vmatprep.subr.bf16.mxu1 %v2921_v19  ;;  %v2965_v51 = vld [vmem:[%s4572_s4 + $0x68] ss:$16 sps:$4 sm:$0xff]   ;;  %v2973_v53 = vld [vmem:[%s4572_s4 + $0x8c] ss:$16 sps:$4 sm:$0xff]   ;;  %v2968_v54 = vld [vmem:[%s4572_s4 + $0x80] ss:$16 sps:$4 sm:$0xff]  }
  0x2b   : > { %v2971_v55 = vld [vmem:[%s4572_s4 + $0x88] ss:$16 sps:$4 sm:$0xff]   ;;  %v2976_v56 = vld [vmem:[%s4572_s4 + $0xa4] ss:$16 sps:$4 sm:$0xff]   ;;  %v2979_v57 = vld [vmem:[%s4572_s4 + $0xac] ss:$16 sps:$4 sm:$0xff]  }
  0x2c   : > { %v2974_v58 = vld [vmem:[%s4572_s4 + $0xa0] ss:$16 sps:$4 sm:$0xff]   ;;  %v2977_v59 = vld [vmem:[%s4572_s4 + $0xa8] ss:$16 sps:$4 sm:$0xff]   ;;  %v2983_v60 = vld [vmem:[%s4572_s4 + $0xc4] ss:$16 sps:$4 sm:$0xff]  }
  0x2d   : > { %659 = vmatpush1.bf16.msra.mxu0 %v2923_v20  ;;  %712 = vmatpush1.bf16.msra.mxu1 %v2924_v21  ;;  %v2986_v61 = vld [vmem:[%s4572_s4 + $0xcc] ss:$16 sps:$4 sm:$0xff]   ;;  %v2981_v62 = vld [vmem:[%s4572_s4 + $0xc0] ss:$16 sps:$4 sm:$0xff]   ;;  %v2984_v63 = vld [vmem:[%s4572_s4 + $0xc8] ss:$16 sps:$4 sm:$0xff]  }
  0x2e   : > { %660 = vmatprep.subr.bf16.mxu0 %v2925_v22  ;;  %713 = vmatprep.subr.bf16.mxu1 %v2927_v23  ;;  %v2989_v0 = vld [vmem:[%s4572_s4 + $0xe4] ss:$16 sps:$4 sm:$0xff]   ;;  %v2992_v1 = vld [vmem:[%s4572_s4 + $0xec] ss:$16 sps:$4 sm:$0xff]   ;;  %v2987_v2 = vld [vmem:[%s4572_s4 + $0xe0] ss:$16 sps:$4 sm:$0xff]  }
  0x2f   : > { %v2990_v4 = vld [vmem:[%s4572_s4 + $0xe8] ss:$16 sps:$4 sm:$0xff]   ;;  %v3589_v5 = vld [vmem:[%s4573_s5 + $0x4] ss:$16 sps:$4 sm:$0xff]   ;;  %v3594_v6 = vld [vmem:[%s4573_s5 + $0xc] ss:$16 sps:$4 sm:$0xff]  }
  0x30   : > { %v2993_v7 = vld [vmem:[%s3372_s27] sm:$0xff]   ;;  %v3605_v9 = vld [vmem:[%s4573_s5 + $0x8] ss:$16 sps:$4 sm:$0xff]   ;;  %v3617_v11 = vld [vmem:[%s4573_s5 + $0x2c] ss:$16 sps:$4 sm:$0xff]   ;;  %s2022_s28 = sadd.s32 2, %s3359_s17 }
  0x31   : > { %661 = vmatpush1.bf16.msra.mxu0 %v2929_v24  ;;  %714 = vmatpush1.bf16.msra.mxu1 %v2930_v25  ;;  %v3600_v8 = vld [vmem:[%s4573_s5] ss:$16 sps:$4 sm:$0xff]   ;;  %v3610_v10 = vld [vmem:[%s4573_s5 + $0x24] ss:$16 sps:$4 sm:$0xff]   ;;  %4620 = vst [vmem:[#allocation10_spill] sm:$0xff] %v3617_v11  ;;  %v3030_v17 = vld [vmem:[%s3372_s27 + $0x8] sm:$0xff]  }
  0x32   : > { %662 = vmatprep.subr.bf16.mxu0 %v2931_v26  ;;  %715 = vmatprep.subr.bf16.mxu1 %v2933_v27  ;;  %v3622_v12 = vld [vmem:[%s4573_s5 + $0x20] ss:$16 sps:$4 sm:$0xff]   ;;  %v3627_v13 = vld [vmem:[%s4573_s5 + $0x28] ss:$16 sps:$4 sm:$0xff]   ;;  %v3634_v14 = vld [vmem:[%s4573_s5 + $0x44] ss:$16 sps:$4 sm:$0xff]  }
  0x33   : > { %4621 = vst [vmem:[#allocation11_spill] sm:$0xff] %v3622_v12  ;;  %4622 = vst [vmem:[#allocation12_spill] sm:$0xff] %v3627_v13  ;;  %v3641_v15 = vld [vmem:[%s4573_s5 + $0x4c] ss:$16 sps:$4 sm:$0xff]   ;;  %v3646_v16 = vld [vmem:[%s4573_s5 + $0x40] ss:$16 sps:$4 sm:$0xff]  }
  0x34   : > { %4623 = vst [vmem:[#allocation13_spill] sm:$0xff] %v3634_v14  ;;  %4624 = vst [vmem:[#allocation14_spill] sm:$0xff] %v3641_v15  ;;  %v3656_v18 = vld [vmem:[%s4573_s5 + $0x48] ss:$16 sps:$4 sm:$0xff]   ;;  %v3663_v19 = vld [vmem:[%s4573_s5 + $0x64] ss:$16 sps:$4 sm:$0xff]  }
  0x35   : > { %663 = vmatpush1.bf16.msra.mxu0 %v2935_v28  ;;  %716 = vmatpush1.bf16.msra.mxu1 %v2936_v29  ;;  %4625 = vst [vmem:[#allocation15_spill] sm:$0xff] %v3646_v16  ;;  %4626 = vst [vmem:[#allocation16_spill] sm:$0xff] %v3656_v18  ;;  %v3668_v20 = vld [vmem:[%s4573_s5 + $0x6c] ss:$16 sps:$4 sm:$0xff]   ;;  %v3673_v21 = vld [vmem:[%s4573_s5 + $0x60] ss:$16 sps:$4 sm:$0xff]  }
  0x36   : > { %664 = vmatprep.subr.bf16.mxu0 %v2937_v30  ;;  %717 = vmatprep.subr.bf16.mxu1 %v2939_v31  ;;  %4627 = vst [vmem:[#allocation17_spill] sm:$0xff] %v3663_v19  ;;  %4628 = vst [vmem:[#allocation18_spill] sm:$0xff] %v3668_v20  ;;  %v3678_v22 = vld [vmem:[%s4573_s5 + $0x68] ss:$16 sps:$4 sm:$0xff]   ;;  %v3685_v23 = vld [vmem:[%s4573_s5 + $0x84] ss:$16 sps:$4 sm:$0xff]  }
  0x37   : > { %4629 = vst [vmem:[#allocation19_spill] sm:$0xff] %v3673_v21  ;;  %4630 = vst [vmem:[#allocation20_spill] sm:$0xff] %v3678_v22  ;;  %v3692_v24 = vld [vmem:[%s4573_s5 + $0x8c] ss:$16 sps:$4 sm:$0xff]   ;;  %v3699_v25 = vld [vmem:[%s4573_s5 + $0x80] ss:$16 sps:$4 sm:$0xff]  }
  0x38   : > { %4631 = vst [vmem:[#allocation21_spill] sm:$0xff] %v3685_v23  ;;  %4632 = vst [vmem:[#allocation22_spill] sm:$0xff] %v3692_v24  ;;  %v3706_v26 = vld [vmem:[%s4573_s5 + $0x88] ss:$16 sps:$4 sm:$0xff]   ;;  %v3713_v27 = vld [vmem:[%s4573_s5 + $0xa4] ss:$16 sps:$4 sm:$0xff]  }
  0x39   : > { %665 = vmatpush1.bf16.msra.mxu0 %v2941_v32  ;;  %718 = vmatpush1.bf16.msra.mxu1 %v2942_v33  ;;  %4633 = vst [vmem:[#allocation23_spill] sm:$0xff] %v3699_v25  ;;  %4634 = vst [vmem:[#allocation24_spill] sm:$0xff] %v3706_v26  ;;  %v3718_v28 = vld [vmem:[%s4573_s5 + $0xac] ss:$16 sps:$4 sm:$0xff]   ;;  %v3723_v29 = vld [vmem:[%s4573_s5 + $0xa0] ss:$16 sps:$4 sm:$0xff]  }
  0x3a   : > { %1002 = vmatprep.subr.bf16.mxu0 %v2946_v34  ;;  %1055 = vmatprep.subr.bf16.mxu1 %v2949_v35  ;;  %4635 = vst [vmem:[#allocation25_spill] sm:$0xff] %v3713_v27  ;;  %4636 = vst [vmem:[#allocation26_spill] sm:$0xff] %v3718_v28  ;;  %v3728_v30 = vld [vmem:[%s4573_s5 + $0xa8] ss:$16 sps:$4 sm:$0xff]   ;;  %v3735_v31 = vld [vmem:[%s4573_s5 + $0xc4] ss:$16 sps:$4 sm:$0xff]   ;;  %v1474_v35 = vstv %s3356_s15 }
  0x3b   : > { %4637 = vst [vmem:[#allocation27_spill] sm:$0xff] %v3723_v29  ;;  %4638 = vst [vmem:[#allocation28_spill] sm:$0xff] %v3728_v30  ;;  %v3742_v32 = vld [vmem:[%s4573_s5 + $0xcc] ss:$16 sps:$4 sm:$0xff]   ;;  %v3748_v33 = vld [vmem:[%s4573_s5 + $0xc0] ss:$16 sps:$4 sm:$0xff]  }
  0x3c   : > { %683 = vmatmul.mubr.bf16.vlgmr.msra.gmra.mrb[0].mxu0 %v2943_v36  ;;  %736 = vmatmul.mubr.bf16.vlgmr.msra.gmra.mrb[0].mxu1 %v2943_v36  ;;  %4639 = vst [vmem:[#allocation29_spill] sm:$0xff] %v3735_v31  ;;  %4640 = vst [vmem:[#allocation30_spill] sm:$0xff] %v3742_v32  ;;  %v3755_v34 = vld [vmem:[%s4573_s5 + $0xc8] ss:$16 sps:$4 sm:$0xff]   ;;  %v3763_v36 = vld [vmem:[%s4573_s5 + $0xe4] ss:$16 sps:$4 sm:$0xff]  }
  0x3d   : > { %1003 = vmatpush1.bf16.msra.mxu0 %v2944_v37  ;;  %1056 = vmatpush1.bf16.msra.mxu1 %v2947_v38  ;;  %4641 = vst [vmem:[#allocation31_spill] sm:$0xff] %v3748_v33  ;;  %4642 = vst [vmem:[#allocation32_spill] sm:$0xff] %v3755_v34  ;;  %v3768_v37 = vld [vmem:[%s4573_s5 + $0xec] ss:$16 sps:$4 sm:$0xff]   ;;  %v1763_v38 = vstv %s1762_s21  ;;  %s2280_s29 = sadd.s32 1, %s3359_s17  ;;  %s2409_s11 = sadd.s32 3, %s3356_s15 }
  0x3e   : > { %1004 = vmatprep.subr.bf16.mxu0 %v2952_v39  ;;  %1057 = vmatprep.subr.bf16.mxu1 %v2955_v40  ;;  %4643 = vst [vmem:[#allocation33_spill] sm:$0xff] %v3763_v36  ;;  %4644 = vst [vmem:[#allocation34_spill] sm:$0xff] %v3768_v37  ;;  %v3773_v39 = vld [vmem:[%s4568_s0] sm:$0xff] }
  0x3f   : > { %692 = vmatprep.mubr.bf16.mxu0 %v4579_v3  ;;  %745 = vmatprep.mubr.bf16.mxu1 %v4579_v3  ;;  %vm1475_vm0 = vcmp.lt.s32.totalorder %v1474_v35, %v3773_v39  ;;  %v3782_v40 = vld [vmem:[%s4573_s5 + $0xe0] ss:$16 sps:$4 sm:$0xff]   ;;  %vm1764_vm1 = vcmp.lt.s32.totalorder %v1763_v38, %v3773_v39  ;;  %v3928_v35 = vld [vmem:[%s4574_s6 + $0xa4] ss:$16 sps:$4 sm:$0xff]   ;;  %v3933_v38 = vld [vmem:[%s4574_s6 + $0xac] ss:$16 sps:$4 sm:$0xff]  }
  0x40   : > { %4645 = vst [vmem:[#allocation35_spill] sm:$0xff] %v3782_v40 }
  0x41   : > { %1005 = vmatpush1.bf16.msra.mxu0 %v2950_v41  ;;  %1058 = vmatpush1.bf16.msra.mxu1 %v2953_v42  ;;  %v3787_v41 = vld [vmem:[%s4573_s5 + $0xe8] ss:$16 sps:$4 sm:$0xff]   ;;  %v3789_v42 = vld [vmem:[#allocation6] sm:$0xff] }
  0x42   : > { %1006 = vmatprep.subr.bf16.mxu0 %v2958_v43  ;;  %1059 = vmatprep.subr.bf16.mxu1 %v2961_v44  ;;  %4646 = vst [vmem:[#allocation36_spill] sm:$0xff] %v3787_v41  ;;  %v1476_v43 = vsel %vm1475_vm0, 1, %v4579_v3  ;;  %v3798_v44 = vld [vmem:[%s4574_s6 + $0x4] ss:$16 sps:$4 sm:$0xff]  }
  0x43   : > { %4647 = vst [vmem:[#allocation37_spill] sm:$0xff] %v3798_v44  ;;  %1478 = vperm.xlu0 %2893, %v1476_v43   ;;  %v3940_v43 = vld [vmem:[%s4574_s6 + $0xa0] ss:$16 sps:$4 sm:$0xff]  }
  0x44   : > { %693 = vmatmul.mubr.bf16.gmra.mrb[4].mxu0 %v2980_v45  ;;  %746 = vmatmul.mubr.bf16.gmra.mrb[4].mxu1 %v2980_v45  ;;  %v3803_v45 = vld [vmem:[%s4574_s6 + $0xc] ss:$16 sps:$4 sm:$0xff]  }
  0x45   : > { %1007 = vmatpush1.bf16.msra.mxu0 %v2956_v46  ;;  %1060 = vmatpush1.bf16.msra.mxu1 %v2959_v47  ;;  %4648 = vst [vmem:[#allocation38_spill] sm:$0xff] %v3803_v45  ;;  %v2152_v46 = vstv %s2151_s12  ;;  %v1203_v47 = vpack.c.bf16 %v3789_v42, %v3789_v42 }
  0x46   : > { %1008 = vmatprep.subr.bf16.mxu0 %v2964_v48  ;;  %1061 = vmatprep.subr.bf16.mxu1 %v2967_v49  ;;  %v1765_v48 = vsel %vm1764_vm1, 1, %v4579_v3  ;;  %v3813_v49 = vld [vmem:[%s4574_s6] ss:$16 sps:$4 sm:$0xff]   ;;  %vm2153_vm2 = vcmp.lt.s32.totalorder %v2152_v46, %v3773_v39  ;;  %v3945_v46 = vld [vmem:[%s4574_s6 + $0xa8] ss:$16 sps:$4 sm:$0xff]  }
  0x47   : > { %1034 = vmatprep.mubr.bf16.mxu0 %v4579_v3  ;;  %1087 = vmatprep.mubr.bf16.mxu1 %v4579_v3  ;;  %4649 = vst [vmem:[#allocation39_spill] sm:$0xff] %v3945_v46 }
  0x48   : > { %1767 = vperm.xlu0 %2893, %v1765_v48   ;;  %v3957_v48 = vld [vmem:[%s4574_s6 + $0xcc] ss:$16 sps:$4 sm:$0xff]  }
  0x49   : > { %1009 = vmatpush1.bf16.msra.mxu0 %v2962_v50  ;;  %1062 = vmatpush1.bf16.msra.mxu1 %v2965_v51  ;;  %v3818_v50 = vld [vmem:[%s4574_s6 + $0x8] ss:$16 sps:$4 sm:$0xff]   ;;  %v3825_v51 = vld [vmem:[%s4574_s6 + $0x24] ss:$16 sps:$4 sm:$0xff]   ;;  %4651 = vst [vmem:[#allocation41_spill] sm:$0xff] %v3957_v48 }
  0x4a   : > { %1010 = vmatprep.subr.bf16.mxu0 %v2970_v52  ;;  %1063 = vmatprep.subr.bf16.mxu1 %v2973_v53  ;;  %v3830_v52 = vld [vmem:[%s4574_s6 + $0x2c] ss:$16 sps:$4 sm:$0xff]   ;;  %v2538_v53 = vstv %s3359_s17 }
  0x4b   : > { %vm2539_vm3 = vcmp.lt.s32.totalorder %v2538_v53, %v3773_v39  ;;  %v3964_v53 = vld [vmem:[%s4574_s6 + $0xc0] ss:$16 sps:$4 sm:$0xff]  }
  0x4c   : > { %4652 = vst [vmem:[#allocation42_spill] sm:$0xff] %v3964_v53 }
  0x4d   : > { %1011 = vmatpush1.bf16.msra.mxu0 %v2968_v54  ;;  %1064 = vmatpush1.bf16.msra.mxu1 %v2971_v55  ;;  %v3839_v54 = vld [vmem:[%s4574_s6 + $0x20] ss:$16 sps:$4 sm:$0xff]   ;;  %v3844_v55 = vld [vmem:[%s4574_s6 + $0x28] ss:$16 sps:$4 sm:$0xff]  }
  0x4e   : > { %1012 = vmatprep.subr.bf16.mxu0 %v2976_v56  ;;  %1065 = vmatprep.subr.bf16.mxu1 %v2979_v57  ;;  %v2154_v56 = vsel %vm2153_vm2, 1, %v4579_v3  ;;  %v3852_v57 = vld [vmem:[%s4574_s6 + $0x44] ss:$16 sps:$4 sm:$0xff]  }
  0x4f   : > { %2156 = vperm.xlu0 %2893, %v2154_v56   ;;  %v3969_v56 = vld [vmem:[%s4574_s6 + $0xc8] ss:$16 sps:$4 sm:$0xff]  }
  0x51   : > { %1013 = vmatpush1.bf16.msra.mxu0 %v2974_v58  ;;  %1066 = vmatpush1.bf16.msra.mxu1 %v2977_v59  ;;  %v3857_v58 = vld [vmem:[%s4574_s6 + $0x4c] ss:$16 sps:$4 sm:$0xff]   ;;  %v3867_v59 = vld [vmem:[%s4574_s6 + $0x40] ss:$16 sps:$4 sm:$0xff]  }
  0x52   : > { %1014 = vmatprep.subr.bf16.mxu0 %v2983_v60  ;;  %1067 = vmatprep.subr.bf16.mxu1 %v2986_v61  ;;  %v3872_v60 = vld [vmem:[%s4574_s6 + $0x48] ss:$16 sps:$4 sm:$0xff]   ;;  %v2540_v61 = vsel %vm2539_vm3, 1, %v4579_v3 }
  0x53   : > { %2542 = vperm.xlu0 %2893, %v2540_v61   ;;  %v3976_v61 = vld [vmem:[%s4574_s6 + $0xe4] ss:$16 sps:$4 sm:$0xff]  }
  0x55   : > { %1015 = vmatpush1.bf16.msra.mxu0 %v2981_v62  ;;  %1068 = vmatpush1.bf16.msra.mxu1 %v2984_v63  ;;  %v3880_v62 = vld [vmem:[%s4574_s6 + $0x64] ss:$16 sps:$4 sm:$0xff]   ;;  %v3885_v63 = vld [vmem:[%s4574_s6 + $0x6c] ss:$16 sps:$4 sm:$0xff]  }
  0x56   : > { %1016 = vmatprep.subr.bf16.mxu0 %v2989_v0  ;;  %1069 = vmatprep.subr.bf16.mxu1 %v2992_v1  ;;  %v3892_v0 = vld [vmem:[%s4574_s6 + $0x60] ss:$16 sps:$4 sm:$0xff]   ;;  %v3897_v1 = vld [vmem:[%s4574_s6 + $0x68] ss:$16 sps:$4 sm:$0xff]  }
  0x59   : > { %1017 = vmatpush1.bf16.msra.mxu0 %v2987_v2  ;;  %1070 = vmatpush1.bf16.msra.mxu1 %v2990_v4  ;;  %v3904_v2 = vld [vmem:[%s4574_s6 + $0x84] ss:$16 sps:$4 sm:$0xff]   ;;  %v3909_v4 = vld [vmem:[%s4574_s6 + $0x8c] ss:$16 sps:$4 sm:$0xff]  }
  0x5a   : > { %1364 = vmatprep.subr.bf16.mxu0 %v3589_v5  ;;  %1405 = vmatprep.subr.bf16.mxu1 %v3594_v6 }
  0x5c   : > { %1035 = vmatmul.mubr.bf16.vlgmr.msra.gmra.mrb[8].mxu0 %v2993_v7  ;;  %1088 = vmatmul.mubr.bf16.vlgmr.msra.gmra.mrb[8].mxu1 %v2993_v7  ;;  %v3916_v7 = vld [vmem:[%s4574_s6 + $0x80] ss:$16 sps:$4 sm:$0xff]  }
  0x5d   : > { %1365 = vmatpush1.bf16.msra.mxu0 %v3600_v8  ;;  %1406 = vmatpush1.bf16.msra.mxu1 %v3605_v9 }
  0x5e   : > { %1366 = vmatprep.subr.bf16.mxu0 %v3610_v10  ;;  %1407 = vmatprep.subr.bf16.mxu1 %v3617_v11 }
  0x5f   : > { %1044 = vmatprep.mubr.bf16.mxu0 %v4579_v3  ;;  %1097 = vmatprep.mubr.bf16.mxu1 %v4579_v3 }
  0x61   : > { %1367 = vmatpush1.bf16.msra.mxu0 %v3622_v12  ;;  %1408 = vmatpush1.bf16.msra.mxu1 %v3627_v13 }
  0x62   : > { %1368 = vmatprep.subr.bf16.mxu0 %v3634_v14  ;;  %1409 = vmatprep.subr.bf16.mxu1 %v3641_v15 }
  0x64   : > { %1045 = vmatmul.mubr.bf16.gmra.mrb[12].mxu0 %v3030_v17  ;;  %1098 = vmatmul.mubr.bf16.gmra.mrb[12].mxu1 %v3030_v17  ;;  %v3921_v17 = vld [vmem:[%s4574_s6 + $0x88] ss:$16 sps:$4 sm:$0xff]  }
  0x65   : > { %1369 = vmatpush1.bf16.msra.mxu0 %v3646_v16  ;;  %1410 = vmatpush1.bf16.msra.mxu1 %v3656_v18 }
  0x66   : > { %1370 = vmatprep.subr.bf16.mxu0 %v3663_v19  ;;  %1411 = vmatprep.subr.bf16.mxu1 %v3668_v20 }
  0x67   : > { %1396 = vmatprep.mubr.bf16.mxu0 %v4579_v3  ;;  %1437 = vmatprep.mubr.bf16.mxu1 %v4579_v3 }
  0x69   : > { %1371 = vmatpush1.bf16.msra.mxu0 %v3673_v21  ;;  %1412 = vmatpush1.bf16.msra.mxu1 %v3678_v22 }
  0x6a   : > { %1372 = vmatprep.subr.bf16.mxu0 %v3685_v23  ;;  %1413 = vmatprep.subr.bf16.mxu1 %v3692_v24 }
  0x6d   : > { %1373 = vmatpush1.bf16.msra.mxu0 %v3699_v25  ;;  %1414 = vmatpush1.bf16.msra.mxu1 %v3706_v26 }
  0x6e   : > { %1374 = vmatprep.subr.bf16.mxu0 %v3713_v27  ;;  %1415 = vmatprep.subr.bf16.mxu1 %v3718_v28 }
  0x71   : > { %1375 = vmatpush1.bf16.msra.mxu0 %v3723_v29  ;;  %1416 = vmatpush1.bf16.msra.mxu1 %v3728_v30 }
  0x72   : > { %1376 = vmatprep.subr.bf16.mxu0 %v3735_v31  ;;  %1417 = vmatprep.subr.bf16.mxu1 %v3742_v32 }
  0x75   : > { %1377 = vmatpush1.bf16.msra.mxu0 %v3748_v33  ;;  %1418 = vmatpush1.bf16.msra.mxu1 %v3755_v34 }
  0x76   : > { %1378 = vmatprep.subr.bf16.mxu0 %v3763_v36  ;;  %1419 = vmatprep.subr.bf16.mxu1 %v3768_v37 }
  0x79   : > { %1379 = vmatpush1.bf16.msra.mxu0 %v3782_v40  ;;  %1420 = vmatpush1.bf16.msra.mxu1 %v3787_v41 }
  0x7a   : > { %1652 = vmatprep.subr.bf16.mxu0 %v3798_v44  ;;  %1693 = vmatprep.subr.bf16.mxu1 %v3803_v45 }
  0x7c   : > { %1397 = vmatmul.mubr.bf16.vlgmr.msra.gmra.mrb[16].mxu0 %v1203_v47  ;;  %1438 = vmatmul.mubr.bf16.vlgmr.msra.gmra.mrb[16].mxu1 %v1203_v47  ;;  %v3952_v47 = vld [vmem:[%s4574_s6 + $0xc4] ss:$16 sps:$4 sm:$0xff]  }
  0x7d   : > { %1653 = vmatpush1.bf16.msra.mxu0 %v3813_v49  ;;  %1694 = vmatpush1.bf16.msra.mxu1 %v3818_v50  ;;  %4650 = vst [vmem:[#allocation40_spill] sm:$0xff] %v3952_v47 }
  0x7e   : > { %1654 = vmatprep.subr.bf16.mxu0 %v3825_v51  ;;  %1695 = vmatprep.subr.bf16.mxu1 %v3830_v52 }
  0x7f   : > { %1684 = vmatprep.mubr.bf16.mxu0 %v4579_v3  ;;  %1725 = vmatprep.mubr.bf16.mxu1 %v4579_v3  ;;  %v3981_v3 = vld [vmem:[%s4574_s6 + $0xec] ss:$16 sps:$4 sm:$0xff]  }
  0x80   : > { %4653 = vst [vmem:[#allocation43_spill] sm:$0xff] %v3981_v3 }
  0x81   : > { %1655 = vmatpush1.bf16.msra.mxu0 %v3839_v54  ;;  %1696 = vmatpush1.bf16.msra.mxu1 %v3844_v55 }
  0x82   : > { %1656 = vmatprep.subr.bf16.mxu0 %v3852_v57  ;;  %1697 = vmatprep.subr.bf16.mxu1 %v3857_v58 }
  0x85   : > { %1657 = vmatpush1.bf16.msra.mxu0 %v3867_v59  ;;  %1698 = vmatpush1.bf16.msra.mxu1 %v3872_v60 }
  0x86   : > { %1658 = vmatprep.subr.bf16.mxu0 %v3880_v62  ;;  %1699 = vmatprep.subr.bf16.mxu1 %v3885_v63 }
  0x89   : > { %1659 = vmatpush1.bf16.msra.mxu0 %v3892_v0  ;;  %1700 = vmatpush1.bf16.msra.mxu1 %v3897_v1 }
  0x8a   : > { %1660 = vmatprep.subr.bf16.mxu0 %v3904_v2  ;;  %1701 = vmatprep.subr.bf16.mxu1 %v3909_v4 }
  0x8d   : > { %1661 = vmatpush1.bf16.msra.mxu0 %v3916_v7  ;;  %1702 = vmatpush1.bf16.msra.mxu1 %v3921_v17 }
  0x8e   : > { %1662 = vmatprep.subr.bf16.mxu0 %v3928_v35  ;;  %1703 = vmatprep.subr.bf16.mxu1 %v3933_v38 }
  0x91   : > { %1663 = vmatpush1.bf16.msra.mxu0 %v3940_v43  ;;  %1704 = vmatpush1.bf16.msra.mxu1 %v3945_v46  ;;  %v3995_v46 = vld [vmem:[#allocation8] sm:$0xff] }
  0x92   : > { %1664 = vmatprep.subr.bf16.mxu0 %v3952_v47  ;;  %1705 = vmatprep.subr.bf16.mxu1 %v3957_v48  ;;  %v3988_v47 = vld [vmem:[%s4574_s6 + $0xe0] ss:$16 sps:$4 sm:$0xff]   ;;  %v3993_v48 = vld [vmem:[%s4574_s6 + $0xe8] ss:$16 sps:$4 sm:$0xff]  }
  0x95   : > { %1665 = vmatpush1.bf16.msra.mxu0 %v3964_v53  ;;  %1706 = vmatpush1.bf16.msra.mxu1 %v3969_v56  ;;  %v1491_v53 = vpack.c.bf16 %v3995_v46, %v3995_v46 }
  0x96   : > { %1666 = vmatprep.subr.bf16.mxu0 %v3976_v61  ;;  %1707 = vmatprep.subr.bf16.mxu1 %v3981_v3  ;;  %v4654_v3 = vmov 0  }
  0x99   : > { %1667 = vmatpush1.bf16.msra.mxu0 %v3988_v47  ;;  %1708 = vmatpush1.bf16.msra.mxu1 %v3993_v48 }
  0x9a   : > { %1782 = vmatprep.subr.bf16.mxu0 %v3589_v5  ;;  %1823 = vmatprep.subr.bf16.mxu1 %v3594_v6 }
  0x9c   : > { %1685 = vmatmul.mubr.bf16.vlgmr.msra.gmra.mrb[20].mxu0 %v1491_v53  ;;  %1726 = vmatmul.mubr.bf16.vlgmr.msra.gmra.mrb[20].mxu1 %v1491_v53  ;;  %v458_v53 = vlaneseq }
  0x9d   : > { %1783 = vmatpush1.bf16.msra.mxu0 %v3600_v8  ;;  %1824 = vmatpush1.bf16.msra.mxu1 %v3605_v9 }
  0x9e   : > { %1784 = vmatprep.subr.bf16.mxu0 %v3610_v10  ;;  %1825 = vmatprep.subr.bf16.mxu1 %v3617_v11 }
  0x9f   : > { %1814 = vmatprep.mubr.bf16.mxu0 %v4654_v3  ;;  %1855 = vmatprep.mubr.bf16.mxu1 %v4654_v3 }
  0xa1   : > { %1785 = vmatpush1.bf16.msra.mxu0 %v3622_v12  ;;  %1826 = vmatpush1.bf16.msra.mxu1 %v3627_v13 }
  0xa2   : > { %1786 = vmatprep.subr.bf16.mxu0 %v3634_v14  ;;  %1827 = vmatprep.subr.bf16.mxu1 %v3641_v15 }
  0xa5   : > { %1787 = vmatpush1.bf16.msra.mxu0 %v3646_v16  ;;  %1828 = vmatpush1.bf16.msra.mxu1 %v3656_v18 }
  0xa6   : > { %1788 = vmatprep.subr.bf16.mxu0 %v3663_v19  ;;  %1829 = vmatprep.subr.bf16.mxu1 %v3668_v20 }
  0xa9   : > { %1789 = vmatpush1.bf16.msra.mxu0 %v3673_v21  ;;  %1830 = vmatpush1.bf16.msra.mxu1 %v3678_v22 }
  0xaa   : > { %1790 = vmatprep.subr.bf16.mxu0 %v3685_v23  ;;  %1831 = vmatprep.subr.bf16.mxu1 %v3692_v24 }
  0xad   : > { %1791 = vmatpush1.bf16.msra.mxu0 %v3699_v25  ;;  %1832 = vmatpush1.bf16.msra.mxu1 %v3706_v26 }
  0xae   : > { %1792 = vmatprep.subr.bf16.mxu0 %v3713_v27  ;;  %1833 = vmatprep.subr.bf16.mxu1 %v3718_v28 }
  0xb1   : > { %1793 = vmatpush1.bf16.msra.mxu0 %v3723_v29  ;;  %1834 = vmatpush1.bf16.msra.mxu1 %v3728_v30 }
  0xb2   : > { %1794 = vmatprep.subr.bf16.mxu0 %v3735_v31  ;;  %1835 = vmatprep.subr.bf16.mxu1 %v3742_v32  ;;  %v459_v31 = vshrl.u32 %v458_v53, 7 }
  0xb4   : > { %v460_v30 = vsub.s32 0, %v459_v31  ;;  %v468_v32 = vsub.s32 2, %v459_v31 }
  0xb5   : > { %1795 = vmatpush1.bf16.msra.mxu0 %v3748_v33  ;;  %1836 = vmatpush1.bf16.msra.mxu1 %v3755_v34  ;;  %v456_v34 = vld [vmem:[%s4575_s7] sm:$0xf]  ;;  %v472_v33 = vsub.s32 3, %v459_v31 }
  0xb6   : > { %1796 = vmatprep.subr.bf16.mxu0 %v3763_v36  ;;  %1837 = vmatprep.subr.bf16.mxu1 %v3768_v37  ;;  %v464_v36 = vsub.s32 1, %v459_v31  ;;  %v4042_v29 = vrot.slane %v456_v34, %v460_v30  ;;  %v4044_v37 = vrot.slane %v456_v34, %v468_v32 }
  0xb8   : > { %v4056_v28 = vrot.slane %v456_v34, %v464_v36 }
  0xb9   : > { %1797 = vmatpush1.bf16.msra.mxu0 %v3782_v40  ;;  %1838 = vmatpush1.bf16.msra.mxu1 %v3787_v41 }
  0xba   : > { %1912 = vmatprep.subr.bf16.mxu0 %v3798_v44  ;;  %1953 = vmatprep.subr.bf16.mxu1 %v3803_v45  ;;  %v4050_v44 = vrot.slane %v456_v34, %v472_v33 }
 0x10f   : > { %v4046_v40 = vpop.f32.mrb[0].mxu0  ;;  %v4048_v41 = vpop.f32.mrb[0].mxu1 }
 0x110   : > { %v4052_v45 = vpop.f32.mrb[1].mxu0  ;;  %v4054_v53 = vpop.f32.mrb[1].mxu1 }
 0x111   : > { %v688_v27 = vpop.f32.mrb[2].mxu0  ;;  %v741_v26 = vpop.f32.mrb[2].mxu1 }
 0x112   : > { %v4059_v31 = vadd.f32 %v688_v27, %v4042_v29  ;;  %v690_v25 = vpop.f32.mrb[3].mxu0  ;;  %v4062_v24 = vadd.f32 %v741_v26, %v4044_v37  ;;  %v743_v23 = vpop.f32.mrb[3].mxu1 }
 0x113   : > { %v4065_v22 = vadd.f32 %v690_v25, %v4056_v28  ;;  %v4068_v21 = vadd.f32 %v743_v23, %v4050_v44 }
 0x114   : > { %4655 = vst [vmem:[#allocation44_spill] sm:$0xff] %v4059_v31  ;;  %4656 = vst [vmem:[#allocation45_spill] sm:$0xff] %v4062_v24 }
 0x115   : > { %4657 = vst [vmem:[#allocation46_spill] sm:$0xff] %v4065_v22  ;;  %4658 = vst [vmem:[#allocation47_spill] sm:$0xff] %v4068_v21 }
 0x117   : > { %v694_v20 = vpop.f32.mrb[4].mxu0  ;;  %v747_v34 = vpop.f32.mrb[4].mxu1 }
 0x118   : > { %v4071_v19 = vadd.f32 %v694_v20, %v4042_v29  ;;  %v696_v27 = vpop.f32.mrb[5].mxu0  ;;  %v4074_v31 = vadd.f32 %v747_v34, %v4044_v37  ;;  %v749_v26 = vpop.f32.mrb[5].mxu1 }
 0x119   : > { %v4077_v24 = vadd.f32 %v696_v27, %v4056_v28  ;;  %v698_v25 = vpop.f32.mrb[6].mxu0  ;;  %v4080_v23 = vadd.f32 %v749_v26, %v4050_v44  ;;  %v751_v21 = vpop.f32.mrb[6].mxu1  ;;  %v1893_v26 = vstv %s1892_s26 }
 0x11a   : > { %4659 = vst [vmem:[#allocation48_spill] sm:$0xff] %v4071_v19  ;;  %4660 = vst [vmem:[#allocation49_spill] sm:$0xff] %v4074_v31  ;;  %v4083_v22 = vadd.f32 %v698_v25, %v4042_v29  ;;  %v700_v20 = vpop.f32.mrb[7].mxu0  ;;  %v4086_v19 = vadd.f32 %v751_v21, %v4044_v37  ;;  %v753_v34 = vpop.f32.mrb[7].mxu1  ;;  %vm1894_vm4 = vcmp.lt.s32.totalorder %v1893_v26, %v3773_v39  ;;  %v2281_v21 = vstv %s2280_s29 }
 0x11b   : > { %4661 = vst [vmem:[#allocation50_spill] sm:$0xff] %v4077_v24  ;;  %4662 = vst [vmem:[#allocation51_spill] sm:$0xff] %v4080_v23  ;;  %v4089_v31 = vadd.f32 %v700_v20, %v4056_v28  ;;  %v4092_v27 = vadd.f32 %v753_v34, %v4050_v44  ;;  %v2023_v23 = vstv %s2022_s28  ;;  %v1895_v25 = vsel %vm1894_vm4, 1, %v4654_v3  ;;  %v808_v34 = vld [vmem:[%s4576_s8] sm:$0xf] }
 0x11c   : > { %4663 = vst [vmem:[#allocation52_spill] sm:$0xff] %v4083_v22  ;;  %4664 = vst [vmem:[#allocation53_spill] sm:$0xff] %v4086_v19  ;;  %vm2024_vm5 = vcmp.lt.s32.totalorder %v2023_v23, %v3773_v39  ;;  %1897 = vperm.xlu1 %2894, %v1895_v25   ;;  %vm2282_vm6 = vcmp.lt.s32.totalorder %v2281_v21, %v3773_v39  ;;  %v4107_v26 = vrot.slane %v808_v34, %v460_v30 }
 0x11d   : > { %4665 = vst [vmem:[#allocation54_spill] sm:$0xff] %v4089_v31  ;;  %4666 = vst [vmem:[#allocation55_spill] sm:$0xff] %v4092_v27  ;;  %v2025_v20 = vsel %vm2024_vm5, 1, %v4654_v3  ;;  %v2410_v27 = vstv %s2409_s11  ;;  %v2283_v31 = vsel %vm2282_vm6, 1, %v4654_v3  ;;  %v4109_v23 = vrot.slane %v808_v34, %v468_v32 }
 0x11e   : > { %vm2411_vm7 = vcmp.lt.s32.totalorder %v2410_v27, %v3773_v39  ;;  %v4112_v25 = vrot.slane %v808_v34, %v464_v36  ;;  %v4114_v19 = vrot.slane %v808_v34, %v472_v33 }
 0x11f   : > { %v2412_v24 = vsel %vm2411_vm7, 1, %v4654_v3 }
 0x120   : > { %2027 = vperm.xlu1 %2894, %v2025_v20  }
 0x124   : > { %2285 = vperm.xlu1 %2894, %v2283_v31  }
 0x128   : > { %2414 = vperm.xlu1 %2894, %v2412_v24  }
 0x12f   : > { %v1036_v21 = vpop.f32.mrb[8].mxu0  ;;  %v1089_v22 = vpop.f32.mrb[8].mxu1 }
 0x130   : > { %v4118_v18 = vadd.f32 %v1036_v21, %v4107_v26  ;;  %v1038_v20 = vpop.f32.mrb[9].mxu0  ;;  %v4121_v30 = vadd.f32 %v1089_v22, %v4109_v23  ;;  %v1091_v32 = vpop.f32.mrb[9].mxu1 }
 0x131   : > { %v4124_v16 = vadd.f32 %v1038_v20, %v4112_v25  ;;  %v1040_v36 = vpop.f32.mrb[10].mxu0  ;;  %v4127_v33 = vadd.f32 %v1091_v32, %v4114_v19  ;;  %v1093_v39 = vpop.f32.mrb[10].mxu1 }
 0x132   : > { %4667 = vst [vmem:[#allocation56_spill] sm:$0xff] %v4118_v18  ;;  %4668 = vst [vmem:[#allocation57_spill] sm:$0xff] %v4121_v30  ;;  %v4130_v31 = vadd.f32 %v1040_v36, %v4107_v26  ;;  %v1042_v27 = vpop.f32.mrb[11].mxu0  ;;  %v4133_v34 = vadd.f32 %v1093_v39, %v4109_v23  ;;  %v1095_v21 = vpop.f32.mrb[11].mxu1 }
 0x133   : > { %4669 = vst [vmem:[#allocation58_spill] sm:$0xff] %v4124_v16  ;;  %4670 = vst [vmem:[#allocation59_spill] sm:$0xff] %v4127_v33  ;;  %v4136_v22 = vadd.f32 %v1042_v27, %v4112_v25  ;;  %v4139_v20 = vadd.f32 %v1095_v21, %v4114_v19 }
 0x134   : > { %4671 = vst [vmem:[#allocation60_spill] sm:$0xff] %v4130_v31  ;;  %4672 = vst [vmem:[#allocation61_spill] sm:$0xff] %v4133_v34  ;;  %v685_v34 = vadd.f32 %v4046_v40, %v4042_v29 }
 0x135   : > { %4673 = vst [vmem:[#allocation62_spill] sm:$0xff] %v4136_v22  ;;  %4674 = vst [vmem:[#allocation63_spill] sm:$0xff] %v4139_v20 }
 0x137   : > { %v1046_v16 = vpop.f32.mrb[12].mxu0  ;;  %v1099_v30 = vpop.f32.mrb[12].mxu1 }
 0x138   : > { %v4142_v32 = vadd.f32 %v1046_v16, %v4107_v26  ;;  %v1048_v33 = vpop.f32.mrb[13].mxu0  ;;  %v4145_v36 = vadd.f32 %v1099_v30, %v4109_v23  ;;  %v1101_v18 = vpop.f32.mrb[13].mxu1  ;;  %v738_v16 = vadd.f32 %v4048_v41, %v4044_v37  ;;  %v687_v30 = vadd.f32 %v4052_v45, %v4056_v28 }
 0x139   : > { %v4148_v39 = vadd.f32 %v1048_v33, %v4112_v25  ;;  %v1050_v24 = vpop.f32.mrb[14].mxu0  ;;  %v4151_v27 = vadd.f32 %v1101_v18, %v4114_v19  ;;  %v1103_v22 = vpop.f32.mrb[14].mxu1  ;;  %v740_v33 = vadd.f32 %v4054_v53, %v4050_v44 }
 0x13a   : > { %4675 = vst [vmem:[#allocation64_spill] sm:$0xff] %v4142_v32  ;;  %4676 = vst [vmem:[#allocation65_spill] sm:$0xff] %v4145_v36  ;;  %v1052_v21 = vpop.f32.mrb[15].mxu0  ;;  %v1105_v20 = vpop.f32.mrb[15].mxu1 }
 0x13b   : > { %4677 = vst [vmem:[#allocation66_spill] sm:$0xff] %v4148_v39  ;;  %4678 = vst [vmem:[#allocation67_spill] sm:$0xff] %v4151_v27 }
 0x14f   : > { %v1398_v31 = vpop.f32.mrb[16].mxu0  ;;  %v1439_v39 = vpop.f32.mrb[16].mxu1 }
 0x150   : > { %v1446_v36 = vadd.f32 %v1398_v31, %v685_v34  ;;  %v1448_v18 = vadd.f32 %v1439_v39, %v738_v16  ;;  %v1400_v27 = vpop.f32.mrb[17].mxu0  ;;  %v1441_v32 = vpop.f32.mrb[17].mxu1 }
 0x151   : > { %v1447_v15 = vadd.f32 %v1400_v27, %v687_v30  ;;  %v1449_v14 = vadd.f32 %v1441_v32, %v740_v33  ;;  %v1402_v13 = vpop.f32.mrb[18].mxu0  ;;  %v1443_v12 = vpop.f32.mrb[18].mxu1  ;;  %v1104_v27 = vadd.f32 %v1103_v22, %v4109_v23  ;;  %v1106_v30 = vadd.f32 %v1105_v20, %v4114_v19 }
 0x152   : > { %v2803_v29 = vmul.f32 -1.442695, %v1446_v36  ;;  %v1403_v40 = vpop.f32.mrb[19].mxu0  ;;  %v1444_v11 = vpop.f32.mrb[19].mxu1  ;;  %v2805_v28 = vmul.f32 -1.442695, %v1448_v18 }
 0x153   : > { %v2804_v37 = vmul.f32 -1.442695, %v1447_v15  ;;  %v1193_v13 = vld [vmem:[#allocation7] sm:$0xff]  ;;  %v1479_v12 = vpop.permute.xlu0 %1478  ;;  %v1051_v15 = vadd.f32 %v1050_v24, %v4107_v26 }
 0x154   : > { %3091 = vpow2.f32 %v2803_v29  ;;  %vm1480_vm8 = vcmp.eq.s32.totalorder %v1479_v12, 1 }
 0x155   : > { %3093 = vpow2.f32 %v2804_v37 }
 0x156   : > { %3095 = vtanh.f32 %v1449_v14  ;;  %v1053_v14 = vadd.f32 %v1052_v21, %v4112_v25 }
 0x157   : > { %3097 = vpow2.f32 %v2805_v28 }
 0x15e   : > { %v3092_v41 = vpop.eup %3091 }
 0x15f   : > { %v1459_v45 = vadd.f32 1.0, %v3092_v41  ;;  %v3094_v44 = vpop.eup %3093 }
 0x160   : > { %v1460_v53 = vadd.f32 1.0, %v3094_v44  ;;  %v3096_v31 = vpop.eup %3095 }
 0x161   : > { %3099 = vrcp.f32 %v1459_v45  ;;  %v3098_v34 = vpop.eup %3097 }
 0x162   : > { %3101 = vrcp.f32 %v1460_v53  ;;  %v1461_v11 = vadd.f32 1.0, %v3098_v34 }
 0x164   : > { %3103 = vrcp.f32 %v1461_v11 }
 0x16b   : > { %v3100_v32 = vpop.eup %3099 }
 0x16c   : > { %v1470_v36 = vmul.f32 %v3100_v32, %v3096_v31  ;;  %v3102_v39 = vpop.eup %3101 }
 0x16d   : > { %v1469_v16 = vmul.f32 %v3102_v39, %v1193_v13 }
 0x16e   : > { %v3104_v24 = vpop.eup %3103 }
 0x16f   : > { %v1686_v33 = vpop.f32.mrb[20].mxu0  ;;  %v1727_v18 = vpop.f32.mrb[20].mxu1  ;;  %v1471_v29 = vadd.f32 %v1470_v36, %v1469_v16  ;;  %v1195_v16 = vld [vmem:[#allocation9] sm:$0xff] }
 0x170   : > { %v1734_v40 = vadd.f32 %v1686_v33, %v1051_v15  ;;  %v1736_v37 = vadd.f32 %v1727_v18, %v1104_v27  ;;  %v1688_v28 = vpop.f32.mrb[21].mxu0  ;;  %v1729_v41 = vpop.f32.mrb[21].mxu1 }
 0x171   : > { %v1735_v45 = vadd.f32 %v1688_v28, %v1053_v14  ;;  %v1737_v44 = vadd.f32 %v1729_v41, %v1106_v30  ;;  %v1690_v53 = vpop.f32.mrb[22].mxu0  ;;  %v1731_v26 = vpop.f32.mrb[22].mxu1  ;;  %3105 = vtanh.f32 %v1471_v29  ;;  %v4166_v23 = vsel %vm1480_vm8, %v1471_v29, %v1193_v13  ;;  %v4679_v28 = vld [vmem:[#allocation39_spill] sm:$0xff]  ;;  %v4680_v41 = vld [vmem:[#allocation40_spill] sm:$0xff] }
 0x172   : > { %v2838_v25 = vmul.f32 -1.442695, %v1734_v40  ;;  %v1691_v22 = vpop.f32.mrb[23].mxu0  ;;  %v1732_v19 = vpop.f32.mrb[23].mxu1  ;;  %v2840_v31 = vmul.f32 -1.442695, %v1736_v37 }
 0x173   : > { %v2839_v20 = vmul.f32 -1.442695, %v1735_v45  ;;  %v1768_v29 = vpop.permute.xlu0 %1767  ;;  %v4681_v45 = vld [vmem:[#allocation41_spill] sm:$0xff]  ;;  %v4682_v53 = vld [vmem:[#allocation42_spill] sm:$0xff] }
 0x174   : > { %3107 = vpow2.f32 %v2838_v25  ;;  %vm1769_vm9 = vcmp.eq.s32.totalorder %v1768_v29, 1  ;;  %v4683_v25 = vld [vmem:[#allocation43_spill] sm:$0xff]  ;;  %v4707_v29 = vld [vmem:[#allocation33_spill] sm:$0xff] }
 0x175   : > { %3109 = vpow2.f32 %v2839_v20 }
 0x176   : > { %3111 = vtanh.f32 %v1737_v44 }
 0x177   : > { %3113 = vpow2.f32 %v2840_v31  ;;  %v4689_v31 = vld [vmem:[#allocation15_spill] sm:$0xff] }
 0x17b   : > { %v3106_v21 = vpop.eup %3105 }
 0x17c   : > { %v1473_v34 = vmul.f32 %v3106_v21, %v3104_v24  ;;  %v4685_v24 = vld [vmem:[#allocation11_spill] sm:$0xff]  ;;  %v4686_v21 = vld [vmem:[#allocation12_spill] sm:$0xff] }
 0x17e   : > { %v3108_v32 = vpop.eup %3107  ;;  %v4170_v36 = vsel %vm1480_vm8, %v1473_v34, %v3789_v42  ;;  %v4693_v34 = vld [vmem:[#allocation19_spill] sm:$0xff] }
 0x17f   : > { %v1747_v39 = vadd.f32 1.0, %v3108_v32  ;;  %v3110_v11 = vpop.eup %3109  ;;  %v1781_v13 = vpack.c.bf16 %v4170_v36, %v4170_v36  ;;  %v4694_v32 = vld [vmem:[#allocation20_spill] sm:$0xff] }
 0x180   : > { %v1748_v15 = vadd.f32 1.0, %v3110_v11  ;;  %v3112_v42 = vpop.eup %3111  ;;  %v4696_v11 = vld [vmem:[#allocation22_spill] sm:$0xff] }
 0x181   : > { %3115 = vrcp.f32 %v1747_v39  ;;  %1815 = vmatmul.mubr.bf16.vlgmr.msra.gmra.mrb[24].mxu0 %v1781_v13  ;;  %1856 = vmatmul.mubr.bf16.vlgmr.msra.gmra.mrb[24].mxu1 %v1781_v13  ;;  %v3114_v12 = vpop.eup %3113  ;;  %v4695_v39 = vld [vmem:[#allocation21_spill] sm:$0xff]  ;;  %v4697_v13 = vld [vmem:[#allocation23_spill] sm:$0xff] }
 0x182   : > { %3117 = vrcp.f32 %v1748_v15  ;;  %1913 = vmatpush1.bf16.msra.mxu0 %v3813_v49  ;;  %1954 = vmatpush1.bf16.msra.mxu1 %v3818_v50  ;;  %v1749_v33 = vadd.f32 1.0, %v3114_v12  ;;  %v4698_v15 = vld [vmem:[#allocation24_spill] sm:$0xff]  ;;  %v4700_v12 = vld [vmem:[#allocation26_spill] sm:$0xff] }
 0x183   : > { %1914 = vmatprep.subr.bf16.mxu0 %v3825_v51  ;;  %1955 = vmatprep.subr.bf16.mxu1 %v3830_v52 }
 0x184   : > { %1944 = vmatprep.mubr.bf16.mxu0 %v4654_v3  ;;  %1985 = vmatprep.mubr.bf16.mxu1 %v4654_v3  ;;  %3119 = vrcp.f32 %v1749_v33  ;;  %v4705_v33 = vld [vmem:[#allocation31_spill] sm:$0xff] }
 0x186   : > { %1915 = vmatpush1.bf16.msra.mxu0 %v3839_v54  ;;  %1956 = vmatpush1.bf16.msra.mxu1 %v3844_v55 }
 0x187   : > { %1916 = vmatprep.subr.bf16.mxu0 %v3852_v57  ;;  %1957 = vmatprep.subr.bf16.mxu1 %v3857_v58 }
 0x18a   : > { %1917 = vmatpush1.bf16.msra.mxu0 %v3867_v59  ;;  %1958 = vmatpush1.bf16.msra.mxu1 %v3872_v60 }
 0x18b   : > { %v3116_v27 = vpop.eup %3115  ;;  %1918 = vmatprep.subr.bf16.mxu0 %v3880_v62  ;;  %1959 = vmatprep.subr.bf16.mxu1 %v3885_v63 }
 0x18c   : > { %v1758_v14 = vmul.f32 %v3116_v27, %v3112_v42  ;;  %v3118_v30 = vpop.eup %3117  ;;  %v4699_v42 = vld [vmem:[#allocation25_spill] sm:$0xff]  ;;  %v4701_v27 = vld [vmem:[#allocation27_spill] sm:$0xff] }
 0x18d   : > { %v1757_v18 = vmul.f32 %v3118_v30, %v1195_v16  ;;  %v4704_v30 = vld [vmem:[#allocation30_spill] sm:$0xff] }
 0x18e   : > { %1919 = vmatpush1.bf16.msra.mxu0 %v3892_v0  ;;  %1960 = vmatpush1.bf16.msra.mxu1 %v3897_v1  ;;  %v3120_v44 = vpop.eup %3119 }
 0x18f   : > { %v1759_v40 = vadd.f32 %v1758_v14, %v1757_v18  ;;  %1920 = vmatprep.subr.bf16.mxu0 %v3904_v2  ;;  %1961 = vmatprep.subr.bf16.mxu1 %v3909_v4  ;;  %v4703_v14 = vld [vmem:[#allocation29_spill] sm:$0xff]  ;;  %v4706_v18 = vld [vmem:[#allocation32_spill] sm:$0xff] }
 0x191   : > { %3121 = vtanh.f32 %v1759_v40  ;;  %v4193_v37 = vsel %vm1769_vm9, %v1759_v40, %v1195_v16  ;;  %v4702_v16 = vld [vmem:[#allocation28_spill] sm:$0xff]  ;;  %v4708_v40 = vld [vmem:[#allocation34_spill] sm:$0xff] }
 0x192   : > { %1921 = vmatpush1.bf16.msra.mxu0 %v3916_v7  ;;  %1962 = vmatpush1.bf16.msra.mxu1 %v3921_v17 }
 0x193   : > { %1922 = vmatprep.subr.bf16.mxu0 %v3928_v35  ;;  %1963 = vmatprep.subr.bf16.mxu1 %v3933_v38 }
 0x196   : > { %1923 = vmatpush1.bf16.msra.mxu0 %v3940_v43  ;;  %1964 = vmatpush1.bf16.msra.mxu1 %v4679_v28 }
 0x197   : > { %1924 = vmatprep.subr.bf16.mxu0 %v4680_v41  ;;  %1965 = vmatprep.subr.bf16.mxu1 %v4681_v45 }
 0x19a   : > { %1925 = vmatpush1.bf16.msra.mxu0 %v4682_v53  ;;  %1966 = vmatpush1.bf16.msra.mxu1 %v3969_v56 }
 0x19b   : > { %v3122_v26 = vpop.eup %3121  ;;  %1926 = vmatprep.subr.bf16.mxu0 %v3976_v61  ;;  %1967 = vmatprep.subr.bf16.mxu1 %v4683_v25 }
 0x19c   : > { %v1761_v22 = vmul.f32 %v3122_v26, %v3120_v44  ;;  %v4709_v44 = vld [vmem:[#allocation35_spill] sm:$0xff]  ;;  %v4710_v26 = vld [vmem:[#allocation36_spill] sm:$0xff] }
 0x19e   : > { %v4209_v19 = vsel %vm1769_vm9, %v1761_v22, %v3995_v46  ;;  %1927 = vmatpush1.bf16.msra.mxu0 %v3988_v47  ;;  %1968 = vmatpush1.bf16.msra.mxu1 %v3993_v48  ;;  %v4684_v46 = vld [vmem:[#allocation10_spill] sm:$0xff]  ;;  %v4711_v22 = vld [vmem:[#allocation37_spill] sm:$0xff] }
 0x19f   : > { %v1911_v20 = vpack.c.bf16 %v4209_v19, %v4209_v19  ;;  %2041 = vmatprep.subr.bf16.mxu0 %v3589_v5  ;;  %2082 = vmatprep.subr.bf16.mxu1 %v3594_v6  ;;  %v4687_v5 = vld [vmem:[#allocation13_spill] sm:$0xff]  ;;  %v4688_v6 = vld [vmem:[#allocation14_spill] sm:$0xff] }
 0x1a1   : > { %1945 = vmatmul.mubr.bf16.vlgmr.msra.gmra.mrb[28].mxu0 %v1911_v20  ;;  %1986 = vmatmul.mubr.bf16.vlgmr.msra.gmra.mrb[28].mxu1 %v1911_v20  ;;  %v4712_v20 = vld [vmem:[#allocation38_spill] sm:$0xff] }
 0x1a2   : > { %2042 = vmatpush1.bf16.msra.mxu0 %v3600_v8  ;;  %2083 = vmatpush1.bf16.msra.mxu1 %v3605_v9  ;;  %v4690_v8 = vld [vmem:[#allocation16_spill] sm:$0xff]  ;;  %v4691_v9 = vld [vmem:[#allocation17_spill] sm:$0xff] }
 0x1a3   : > { %2043 = vmatprep.subr.bf16.mxu0 %v3610_v10  ;;  %2084 = vmatprep.subr.bf16.mxu1 %v4684_v46  ;;  %v4692_v10 = vld [vmem:[#allocation18_spill] sm:$0xff] }
 0x1a4   : > { %2073 = vmatprep.mubr.bf16.mxu0 %v4654_v3  ;;  %2114 = vmatprep.mubr.bf16.mxu1 %v4654_v3 }
 0x1a6   : > { %2044 = vmatpush1.bf16.msra.mxu0 %v4685_v24  ;;  %2085 = vmatpush1.bf16.msra.mxu1 %v4686_v21  ;;  %v4713_v21 = vld [vmem:[#allocation44_spill] sm:$0xff] }
 0x1a7   : > { %2045 = vmatprep.subr.bf16.mxu0 %v4687_v5  ;;  %2086 = vmatprep.subr.bf16.mxu1 %v4688_v6  ;;  %v4714_v6 = vld [vmem:[#allocation45_spill] sm:$0xff] }
 0x1aa   : > { %2046 = vmatpush1.bf16.msra.mxu0 %v4689_v31  ;;  %2087 = vmatpush1.bf16.msra.mxu1 %v4690_v8 }
 0x1ab   : > { %2047 = vmatprep.subr.bf16.mxu0 %v4691_v9  ;;  %2088 = vmatprep.subr.bf16.mxu1 %v4692_v10  ;;  %v4715_v10 = vld [vmem:[#allocation46_spill] sm:$0xff] }
 0x1ae   : > { %2048 = vmatpush1.bf16.msra.mxu0 %v4693_v34  ;;  %2089 = vmatpush1.bf16.msra.mxu1 %v4694_v32  ;;  %v4716_v32 = vld [vmem:[#allocation47_spill] sm:$0xff] }
 0x1af   : > { %2049 = vmatprep.subr.bf16.mxu0 %v4695_v39  ;;  %2090 = vmatprep.subr.bf16.mxu1 %v4696_v11 }
 0x1b2   : > { %2050 = vmatpush1.bf16.msra.mxu0 %v4697_v13  ;;  %2091 = vmatpush1.bf16.msra.mxu1 %v4698_v15 }
 0x1b3   : > { %2051 = vmatprep.subr.bf16.mxu0 %v4699_v42  ;;  %2092 = vmatprep.subr.bf16.mxu1 %v4700_v12 }
 0x1b6   : > { %2052 = vmatpush1.bf16.msra.mxu0 %v4701_v27  ;;  %2093 = vmatpush1.bf16.msra.mxu1 %v4702_v16 }
 0x1b7   : > { %2053 = vmatprep.subr.bf16.mxu0 %v4703_v14  ;;  %2094 = vmatprep.subr.bf16.mxu1 %v4704_v30 }
 0x1ba   : > { %2054 = vmatpush1.bf16.msra.mxu0 %v4705_v33  ;;  %2095 = vmatpush1.bf16.msra.mxu1 %v4706_v18 }
 0x1bb   : > { %2055 = vmatprep.subr.bf16.mxu0 %v4707_v29  ;;  %2096 = vmatprep.subr.bf16.mxu1 %v4708_v40 }
 0x1be   : > { %2056 = vmatpush1.bf16.msra.mxu0 %v4709_v44  ;;  %2097 = vmatpush1.bf16.msra.mxu1 %v4710_v26  ;;  %v1898_v26 = vpop.permute.xlu1 %1897 }
 0x1bf   : > { %2170 = vmatprep.subr.bf16.mxu0 %v4711_v22  ;;  %2211 = vmatprep.subr.bf16.mxu1 %v4712_v20  ;;  %vm1899_vm10 = vcmp.eq.s32.totalorder %v1898_v26, 1 }
 0x254   : > { %v1816_v46 = vpop.f32.mrb[24].mxu0  ;;  %v1857_v24 = vpop.f32.mrb[24].mxu1 }
 0x255   : > { %v1864_v5 = vadd.f32 %v1816_v46, %v4713_v21  ;;  %v1866_v31 = vadd.f32 %v1857_v24, %v4714_v6  ;;  %v1818_v8 = vpop.f32.mrb[25].mxu0  ;;  %v1859_v9 = vpop.f32.mrb[25].mxu1 }
 0x256   : > { %v1865_v34 = vadd.f32 %v1818_v8, %v4715_v10  ;;  %v1867_v39 = vadd.f32 %v1859_v9, %v4716_v32  ;;  %v1820_v11 = vpop.f32.mrb[26].mxu0  ;;  %v1861_v13 = vpop.f32.mrb[26].mxu1  ;;  %v4718_v9 = vld [vmem:[#allocation65_spill] sm:$0xff] }
 0x257   : > { %v2841_v15 = vmul.f32 -1.442695, %v1864_v5  ;;  %v1821_v42 = vpop.f32.mrb[27].mxu0  ;;  %v1862_v12 = vpop.f32.mrb[27].mxu1  ;;  %v2843_v16 = vmul.f32 -1.442695, %v1866_v31 }
 0x258   : > { %v2842_v27 = vmul.f32 -1.442695, %v1865_v34  ;;  %v4717_v31 = vld [vmem:[#allocation64_spill] sm:$0xff]  ;;  %v4720_v13 = vld [vmem:[#allocation67_spill] sm:$0xff] }
 0x259   : > { %3123 = vpow2.f32 %v2841_v15 }
 0x25a   : > { %3125 = vpow2.f32 %v2842_v27 }
 0x25b   : > { %3127 = vtanh.f32 %v1867_v39  ;;  %v4719_v39 = vld [vmem:[#allocation66_spill] sm:$0xff] }
 0x25c   : > { %3129 = vpow2.f32 %v2843_v16 }
 0x263   : > { %v3124_v14 = vpop.eup %3123 }
 0x264   : > { %v1877_v30 = vadd.f32 1.0, %v3124_v14  ;;  %v3126_v33 = vpop.eup %3125 }
 0x265   : > { %v1878_v18 = vadd.f32 1.0, %v3126_v33  ;;  %v3128_v29 = vpop.eup %3127 }
 0x266   : > { %3131 = vrcp.f32 %v1877_v30  ;;  %v3130_v40 = vpop.eup %3129 }
 0x267   : > { %3133 = vrcp.f32 %v1878_v18  ;;  %v1879_v46 = vadd.f32 1.0, %v3130_v40 }
 0x269   : > { %3135 = vrcp.f32 %v1879_v46 }
 0x270   : > { %v3132_v44 = vpop.eup %3131 }
 0x271   : > { %v1888_v22 = vmul.f32 %v3132_v44, %v3128_v29  ;;  %v3134_v20 = vpop.eup %3133 }
 0x272   : > { %v1887_v24 = vmul.f32 %v3134_v20, %v4166_v23 }
 0x273   : > { %v3136_v18 = vpop.eup %3135 }
 0x274   : > { %v1946_v21 = vpop.f32.mrb[28].mxu0  ;;  %v1987_v5 = vpop.f32.mrb[28].mxu1  ;;  %v1889_v6 = vadd.f32 %v1888_v22, %v1887_v24 }
 0x275   : > { %v1994_v8 = vadd.f32 %v1946_v21, %v4717_v31  ;;  %v1996_v10 = vadd.f32 %v1987_v5, %v4718_v9  ;;  %v1948_v34 = vpop.f32.mrb[29].mxu0  ;;  %v1989_v32 = vpop.f32.mrb[29].mxu1  ;;  %v3238_v31 = vld [vmem:[%s4573_s5 + $0x88] ss:$16 sps:$4 sm:$0xff]   ;;  %v3240_v9 = vld [vmem:[%s4573_s5 + $0xac] ss:$16 sps:$4 sm:$0xff]  }
 0x276   : > { %v1995_v11 = vadd.f32 %v1948_v34, %v4719_v39  ;;  %v1997_v15 = vadd.f32 %v1989_v32, %v4720_v13  ;;  %v1950_v42 = vpop.f32.mrb[30].mxu0  ;;  %v1991_v12 = vpop.f32.mrb[30].mxu1  ;;  %3137 = vtanh.f32 %v1889_v6  ;;  %v4262_v27 = vsel %vm1899_vm10, %v1889_v6, %v4166_v23  ;;  %v3237_v6 = vld [vmem:[%s4573_s5 + $0x80] ss:$16 sps:$4 sm:$0xff]   ;;  %v3242_v34 = vld [vmem:[%s4573_s5 + $0xa8] ss:$16 sps:$4 sm:$0xff]  }
 0x277   : > { %v2844_v16 = vmul.f32 -1.442695, %v1994_v8  ;;  %v1951_v14 = vpop.f32.mrb[31].mxu0  ;;  %v1992_v30 = vpop.f32.mrb[31].mxu1  ;;  %v2846_v40 = vmul.f32 -1.442695, %v1996_v10 }
 0x278   : > { %v2845_v33 = vmul.f32 -1.442695, %v1995_v11  ;;  %v3239_v8 = vld [vmem:[%s4573_s5 + $0xa4] ss:$16 sps:$4 sm:$0xff]   ;;  %v3241_v10 = vld [vmem:[%s4573_s5 + $0xa0] ss:$16 sps:$4 sm:$0xff]  }
 0x279   : > { %3139 = vpow2.f32 %v2844_v16  ;;  %v3243_v32 = vld [vmem:[%s4573_s5 + $0xc4] ss:$16 sps:$4 sm:$0xff]   ;;  %v3244_v39 = vld [vmem:[%s4573_s5 + $0xcc] ss:$16 sps:$4 sm:$0xff]   ;;  %v3245_v11 = vld [vmem:[%s4573_s5 + $0xc0] ss:$16 sps:$4 sm:$0xff]  }
 0x27a   : > { %3141 = vpow2.f32 %v2845_v33  ;;  %v3246_v13 = vld [vmem:[%s4573_s5 + $0xc8] ss:$16 sps:$4 sm:$0xff]   ;;  %v3248_v42 = vld [vmem:[%s4573_s5 + $0xec] ss:$16 sps:$4 sm:$0xff]   ;;  %v3249_v12 = vld [vmem:[%s4573_s5 + $0xe0] ss:$16 sps:$4 sm:$0xff]  }
 0x27b   : > { %3143 = vtanh.f32 %v1997_v15  ;;  %v3247_v15 = vld [vmem:[%s4573_s5 + $0xe4] ss:$16 sps:$4 sm:$0xff]   ;;  %v3250_v16 = vld [vmem:[%s4573_s5 + $0xe8] ss:$16 sps:$4 sm:$0xff]   ;;  %v3252_v30 = vld [vmem:[%s4574_s6 + $0xc] ss:$16 sps:$4 sm:$0xff]  }
 0x27c   : > { %3145 = vpow2.f32 %v2846_v40  ;;  %v3251_v14 = vld [vmem:[%s4574_s6 + $0x4] ss:$16 sps:$4 sm:$0xff]  }
 0x280   : > { %v3138_v29 = vpop.eup %3137 }
 0x281   : > { %v1891_v44 = vmul.f32 %v3138_v29, %v3136_v18  ;;  %v4721_v29 = vld [vmem:[#allocation48_spill] sm:$0xff] }
 0x283   : > { %v3140_v22 = vpop.eup %3139  ;;  %v4266_v20 = vsel %vm1899_vm10, %v1891_v44, %v4170_v36  ;;  %v4722_v44 = vld [vmem:[#allocation49_spill] sm:$0xff] }
 0x284   : > { %v2007_v46 = vadd.f32 1.0, %v3140_v22  ;;  %v3142_v23 = vpop.eup %3141  ;;  %v2040_v24 = vpack.c.bf16 %v4266_v20, %v4266_v20  ;;  %v2864_v21 = vpack.c.bf16 %v4266_v20, %v4170_v36 }
 0x285   : > { %v2008_v5 = vadd.f32 1.0, %v3142_v23  ;;  %v3144_v36 = vpop.eup %3143 }
 0x286   : > { %3147 = vrcp.f32 %v2007_v46  ;;  %2865 = vst [vmem:[%s3377_s30] sm:$0xff] %v2864_v21   ;;  %2074 = vmatmul.mubr.bf16.vlgmr.msra.gmra.mrb[32].mxu0 %v2040_v24  ;;  %2115 = vmatmul.mubr.bf16.vlgmr.msra.gmra.mrb[32].mxu1 %v2040_v24  ;;  %v4723_v24 = vld [vmem:[#allocation50_spill] sm:$0xff] }
 0x287   : > { %3149 = vrcp.f32 %v2008_v5  ;;  %2171 = vmatpush1.bf16.msra.mxu0 %v3813_v49  ;;  %2212 = vmatpush1.bf16.msra.mxu1 %v3818_v50  ;;  %v3146_v49 = vpop.eup %3145  ;;  %v4724_v5 = vld [vmem:[#allocation51_spill] sm:$0xff] }
 0x288   : > { %2172 = vmatprep.subr.bf16.mxu0 %v3825_v51  ;;  %2213 = vmatprep.subr.bf16.mxu1 %v3830_v52  ;;  %v2009_v52 = vadd.f32 1.0, %v3146_v49 }
 0x289   : > { %2202 = vmatprep.mubr.bf16.mxu0 %v4654_v3  ;;  %2243 = vmatprep.mubr.bf16.mxu1 %v4654_v3 }
 0x28a   : > { %3151 = vrcp.f32 %v2009_v52 }
 0x28b   : > { %2173 = vmatpush1.bf16.msra.mxu0 %v3839_v54  ;;  %2214 = vmatpush1.bf16.msra.mxu1 %v3844_v55  ;;  %v2028_v55 = vpop.permute.xlu1 %2027 }
 0x28c   : > { %2174 = vmatprep.subr.bf16.mxu0 %v3852_v57  ;;  %2215 = vmatprep.subr.bf16.mxu1 %v3857_v58  ;;  %vm2029_vm11 = vcmp.eq.s32.totalorder %v2028_v55, 1 }
 0x28f   : > { %2175 = vmatpush1.bf16.msra.mxu0 %v3867_v59  ;;  %2216 = vmatpush1.bf16.msra.mxu1 %v3872_v60 }
 0x290   : > { %v3148_v26 = vpop.eup %3147  ;;  %2176 = vmatprep.subr.bf16.mxu0 %v3880_v62  ;;  %2217 = vmatprep.subr.bf16.mxu1 %v3885_v63 }
 0x291   : > { %v2018_v50 = vmul.f32 %v3148_v26, %v3144_v36  ;;  %v3150_v51 = vpop.eup %3149 }
 0x292   : > { %v2017_v54 = vmul.f32 %v3150_v51, %v4193_v37 }
 0x293   : > { %2177 = vmatpush1.bf16.msra.mxu0 %v3892_v0  ;;  %2218 = vmatpush1.bf16.msra.mxu1 %v3897_v1  ;;  %v3219_v1 = vld [vmem:[%s4573_s5 + $0x4] ss:$16 sps:$4 sm:$0xff]  }
 0x294   : > { %v2019_v57 = vadd.f32 %v2018_v50, %v2017_v54  ;;  %2178 = vmatprep.subr.bf16.mxu0 %v3904_v2  ;;  %2219 = vmatprep.subr.bf16.mxu1 %v3909_v4  ;;  %v3152_v59 = vpop.eup %3151  ;;  %v3220_v2 = vld [vmem:[%s4573_s5 + $0xc] ss:$16 sps:$4 sm:$0xff]   ;;  %v3221_v4 = vld [vmem:[%s4573_s5] ss:$16 sps:$4 sm:$0xff]  }
 0x296   : > { %3153 = vtanh.f32 %v2019_v57  ;;  %v4294_v58 = vsel %vm2029_vm11, %v2019_v57, %v4193_v37  ;;  %v3231_v37 = vld [vmem:[%s4573_s5 + $0x64] ss:$16 sps:$4 sm:$0xff]  }
 0x297   : > { %2179 = vmatpush1.bf16.msra.mxu0 %v3916_v7  ;;  %2220 = vmatpush1.bf16.msra.mxu1 %v3921_v17  ;;  %v3222_v7 = vld [vmem:[%s4573_s5 + $0x8] ss:$16 sps:$4 sm:$0xff]   ;;  %v3223_v17 = vld [vmem:[%s4573_s5 + $0x24] ss:$16 sps:$4 sm:$0xff]  }
 0x298   : > { %2180 = vmatprep.subr.bf16.mxu0 %v3928_v35  ;;  %2221 = vmatprep.subr.bf16.mxu1 %v3933_v38  ;;  %v3224_v35 = vld [vmem:[%s4573_s5 + $0x2c] ss:$16 sps:$4 sm:$0xff]   ;;  %v3225_v38 = vld [vmem:[%s4573_s5 + $0x20] ss:$16 sps:$4 sm:$0xff]  }
 0x29b   : > { %2181 = vmatpush1.bf16.msra.mxu0 %v3940_v43  ;;  %2222 = vmatpush1.bf16.msra.mxu1 %v4679_v28  ;;  %v3226_v43 = vld [vmem:[%s4573_s5 + $0x28] ss:$16 sps:$4 sm:$0xff]   ;;  %v3232_v28 = vld [vmem:[%s4573_s5 + $0x6c] ss:$16 sps:$4 sm:$0xff]  }
 0x29c   : > { %2182 = vmatprep.subr.bf16.mxu0 %v4680_v41  ;;  %2223 = vmatprep.subr.bf16.mxu1 %v4681_v45  ;;  %v3233_v41 = vld [vmem:[%s4573_s5 + $0x60] ss:$16 sps:$4 sm:$0xff]   ;;  %v3234_v45 = vld [vmem:[%s4573_s5 + $0x68] ss:$16 sps:$4 sm:$0xff]  }
 0x29f   : > { %2183 = vmatpush1.bf16.msra.mxu0 %v4682_v53  ;;  %2224 = vmatpush1.bf16.msra.mxu1 %v3969_v56  ;;  %v3229_v56 = vld [vmem:[%s4573_s5 + $0x40] ss:$16 sps:$4 sm:$0xff]   ;;  %v3235_v53 = vld [vmem:[%s4573_s5 + $0x84] ss:$16 sps:$4 sm:$0xff]  }
 0x2a0   : > { %v3154_v60 = vpop.eup %3153  ;;  %2184 = vmatprep.subr.bf16.mxu0 %v3976_v61  ;;  %2225 = vmatprep.subr.bf16.mxu1 %v4683_v25  ;;  %v3230_v61 = vld [vmem:[%s4573_s5 + $0x48] ss:$16 sps:$4 sm:$0xff]   ;;  %v3236_v25 = vld [vmem:[%s4573_s5 + $0x8c] ss:$16 sps:$4 sm:$0xff]  }
 0x2a1   : > { %v2021_v62 = vmul.f32 %v3154_v60, %v3152_v59 }
 0x2a3   : > { %v4310_v63 = vsel %vm2029_vm11, %v2021_v62, %v4209_v19  ;;  %2185 = vmatpush1.bf16.msra.mxu0 %v3988_v47  ;;  %2226 = vmatpush1.bf16.msra.mxu1 %v3993_v48  ;;  %v3227_v47 = vld [vmem:[%s4573_s5 + $0x44] ss:$16 sps:$4 sm:$0xff]   ;;  %v3228_v48 = vld [vmem:[%s4573_s5 + $0x4c] ss:$16 sps:$4 sm:$0xff]  }
 0x2a4   : > { %v2169_v0 = vpack.c.bf16 %v4310_v63, %v4310_v63  ;;  %2299 = vmatprep.subr.bf16.mxu0 %v3219_v1  ;;  %2340 = vmatprep.subr.bf16.mxu1 %v3220_v2 }
 0x2a6   : > { %2203 = vmatmul.mubr.bf16.vlgmr.msra.gmra.mrb[36].mxu0 %v2169_v0  ;;  %2244 = vmatmul.mubr.bf16.vlgmr.msra.gmra.mrb[36].mxu1 %v2169_v0 }
 0x2a7   : > { %2300 = vmatpush1.bf16.msra.mxu0 %v3221_v4  ;;  %2341 = vmatpush1.bf16.msra.mxu1 %v3222_v7 }
 0x2a8   : > { %2301 = vmatprep.subr.bf16.mxu0 %v3223_v17  ;;  %2342 = vmatprep.subr.bf16.mxu1 %v3224_v35  ;;  %v2157_v35 = vpop.permute.xlu0 %2156 }
 0x2a9   : > { %2331 = vmatprep.mubr.bf16.mxu0 %v4654_v3  ;;  %2372 = vmatprep.mubr.bf16.mxu1 %v4654_v3  ;;  %vm2158_vm12 = vcmp.eq.s32.totalorder %v2157_v35, 1  ;;  %v3273_v35 = vld [vmem:[%s4574_s6 + $0xa0] ss:$16 sps:$4 sm:$0xff]  }
 0x2ab   : > { %2302 = vmatpush1.bf16.msra.mxu0 %v3225_v38  ;;  %2343 = vmatpush1.bf16.msra.mxu1 %v3226_v43 }
 0x2ac   : > { %2303 = vmatprep.subr.bf16.mxu0 %v3227_v47  ;;  %2344 = vmatprep.subr.bf16.mxu1 %v3228_v48 }
 0x2af   : > { %2304 = vmatpush1.bf16.msra.mxu0 %v3229_v56  ;;  %2345 = vmatpush1.bf16.msra.mxu1 %v3230_v61  ;;  %v4725_v56 = vld [vmem:[#allocation60_spill] sm:$0xff] }
 0x2b0   : > { %2305 = vmatprep.subr.bf16.mxu0 %v3231_v37  ;;  %2346 = vmatprep.subr.bf16.mxu1 %v3232_v28  ;;  %v4726_v37 = vld [vmem:[#allocation61_spill] sm:$0xff] }
 0x2b3   : > { %2306 = vmatpush1.bf16.msra.mxu0 %v3233_v41  ;;  %2347 = vmatpush1.bf16.msra.mxu1 %v3234_v45 }
 0x2b4   : > { %2307 = vmatprep.subr.bf16.mxu0 %v3235_v53  ;;  %2348 = vmatprep.subr.bf16.mxu1 %v3236_v25  ;;  %v4727_v53 = vld [vmem:[#allocation62_spill] sm:$0xff] }
 0x2b7   : > { %2308 = vmatpush1.bf16.msra.mxu0 %v3237_v6  ;;  %2349 = vmatpush1.bf16.msra.mxu1 %v3238_v31  ;;  %v4728_v6 = vld [vmem:[#allocation63_spill] sm:$0xff] }
 0x2b8   : > { %2309 = vmatprep.subr.bf16.mxu0 %v3239_v8  ;;  %2350 = vmatprep.subr.bf16.mxu1 %v3240_v9 }
 0x2bb   : > { %2310 = vmatpush1.bf16.msra.mxu0 %v3241_v10  ;;  %2351 = vmatpush1.bf16.msra.mxu1 %v3242_v34 }
 0x2bc   : > { %2311 = vmatprep.subr.bf16.mxu0 %v3243_v32  ;;  %2352 = vmatprep.subr.bf16.mxu1 %v3244_v39 }
 0x2bf   : > { %2312 = vmatpush1.bf16.msra.mxu0 %v3245_v11  ;;  %2353 = vmatpush1.bf16.msra.mxu1 %v3246_v13 }
 0x2c0   : > { %2313 = vmatprep.subr.bf16.mxu0 %v3247_v15  ;;  %2354 = vmatprep.subr.bf16.mxu1 %v3248_v42 }
 0x2c3   : > { %2314 = vmatpush1.bf16.msra.mxu0 %v3249_v12  ;;  %2355 = vmatpush1.bf16.msra.mxu1 %v3250_v16 }
 0x2c4   : > { %2428 = vmatprep.subr.bf16.mxu0 %v3251_v14  ;;  %2469 = vmatprep.subr.bf16.mxu1 %v3252_v30 }
 0x359   : > { %v2075_v33 = vpop.f32.mrb[32].mxu0  ;;  %v2116_v18 = vpop.f32.mrb[32].mxu1 }
 0x35a   : > { %v2123_v40 = vadd.f32 %v2075_v33, %v4721_v29  ;;  %v2125_v22 = vadd.f32 %v2116_v18, %v4722_v44  ;;  %v2077_v46 = vpop.f32.mrb[33].mxu0  ;;  %v2118_v23 = vpop.f32.mrb[33].mxu1  ;;  %v3253_v29 = vld [vmem:[%s4574_s6] ss:$16 sps:$4 sm:$0xff]   ;;  %v3256_v44 = vld [vmem:[%s4574_s6 + $0x2c] ss:$16 sps:$4 sm:$0xff]  }
 0x35b   : > { %v2124_v21 = vadd.f32 %v2077_v46, %v4723_v24  ;;  %v2126_v36 = vadd.f32 %v2118_v23, %v4724_v5  ;;  %v2079_v49 = vpop.f32.mrb[34].mxu0  ;;  %v2120_v26 = vpop.f32.mrb[34].mxu1  ;;  %v3258_v46 = vld [vmem:[%s4574_s6 + $0x28] ss:$16 sps:$4 sm:$0xff]   ;;  %v3259_v23 = vld [vmem:[%s4574_s6 + $0x44] ss:$16 sps:$4 sm:$0xff]  }
 0x35c   : > { %v2847_v50 = vmul.f32 -1.442695, %v2123_v40  ;;  %v2080_v51 = vpop.f32.mrb[35].mxu0  ;;  %v2121_v52 = vpop.f32.mrb[35].mxu1  ;;  %v2849_v55 = vmul.f32 -1.442695, %v2125_v22 }
 0x35d   : > { %v2848_v54 = vmul.f32 -1.442695, %v2124_v21  ;;  %v3255_v40 = vld [vmem:[%s4574_s6 + $0x24] ss:$16 sps:$4 sm:$0xff]   ;;  %v3257_v22 = vld [vmem:[%s4574_s6 + $0x20] ss:$16 sps:$4 sm:$0xff]  }
 0x35e   : > { %3155 = vpow2.f32 %v2847_v50  ;;  %v3260_v24 = vld [vmem:[%s4574_s6 + $0x4c] ss:$16 sps:$4 sm:$0xff]   ;;  %v3262_v49 = vld [vmem:[%s4574_s6 + $0x48] ss:$16 sps:$4 sm:$0xff]   ;;  %v3263_v50 = vld [vmem:[%s4574_s6 + $0x64] ss:$16 sps:$4 sm:$0xff]  }
 0x35f   : > { %3157 = vpow2.f32 %v2848_v54  ;;  %v3264_v51 = vld [vmem:[%s4574_s6 + $0x6c] ss:$16 sps:$4 sm:$0xff]  }
 0x360   : > { %3159 = vtanh.f32 %v2126_v36  ;;  %v3261_v36 = vld [vmem:[%s4574_s6 + $0x40] ss:$16 sps:$4 sm:$0xff]  }
 0x361   : > { %3161 = vpow2.f32 %v2849_v55 }
 0x368   : > { %v3156_v57 = vpop.eup %3155 }
 0x369   : > { %v2136_v59 = vadd.f32 1.0, %v3156_v57  ;;  %v3158_v60 = vpop.eup %3157  ;;  %v3265_v57 = vld [vmem:[%s4574_s6 + $0x60] ss:$16 sps:$4 sm:$0xff]  }
 0x36a   : > { %v2137_v62 = vadd.f32 1.0, %v3158_v60  ;;  %v3160_v0 = vpop.eup %3159  ;;  %v2286_v60 = vpop.permute.xlu1 %2285 }
 0x36b   : > { %3163 = vrcp.f32 %v2136_v59  ;;  %v3162_v1 = vpop.eup %3161  ;;  %v3266_v59 = vld [vmem:[%s4574_s6 + $0x68] ss:$16 sps:$4 sm:$0xff]   ;;  %vm2287_vm13 = vcmp.eq.s32.totalorder %v2286_v60, 1 }
 0x36c   : > { %3165 = vrcp.f32 %v2137_v62  ;;  %v2138_v17 = vadd.f32 1.0, %v3162_v1  ;;  %v3268_v1 = vld [vmem:[%s4574_s6 + $0x8c] ss:$16 sps:$4 sm:$0xff]  }
 0x36d   : > { %v4734_v60 = vld [vmem:[#allocation57_spill] sm:$0xff] }
 0x36e   : > { %3167 = vrcp.f32 %v2138_v17  ;;  %v3271_v17 = vld [vmem:[%s4574_s6 + $0xa4] ss:$16 sps:$4 sm:$0xff]  }
 0x375   : > { %v3164_v2 = vpop.eup %3163 }
 0x376   : > { %v2147_v4 = vmul.f32 %v3164_v2, %v3160_v0  ;;  %v3166_v7 = vpop.eup %3165  ;;  %v3267_v0 = vld [vmem:[%s4574_s6 + $0x84] ss:$16 sps:$4 sm:$0xff]  }
 0x377   : > { %v2146_v38 = vmul.f32 %v3166_v7, %v4262_v27  ;;  %v3270_v7 = vld [vmem:[%s4574_s6 + $0x88] ss:$16 sps:$4 sm:$0xff]  }
 0x378   : > { %v3168_v13 = vpop.eup %3167 }
 0x379   : > { %v2204_v43 = vpop.f32.mrb[36].mxu0  ;;  %v2245_v47 = vpop.f32.mrb[36].mxu1  ;;  %v2148_v48 = vadd.f32 %v2147_v4, %v2146_v38  ;;  %v3269_v4 = vld [vmem:[%s4574_s6 + $0x80] ss:$16 sps:$4 sm:$0xff]   ;;  %v3274_v38 = vld [vmem:[%s4574_s6 + $0xa8] ss:$16 sps:$4 sm:$0xff]  }
 0x37a   : > { %v2252_v61 = vadd.f32 %v2204_v43, %v4725_v56  ;;  %v2254_v28 = vadd.f32 %v2245_v47, %v4726_v37  ;;  %v2206_v41 = vpop.f32.mrb[37].mxu0  ;;  %v2247_v45 = vpop.f32.mrb[37].mxu1  ;;  %v3275_v43 = vld [vmem:[%s4574_s6 + $0xc4] ss:$16 sps:$4 sm:$0xff]   ;;  %v3276_v47 = vld [vmem:[%s4574_s6 + $0xcc] ss:$16 sps:$4 sm:$0xff]  }
 0x37b   : > { %v2253_v25 = vadd.f32 %v2206_v41, %v4727_v53  ;;  %v2255_v31 = vadd.f32 %v2247_v45, %v4728_v6  ;;  %v2208_v8 = vpop.f32.mrb[38].mxu0  ;;  %v2249_v9 = vpop.f32.mrb[38].mxu1  ;;  %3169 = vtanh.f32 %v2148_v48  ;;  %v4431_v39 = vsel %vm2158_vm12, %v2148_v48, %v4262_v27  ;;  %v3277_v56 = vld [vmem:[%s4574_s6 + $0xc0] ss:$16 sps:$4 sm:$0xff]   ;;  %v3280_v41 = vld [vmem:[%s4574_s6 + $0xec] ss:$16 sps:$4 sm:$0xff]  }
 0x37c   : > { %v2850_v10 = vmul.f32 -1.442695, %v2252_v61  ;;  %v2209_v34 = vpop.f32.mrb[39].mxu0  ;;  %v2250_v32 = vpop.f32.mrb[39].mxu1  ;;  %v2852_v42 = vmul.f32 -1.442695, %v2254_v28 }
 0x37d   : > { %v2851_v11 = vmul.f32 -1.442695, %v2253_v25  ;;  %v3278_v61 = vld [vmem:[%s4574_s6 + $0xc8] ss:$16 sps:$4 sm:$0xff]   ;;  %v3279_v28 = vld [vmem:[%s4574_s6 + $0xe4] ss:$16 sps:$4 sm:$0xff]  }
 0x37e   : > { %3171 = vpow2.f32 %v2850_v10  ;;  %v3281_v53 = vld [vmem:[%s4574_s6 + $0xe0] ss:$16 sps:$4 sm:$0xff]   ;;  %v3282_v25 = vld [vmem:[%s4574_s6 + $0xe8] ss:$16 sps:$4 sm:$0xff]  }
 0x37f   : > { %3173 = vpow2.f32 %v2851_v11  ;;  %v4729_v10 = vld [vmem:[#allocation52_spill] sm:$0xff]  ;;  %v4730_v32 = vld [vmem:[#allocation53_spill] sm:$0xff] }
 0x380   : > { %3175 = vtanh.f32 %v2255_v31 }
 0x381   : > { %3177 = vpow2.f32 %v2852_v42  ;;  %v4731_v42 = vld [vmem:[#allocation54_spill] sm:$0xff] }
 0x385   : > { %v3170_v15 = vpop.eup %3169 }
 0x386   : > { %v2150_v12 = vmul.f32 %v3170_v15, %v3168_v13 }
 0x388   : > { %v3172_v16 = vpop.eup %3171  ;;  %v4435_v30 = vsel %vm2158_vm12, %v2150_v12, %v4266_v20  ;;  %v3254_v20 = vld [vmem:[%s4574_s6 + $0x8] ss:$16 sps:$4 sm:$0xff]  }
 0x389   : > { %v2265_v14 = vadd.f32 1.0, %v3172_v16  ;;  %v3174_v33 = vpop.eup %3173  ;;  %v2298_v27 = vpack.c.bf16 %v4435_v30, %v4435_v30  ;;  %v4732_v16 = vld [vmem:[#allocation55_spill] sm:$0xff] }
 0x38a   : > { %v2266_v18 = vadd.f32 1.0, %v3174_v33 }
 0x38b   : > { %3179 = vrcp.f32 %v2265_v14  ;;  %2332 = vmatmul.mubr.bf16.vlgmr.msra.gmra.mrb[40].mxu0 %v2298_v27  ;;  %2373 = vmatmul.mubr.bf16.vlgmr.msra.gmra.mrb[40].mxu1 %v2298_v27 }
 0x38c   : > { %3181 = vrcp.f32 %v2266_v18  ;;  %2429 = vmatpush1.bf16.msra.mxu0 %v3253_v29  ;;  %2470 = vmatpush1.bf16.msra.mxu1 %v3254_v20 }
 0x38d   : > { %2430 = vmatprep.subr.bf16.mxu0 %v3255_v40  ;;  %2471 = vmatprep.subr.bf16.mxu1 %v3256_v44 }
 0x38e   : > { %2460 = vmatprep.mubr.bf16.mxu0 %v4654_v3  ;;  %2501 = vmatprep.mubr.bf16.mxu1 %v4654_v3  ;;  %v3176_v3 = vpop.eup %3175 }
 0x38f   : > { %v3178_v21 = vpop.eup %3177 }
 0x390   : > { %2431 = vmatpush1.bf16.msra.mxu0 %v3257_v22  ;;  %2472 = vmatpush1.bf16.msra.mxu1 %v3258_v46  ;;  %v2267_v54 = vadd.f32 1.0, %v3178_v21 }
 0x391   : > { %2432 = vmatprep.subr.bf16.mxu0 %v3259_v23  ;;  %2473 = vmatprep.subr.bf16.mxu1 %v3260_v24 }
 0x392   : > { %3183 = vrcp.f32 %v2267_v54 }
 0x394   : > { %2433 = vmatpush1.bf16.msra.mxu0 %v3261_v36  ;;  %2474 = vmatpush1.bf16.msra.mxu1 %v3262_v49 }
 0x395   : > { %v3180_v5 = vpop.eup %3179  ;;  %2434 = vmatprep.subr.bf16.mxu0 %v3263_v50  ;;  %2475 = vmatprep.subr.bf16.mxu1 %v3264_v51  ;;  %v2415_v50 = vpop.permute.xlu1 %2414 }
 0x396   : > { %v2276_v26 = vmul.f32 %v3180_v5, %v3176_v3  ;;  %v3182_v52 = vpop.eup %3181  ;;  %vm2416_vm14 = vcmp.eq.s32.totalorder %v2415_v50, 1 }
 0x397   : > { %v2275_v55 = vmul.f32 %v3182_v52, %v4294_v58 }
 0x398   : > { %2435 = vmatpush1.bf16.msra.mxu0 %v3265_v57  ;;  %2476 = vmatpush1.bf16.msra.mxu1 %v3266_v59  ;;  %v4733_v57 = vld [vmem:[#allocation56_spill] sm:$0xff] }
 0x399   : > { %v2277_v62 = vadd.f32 %v2276_v26, %v2275_v55  ;;  %2436 = vmatprep.subr.bf16.mxu0 %v3267_v0  ;;  %2477 = vmatprep.subr.bf16.mxu1 %v3268_v1 }
 0x39b   : > { %3185 = vtanh.f32 %v2277_v62  ;;  %v4492_v2 = vsel %vm2287_vm13, %v2277_v62, %v4294_v58  ;;  %v3272_v58 = vld [vmem:[%s4574_s6 + $0xac] ss:$16 sps:$4 sm:$0xff]  }
 0x39c   : > { %2437 = vmatpush1.bf16.msra.mxu0 %v3269_v4  ;;  %2478 = vmatpush1.bf16.msra.mxu1 %v3270_v7  ;;  %v3184_v48 = vpop.eup %3183  ;;  %v4735_v4 = vld [vmem:[#allocation58_spill] sm:$0xff] }
 0x39d   : > { %2438 = vmatprep.subr.bf16.mxu0 %v3271_v17  ;;  %2479 = vmatprep.subr.bf16.mxu1 %v3272_v58  ;;  %v4736_v17 = vld [vmem:[#allocation59_spill] sm:$0xff] }
 0x3a0   : > { %2439 = vmatpush1.bf16.msra.mxu0 %v3273_v35  ;;  %2480 = vmatpush1.bf16.msra.mxu1 %v3274_v38 }
 0x3a1   : > { %2440 = vmatprep.subr.bf16.mxu0 %v3275_v43  ;;  %2481 = vmatprep.subr.bf16.mxu1 %v3276_v47 }
 0x3a4   : > { %2441 = vmatpush1.bf16.msra.mxu0 %v3277_v56  ;;  %2482 = vmatpush1.bf16.msra.mxu1 %v3278_v61 }
 0x3a5   : > { %v3186_v37 = vpop.eup %3185  ;;  %2442 = vmatprep.subr.bf16.mxu0 %v3279_v28  ;;  %2483 = vmatprep.subr.bf16.mxu1 %v3280_v41 }
 0x3a6   : > { %v2279_v45 = vmul.f32 %v3186_v37, %v3184_v48 }
 0x3a8   : > { %2443 = vmatpush1.bf16.msra.mxu0 %v3281_v53  ;;  %2484 = vmatpush1.bf16.msra.mxu1 %v3282_v25  ;;  %v4538_v6 = vsel %vm2287_vm13, %v2279_v45, %v4310_v63 }
 0x3a9   : > { %v2427_v31 = vpack.c.bf16 %v4538_v6, %v4538_v6 }
 0x3ab   : > { %2461 = vmatmul.mubr.bf16.vlgmr.msra.gmra.mrb[44].mxu0 %v2427_v31  ;;  %2502 = vmatmul.mubr.bf16.vlgmr.msra.gmra.mrb[44].mxu1 %v2427_v31 }
 0x45e   : > { %v2333_v8 = vpop.f32.mrb[40].mxu0  ;;  %v2374_v9 = vpop.f32.mrb[40].mxu1 }
 0x45f   : > { %v2381_v34 = vadd.f32 %v2333_v8, %v4729_v10  ;;  %v2383_v11 = vadd.f32 %v2374_v9, %v4730_v32  ;;  %v2335_v13 = vpop.f32.mrb[41].mxu0  ;;  %v2376_v15 = vpop.f32.mrb[41].mxu1 }
 0x460   : > { %v2382_v12 = vadd.f32 %v2335_v13, %v4731_v42  ;;  %v2384_v14 = vadd.f32 %v2376_v15, %v4732_v16  ;;  %v2337_v33 = vpop.f32.mrb[42].mxu0  ;;  %v2378_v27 = vpop.f32.mrb[42].mxu1 }
 0x461   : > { %v2853_v18 = vmul.f32 -1.442695, %v2381_v34  ;;  %v2338_v29 = vpop.f32.mrb[43].mxu0  ;;  %v2379_v20 = vpop.f32.mrb[43].mxu1  ;;  %v2855_v44 = vmul.f32 -1.442695, %v2383_v11 }
 0x462   : > { %v2854_v40 = vmul.f32 -1.442695, %v2382_v12  ;;  %v2543_v42 = vpop.permute.xlu0 %2542  ;;  %v2879_v20 = vpack.c.bf16 %v4209_v19, %v4310_v63 }
 0x463   : > { %3187 = vpow2.f32 %v2853_v18  ;;  %vm2544_vm15 = vcmp.eq.s32.totalorder %v2543_v42, 1 }
 0x464   : > { %3189 = vpow2.f32 %v2854_v40  ;;  %2882 = vst [vmem:[%s3382_s16 + $0x8] sm:$0xff] %v2879_v20  }
 0x465   : > { %3191 = vtanh.f32 %v2384_v14 }
 0x466   : > { %3193 = vpow2.f32 %v2855_v44 }
 0x46d   : > { %v3188_v22 = vpop.eup %3187 }
 0x46e   : > { %v2394_v46 = vadd.f32 1.0, %v3188_v22  ;;  %v3190_v23 = vpop.eup %3189 }
 0x46f   : > { %v2395_v24 = vadd.f32 1.0, %v3190_v23  ;;  %v3192_v3 = vpop.eup %3191 }
 0x470   : > { %3195 = vrcp.f32 %v2394_v46  ;;  %v3194_v21 = vpop.eup %3193 }
 0x471   : > { %3197 = vrcp.f32 %v2395_v24  ;;  %v2396_v26 = vadd.f32 1.0, %v3194_v21 }
 0x473   : > { %3199 = vrcp.f32 %v2396_v26 }
 0x47a   : > { %v3196_v5 = vpop.eup %3195 }
 0x47b   : > { %v2405_v36 = vmul.f32 %v3196_v5, %v3192_v3  ;;  %v3198_v49 = vpop.eup %3197 }
 0x47c   : > { %v2404_v51 = vmul.f32 %v3198_v49, %v4431_v39 }
 0x47d   : > { %v3200_v37 = vpop.eup %3199 }
 0x47e   : > { %v2462_v52 = vpop.f32.mrb[44].mxu0  ;;  %v2503_v54 = vpop.f32.mrb[44].mxu1  ;;  %v2406_v55 = vadd.f32 %v2405_v36, %v2404_v51 }
 0x47f   : > { %v2510_v59 = vadd.f32 %v2462_v52, %v4733_v57  ;;  %v2512_v62 = vadd.f32 %v2503_v54, %v4734_v60  ;;  %v2464_v0 = vpop.f32.mrb[45].mxu0  ;;  %v2505_v1 = vpop.f32.mrb[45].mxu1 }
 0x480   : > { %v2511_v7 = vadd.f32 %v2464_v0, %v4735_v4  ;;  %v2513_v58 = vadd.f32 %v2505_v1, %v4736_v17  ;;  %v2466_v35 = vpop.f32.mrb[46].mxu0  ;;  %v2507_v38 = vpop.f32.mrb[46].mxu1  ;;  %3201 = vtanh.f32 %v2406_v55  ;;  %v2418_v43 = vsel %vm2416_vm14, %v2406_v55, %v4431_v39 }
 0x481   : > { %v2856_v47 = vmul.f32 -1.442695, %v2510_v59  ;;  %v2467_v48 = vpop.f32.mrb[47].mxu0  ;;  %v2508_v56 = vpop.f32.mrb[47].mxu1  ;;  %2573 = vst [vmem:[#allocation7] sm:$0xff] %v2418_v43 }
 0x482   : > { %v2857_v61 = vmul.f32 -1.442695, %v2511_v7  ;;  %v2858_v41 = vmul.f32 -1.442695, %v2512_v62 }
 0x483   : > { %3203 = vpow2.f32 %v2856_v47 }
 0x484   : > { %3205 = vpow2.f32 %v2857_v61 }
 0x485   : > { %3207 = vtanh.f32 %v2513_v58 }
 0x486   : > { %3209 = vpow2.f32 %v2858_v41 }
 0x48a   : > { %v3202_v28 = vpop.eup %3201 }
 0x48b   : > { %v2408_v45 = vmul.f32 %v3202_v28, %v3200_v37 }
 0x48d   : > { %v3204_v53 = vpop.eup %3203  ;;  %v2417_v25 = vsel %vm2416_vm14, %v2408_v45, %v4435_v30 }
 0x48e   : > { %v2523_v31 = vadd.f32 1.0, %v3204_v53  ;;  %v3206_v8 = vpop.eup %3205  ;;  %v2869_v39 = vpack.c.bf16 %v2417_v25, %v4435_v30  ;;  %2572 = vst [vmem:[#allocation6] sm:$0xff] %v2417_v25 }
 0x48f   : > { %v2524_v9 = vadd.f32 1.0, %v3206_v8  ;;  %v3208_v10 = vpop.eup %3207 }
 0x490   : > { %3211 = vrcp.f32 %v2523_v31  ;;  %2881 = vst [vmem:[%s3377_s30 + $0x8] sm:$0xff] %v2869_v39   ;;  %v3210_v34 = vpop.eup %3209 }
 0x491   : > { %3213 = vrcp.f32 %v2524_v9  ;;  %v2525_v15 = vadd.f32 1.0, %v3210_v34 }
 0x493   : > { %3215 = vrcp.f32 %v2525_v15 }
 0x49a   : > { %v3212_v32 = vpop.eup %3211 }
 0x49b   : > { %v2534_v11 = vmul.f32 %v3212_v32, %v3208_v10  ;;  %v3214_v13 = vpop.eup %3213 }
 0x49c   : > { %v2533_v12 = vmul.f32 %v3214_v13, %v4492_v2 }
 0x49d   : > { %v3216_v14 = vpop.eup %3215 }
 0x49e   : > { %v2535_v16 = vadd.f32 %v2534_v11, %v2533_v12 }
 0x4a0   : > { %3217 = vtanh.f32 %v2535_v16  ;;  %v2546_v30 = vsel %vm2544_vm15, %v2535_v16, %v4492_v2 }
 0x4a1   : > { %2575 = vst [vmem:[#allocation9] sm:$0xff] %v2546_v30 }
 0x4aa   : > { %v3218_v33 = vpop.eup %3217 }
 0x4ab   : > { %v2537_v27 = vmul.f32 %v3218_v33, %v3216_v14 }
 0x4ad   : > { %v2545_v18 = vsel %vm2544_vm15, %v2537_v27, %v4538_v6 }
 0x4ae   : > { %v2874_v29 = vpack.c.bf16 %v4538_v6, %v2545_v18  ;;  %2574 = vst [vmem:[#allocation8] sm:$0xff] %v2545_v18 }
 0x4b0   : > { %2875 = vst [vmem:[%s3382_s16] sm:$0xff] %v2874_v29  }
 0x4b1 PF: > { %s21_s13 = sadd.s32 1, %s3289_s13  }
 0x4b2   : > { %p18_p6 = scmp.ge.s32.totalorder %s21_s13, 4  }
 0x4b4   :  { %20 = sbr.rel (!%p18_p6) target bundleno = 1 (0x1), region = 119 }

// kernel: lstm_sentiment_forward.3
= control target key start
LH: loop header
LB: loop body
LE: loop exit
PB: predicated region body
PF: predicated region fallthrough
CT: control target
= control target key end

     0   :  { %s3930_s13 = smov 0   ;;  %s5338_s0 = inlined_call_operand.vmem [shape: s32[8,1], index: 0, kind: input, shape index: {}]   ;;  %s5339_s1 = inlined_call_operand.vmem [shape: bf16[64,256], index: 1, kind: input, shape index: {}, may-alias: {1,2}]   ;;  %s5340_s2 = inlined_call_operand.vmem [shape: bf16[64,256], index: 2, kind: input, shape index: {}, may-alias: {1,2}]   ;;  %s5341_s3 = inlined_call_operand.vmem [shape: bf16[256,512], index: 3, kind: input, shape index: {}]   ;;  %s5342_s4 = inlined_call_operand.vmem [shape: bf16[256,512], index: 4, kind: input, shape index: {}]   ;;  %s5343_s5 = inlined_call_operand.vmem [shape: bf16[128,512], index: 5, kind: input, shape index: {}]   ;;  %s5344_s6 = inlined_call_operand.vmem [shape: bf16[128,512], index: 6, kind: input, shape index: {}]   ;;  %s5345_s7 = inlined_call_operand.vmem [shape: f32[1,512], index: 7, kind: input, shape index: {}]   ;;  %s5346_s8 = inlined_call_operand.vmem [shape: f32[1,512], index: 8, kind: input, shape index: {}]   ;;  %s5347_s9 = inlined_call_operand.vmem [shape: bf16[8,8,128], index: 9, kind: output, shape index: {0}]   ;;  %s5348_s10 = inlined_call_operand.vmem [shape: bf16[8,8,128], index: 10, kind: output, shape index: {1}]  }
   0x1 LB: > { %5391 = sst [smem:[#allocation10_spill]] %s3871_s13  ;;  %s3093_s14 = sadd.s32 4294967295, %s3871_s13   ;;  %s3871_s13 = sphi %s3930_s13, %s21_s13  }
   0x2   : > { %p3097_p0 = scmp.ge.s32.totalorder %s3871_s13, 1  ;;  %p335_p1 = scmp.lt.s32.totalorder %s3871_s13, 3 }
   0x4   : > { %p336_p2 = pnand %p3097_p0, %p335_p1 }
   0x6   : > { %339 = sbr.rel (%p336_p2) target bundleno = 1266 (0x4f2), region = 56 }
   0xd   : > { %s3938_s15 = sshll.u32 %s3093_s14, 2  ;;  %s394_s16 = ssub.s32 1, %s3093_s14 }
   0xe   : > { %p388_p3 = scmp.lt.s32.totalorder %s3938_s15, 7  ;;  %s3941_s17 = sshll.u32 %s394_s16, 2 }
   0xf   : > { %p396_p4 = scmp.lt.s32.totalorder %s3941_s17, 7  ;;  %p3108_p5 = scmp.ne.s32.totalorder %s3093_s14, 0 }
  0x10   : > { %s389_s18 = scalar_select %p388_p3, %s3938_s15, 7 }
  0x11   : > { %s397_s19 = scalar_select %p396_p4, %s3941_s17, 7 }
  0x12   : > { %s3337_s20 = sshll.u32 %s389_s18, 3  ;;  %s3105_s21 = sshll.u32 %s389_s18, 2  ;;  %v3873_v0 = vmov (!%p3108_p5), 0.0  }
  0x13   : > { %s3949_s24 = scalar_lea.vmem %s5339_s1, %s3337_s20  ;;  %s3338_s25 = sshll.u32 %s397_s19, 3  ;;  %422 = vst [vmem:[#allocation6] sm:$0xff] (!%p3108_p5), %v3873_v0  ;;  %423 = vst [vmem:[#allocation7] sm:$0xff] (!%p3108_p5), %v3873_v0 }
  0x14   : > { %s3954_s28 = scalar_lea.vmem %s5340_s2, %s3338_s25  ;;  %s3959_s11 = scalar_lea.vmem %s5347_s9, %s3105_s21  ;;  %424 = vst [vmem:[#allocation8] sm:$0xff] (!%p3108_p5), %v3873_v0  ;;  %425 = vst [vmem:[#allocation9] sm:$0xff] (!%p3108_p5), %v3873_v0 }
  0x15   : > { %s3107_s12 = sshll.u32 %s397_s19, 2  ;;  %421 = sbr.rel (%p3108_p5) target bundleno = 28 (0x1c), region = 60 }
  0x16   : > { %s3964_s18 = scalar_lea.vmem %s5348_s10, %s3107_s12 }
  0x1c PF: > { %v3373_v1 = vld [vmem:[%s5341_s3 + $0x4] ss:$16 sps:$4 sm:$0xff]   ;;  %v3375_v2 = vld [vmem:[%s5341_s3 + $0xc] ss:$16 sps:$4 sm:$0xff]   ;;  %v3377_v3 = vld [vmem:[%s5341_s3] ss:$16 sps:$4 sm:$0xff]  }
  0x1d   : > { %856 = vmatprep.subr.bf16.mxu0 %v3373_v1  ;;  %v3378_v4 = vld [vmem:[%s5341_s3 + $0x8] ss:$16 sps:$4 sm:$0xff]   ;;  %909 = vmatprep.subr.bf16.mxu1 %v3375_v2  ;;  %v3379_v5 = vld [vmem:[%s5341_s3 + $0x24] ss:$16 sps:$4 sm:$0xff]   ;;  %v3381_v6 = vld [vmem:[%s5341_s3 + $0x2c] ss:$16 sps:$4 sm:$0xff]  }
  0x1e   : > { %857 = vmatpush1.bf16.msra.mxu0 %v3377_v3  ;;  %910 = vmatpush1.bf16.msra.mxu1 %v3378_v4  ;;  %v3383_v7 = vld [vmem:[%s5341_s3 + $0x20] ss:$16 sps:$4 sm:$0xff]   ;;  %v3384_v8 = vld [vmem:[%s5341_s3 + $0x28] ss:$16 sps:$4 sm:$0xff]   ;;  %v3385_v9 = vld [vmem:[%s5341_s3 + $0x44] ss:$16 sps:$4 sm:$0xff]  }
  0x1f   : > { %858 = vmatprep.subr.bf16.mxu0 %v3379_v5  ;;  %911 = vmatprep.subr.bf16.mxu1 %v3381_v6  ;;  %v3387_v10 = vld [vmem:[%s5341_s3 + $0x4c] ss:$16 sps:$4 sm:$0xff]   ;;  %v3389_v11 = vld [vmem:[%s5341_s3 + $0x40] ss:$16 sps:$4 sm:$0xff]   ;;  %v3390_v12 = vld [vmem:[%s5341_s3 + $0x48] ss:$16 sps:$4 sm:$0xff]  }
  0x20   : > { %v3391_v13 = vld [vmem:[%s5341_s3 + $0x64] ss:$16 sps:$4 sm:$0xff]   ;;  %v3393_v14 = vld [vmem:[%s5341_s3 + $0x6c] ss:$16 sps:$4 sm:$0xff]   ;;  %v3395_v15 = vld [vmem:[%s5341_s3 + $0x60] ss:$16 sps:$4 sm:$0xff]  }
  0x21   : > { %v3396_v16 = vld [vmem:[%s5341_s3 + $0x68] ss:$16 sps:$4 sm:$0xff]   ;;  %v3397_v17 = vld [vmem:[%s5341_s3 + $0x84] ss:$16 sps:$4 sm:$0xff]   ;;  %v3399_v18 = vld [vmem:[%s5341_s3 + $0x8c] ss:$16 sps:$4 sm:$0xff]  }
  0x22   : > { %859 = vmatpush1.bf16.msra.mxu0 %v3383_v7  ;;  %912 = vmatpush1.bf16.msra.mxu1 %v3384_v8  ;;  %v3401_v19 = vld [vmem:[%s5341_s3 + $0x80] ss:$16 sps:$4 sm:$0xff]   ;;  %v3402_v20 = vld [vmem:[%s5341_s3 + $0x88] ss:$16 sps:$4 sm:$0xff]   ;;  %v3403_v21 = vld [vmem:[%s5341_s3 + $0xa4] ss:$16 sps:$4 sm:$0xff]  }
  0x23   : > { %860 = vmatprep.subr.bf16.mxu0 %v3385_v9  ;;  %913 = vmatprep.subr.bf16.mxu1 %v3387_v10  ;;  %v3405_v22 = vld [vmem:[%s5341_s3 + $0xac] ss:$16 sps:$4 sm:$0xff]   ;;  %v3407_v23 = vld [vmem:[%s5341_s3 + $0xa0] ss:$16 sps:$4 sm:$0xff]   ;;  %v3408_v24 = vld [vmem:[%s5341_s3 + $0xa8] ss:$16 sps:$4 sm:$0xff]  }
  0x24   : > { %v3409_v25 = vld [vmem:[%s5341_s3 + $0xc4] ss:$16 sps:$4 sm:$0xff]   ;;  %v3411_v26 = vld [vmem:[%s5341_s3 + $0xcc] ss:$16 sps:$4 sm:$0xff]   ;;  %v3413_v27 = vld [vmem:[%s5341_s3 + $0xc0] ss:$16 sps:$4 sm:$0xff]  }
  0x25   : > { %v3414_v28 = vld [vmem:[%s5341_s3 + $0xc8] ss:$16 sps:$4 sm:$0xff]   ;;  %v3415_v29 = vld [vmem:[%s5341_s3 + $0xe4] ss:$16 sps:$4 sm:$0xff]   ;;  %v3417_v30 = vld [vmem:[%s5341_s3 + $0xec] ss:$16 sps:$4 sm:$0xff]  }
  0x26   : > { %861 = vmatpush1.bf16.msra.mxu0 %v3389_v11  ;;  %914 = vmatpush1.bf16.msra.mxu1 %v3390_v12  ;;  %v3419_v31 = vld [vmem:[%s5341_s3 + $0xe0] ss:$16 sps:$4 sm:$0xff]   ;;  %v3420_v32 = vld [vmem:[%s5341_s3 + $0xe8] ss:$16 sps:$4 sm:$0xff]   ;;  %v3421_v33 = vld [vmem:[%s5341_s3 + $0x104] ss:$16 sps:$4 sm:$0xff]  }
  0x27   : > { %862 = vmatprep.subr.bf16.mxu0 %v3391_v13  ;;  %915 = vmatprep.subr.bf16.mxu1 %v3393_v14  ;;  %v3423_v34 = vld [vmem:[%s5341_s3 + $0x10c] ss:$16 sps:$4 sm:$0xff]   ;;  %v3425_v35 = vld [vmem:[%s5341_s3 + $0x100] ss:$16 sps:$4 sm:$0xff]   ;;  %v3426_v36 = vld [vmem:[%s5341_s3 + $0x108] ss:$16 sps:$4 sm:$0xff]  }
  0x28   : > { %v3427_v37 = vld [vmem:[%s5341_s3 + $0x124] ss:$16 sps:$4 sm:$0xff]   ;;  %v3429_v38 = vld [vmem:[%s5341_s3 + $0x12c] ss:$16 sps:$4 sm:$0xff]   ;;  %v5350_v39 = vmov 0   ;;  %s2168_s12 = sadd.s32 3, %s3941_s17 }
  0x29   : > { %3371 = vset.pattern.permute.xlu0 %v5350_v39  ;;  %3372 = vset.pattern.permute.xlu1 %v5350_v39  ;;  %v3431_v40 = vld [vmem:[%s5341_s3 + $0x120] ss:$16 sps:$4 sm:$0xff]   ;;  %v3432_v41 = vld [vmem:[%s5341_s3 + $0x128] ss:$16 sps:$4 sm:$0xff]   ;;  %v3433_v42 = vld [vmem:[%s5341_s3 + $0x144] ss:$16 sps:$4 sm:$0xff]  }
  0x2a   : > { %863 = vmatpush1.bf16.msra.mxu0 %v3395_v15  ;;  %916 = vmatpush1.bf16.msra.mxu1 %v3396_v16  ;;  %v3435_v43 = vld [vmem:[%s5341_s3 + $0x14c] ss:$16 sps:$4 sm:$0xff]   ;;  %v3437_v44 = vld [vmem:[%s5341_s3 + $0x140] ss:$16 sps:$4 sm:$0xff]   ;;  %v3438_v45 = vld [vmem:[%s5341_s3 + $0x148] ss:$16 sps:$4 sm:$0xff]  }
  0x2b   : > { %864 = vmatprep.subr.bf16.mxu0 %v3397_v17  ;;  %917 = vmatprep.subr.bf16.mxu1 %v3399_v18  ;;  %v3439_v46 = vld [vmem:[%s5341_s3 + $0x164] ss:$16 sps:$4 sm:$0xff]   ;;  %v3441_v47 = vld [vmem:[%s5341_s3 + $0x16c] ss:$16 sps:$4 sm:$0xff]   ;;  %v3443_v48 = vld [vmem:[%s5341_s3 + $0x160] ss:$16 sps:$4 sm:$0xff]  }
  0x2c   : > { %v3444_v49 = vld [vmem:[%s5341_s3 + $0x168] ss:$16 sps:$4 sm:$0xff]   ;;  %v3471_v50 = vld [vmem:[%s3949_s24 + $0x4] ss:$8 sps:$4 sm:$0xff]   ;;  %v3449_v53 = vld [vmem:[%s5341_s3 + $0x180] ss:$16 sps:$4 sm:$0xff]  }
  0x2d   : > { %v3445_v51 = vld [vmem:[%s5341_s3 + $0x184] ss:$16 sps:$4 sm:$0xff]   ;;  %v3447_v52 = vld [vmem:[%s5341_s3 + $0x18c] ss:$16 sps:$4 sm:$0xff]   ;;  %888 = vmatprep.mubr.bf16.mxu0 %v3471_v50  ;;  %941 = vmatprep.mubr.bf16.mxu1 %v3471_v50  ;;  %v3450_v54 = vld [vmem:[%s5341_s3 + $0x188] ss:$16 sps:$4 sm:$0xff]  }
  0x2e   : > { %865 = vmatpush1.bf16.msra.mxu0 %v3401_v19  ;;  %918 = vmatpush1.bf16.msra.mxu1 %v3402_v20  ;;  %v3451_v55 = vld [vmem:[%s5341_s3 + $0x1a4] ss:$16 sps:$4 sm:$0xff]   ;;  %v3453_v56 = vld [vmem:[%s5341_s3 + $0x1ac] ss:$16 sps:$4 sm:$0xff]   ;;  %v3455_v57 = vld [vmem:[%s5341_s3 + $0x1a0] ss:$16 sps:$4 sm:$0xff]  }
  0x2f   : > { %866 = vmatprep.subr.bf16.mxu0 %v3403_v21  ;;  %919 = vmatprep.subr.bf16.mxu1 %v3405_v22  ;;  %v3456_v58 = vld [vmem:[%s5341_s3 + $0x1a8] ss:$16 sps:$4 sm:$0xff]   ;;  %v3457_v59 = vld [vmem:[%s5341_s3 + $0x1c4] ss:$16 sps:$4 sm:$0xff]   ;;  %v3459_v60 = vld [vmem:[%s5341_s3 + $0x1cc] ss:$16 sps:$4 sm:$0xff]  }
  0x30   : > { %v3461_v61 = vld [vmem:[%s5341_s3 + $0x1c0] ss:$16 sps:$4 sm:$0xff]   ;;  %v3462_v62 = vld [vmem:[%s5341_s3 + $0x1c8] ss:$16 sps:$4 sm:$0xff]   ;;  %v3463_v63 = vld [vmem:[%s5341_s3 + $0x1e4] ss:$16 sps:$4 sm:$0xff]  }
  0x31   : > { %v3465_v0 = vld [vmem:[%s5341_s3 + $0x1ec] ss:$16 sps:$4 sm:$0xff]   ;;  %v3467_v1 = vld [vmem:[%s5341_s3 + $0x1e0] ss:$16 sps:$4 sm:$0xff]   ;;  %v3468_v2 = vld [vmem:[%s5341_s3 + $0x1e8] ss:$16 sps:$4 sm:$0xff]  }
  0x32   : > { %867 = vmatpush1.bf16.msra.mxu0 %v3407_v23  ;;  %920 = vmatpush1.bf16.msra.mxu1 %v3408_v24  ;;  %v3474_v3 = vld [vmem:[%s5342_s4 + $0x4] ss:$16 sps:$4 sm:$0xff]   ;;  %v3477_v4 = vld [vmem:[%s5342_s4 + $0xc] ss:$16 sps:$4 sm:$0xff]   ;;  %v3469_v5 = vld [vmem:[%s3949_s24] ss:$8 sps:$4 sm:$0xff]  }
  0x33   : > { %868 = vmatprep.subr.bf16.mxu0 %v3409_v25  ;;  %921 = vmatprep.subr.bf16.mxu1 %v3411_v26  ;;  %v3472_v6 = vld [vmem:[%s5342_s4] ss:$16 sps:$4 sm:$0xff]   ;;  %v3475_v7 = vld [vmem:[%s5342_s4 + $0x8] ss:$16 sps:$4 sm:$0xff]   ;;  %v3480_v8 = vld [vmem:[%s5342_s4 + $0x24] ss:$16 sps:$4 sm:$0xff]  }
  0x34   : > { %v3483_v9 = vld [vmem:[%s5342_s4 + $0x2c] ss:$16 sps:$4 sm:$0xff]   ;;  %v3478_v10 = vld [vmem:[%s5342_s4 + $0x20] ss:$16 sps:$4 sm:$0xff]   ;;  %v3481_v11 = vld [vmem:[%s5342_s4 + $0x28] ss:$16 sps:$4 sm:$0xff]  }
  0x35   : > { %v3486_v12 = vld [vmem:[%s5342_s4 + $0x44] ss:$16 sps:$4 sm:$0xff]   ;;  %v3489_v13 = vld [vmem:[%s5342_s4 + $0x4c] ss:$16 sps:$4 sm:$0xff]   ;;  %v3484_v14 = vld [vmem:[%s5342_s4 + $0x40] ss:$16 sps:$4 sm:$0xff]  }
  0x36   : > { %869 = vmatpush1.bf16.msra.mxu0 %v3413_v27  ;;  %922 = vmatpush1.bf16.msra.mxu1 %v3414_v28  ;;  %v3487_v15 = vld [vmem:[%s5342_s4 + $0x48] ss:$16 sps:$4 sm:$0xff]   ;;  %v3492_v16 = vld [vmem:[%s5342_s4 + $0x64] ss:$16 sps:$4 sm:$0xff]   ;;  %v3495_v17 = vld [vmem:[%s5342_s4 + $0x6c] ss:$16 sps:$4 sm:$0xff]  }
  0x37   : > { %870 = vmatprep.subr.bf16.mxu0 %v3415_v29  ;;  %923 = vmatprep.subr.bf16.mxu1 %v3417_v30  ;;  %v3490_v18 = vld [vmem:[%s5342_s4 + $0x60] ss:$16 sps:$4 sm:$0xff]   ;;  %v3493_v19 = vld [vmem:[%s5342_s4 + $0x68] ss:$16 sps:$4 sm:$0xff]   ;;  %v3498_v20 = vld [vmem:[%s5342_s4 + $0x84] ss:$16 sps:$4 sm:$0xff]  }
  0x38   : > { %v3501_v21 = vld [vmem:[%s5342_s4 + $0x8c] ss:$16 sps:$4 sm:$0xff]   ;;  %v3496_v22 = vld [vmem:[%s5342_s4 + $0x80] ss:$16 sps:$4 sm:$0xff]   ;;  %v3499_v23 = vld [vmem:[%s5342_s4 + $0x88] ss:$16 sps:$4 sm:$0xff]  }
  0x39   : > { %v3504_v24 = vld [vmem:[%s5342_s4 + $0xa4] ss:$16 sps:$4 sm:$0xff]   ;;  %v3507_v25 = vld [vmem:[%s5342_s4 + $0xac] ss:$16 sps:$4 sm:$0xff]   ;;  %v3502_v26 = vld [vmem:[%s5342_s4 + $0xa0] ss:$16 sps:$4 sm:$0xff]  }
  0x3a   : > { %871 = vmatpush1.bf16.msra.mxu0 %v3419_v31  ;;  %924 = vmatpush1.bf16.msra.mxu1 %v3420_v32  ;;  %v3556_v27 = vld [vmem:[%s3949_s24 + $0x14] ss:$8 sps:$4 sm:$0xff]   ;;  %v3505_v28 = vld [vmem:[%s5342_s4 + $0xa8] ss:$16 sps:$4 sm:$0xff]   ;;  %v3508_v32 = vld [vmem:[%s5342_s4 + $0xc0] ss:$16 sps:$4 sm:$0xff]  }
  0x3b   : > { %872 = vmatprep.subr.bf16.mxu0 %v3421_v33  ;;  %925 = vmatprep.subr.bf16.mxu1 %v3423_v34  ;;  %v3558_v29 = vld [vmem:[%s3949_s24 + $0x10] ss:$8 sps:$4 sm:$0xff]   ;;  %v3510_v30 = vld [vmem:[%s5342_s4 + $0xc4] ss:$16 sps:$4 sm:$0xff]   ;;  %v3513_v31 = vld [vmem:[%s5342_s4 + $0xcc] ss:$16 sps:$4 sm:$0xff]  }
  0x3c   : > { %v3511_v33 = vld [vmem:[%s5342_s4 + $0xc8] ss:$16 sps:$4 sm:$0xff]   ;;  %v3516_v34 = vld [vmem:[%s5342_s4 + $0xe4] ss:$16 sps:$4 sm:$0xff]   ;;  %v3532_v50 = vld [vmem:[%s5342_s4 + $0x140] ss:$16 sps:$4 sm:$0xff]  }
  0x3d   : > { %s2557_s16 = sadd.s32 2, %s3938_s15  ;;  %s2298_s19 = sadd.s32 1, %s3938_s15 }
  0x3e   : > { %873 = vmatpush1.bf16.msra.mxu0 %v3425_v35  ;;  %926 = vmatpush1.bf16.msra.mxu1 %v3426_v36  ;;  %v3519_v35 = vld [vmem:[%s5342_s4 + $0xec] ss:$16 sps:$4 sm:$0xff]   ;;  %s2428_s14 = sadd.s32 2, %s3941_s17  ;;  %s2686_s25 = sadd.s32 1, %s3941_s17 }
  0x3f   : > { %874 = vmatprep.subr.bf16.mxu0 %v3427_v37  ;;  %927 = vmatprep.subr.bf16.mxu1 %v3429_v38  ;;  %v3573_v36 = vld [vmem:[%s3954_s28 + $0x4] ss:$8 sps:$4 sm:$0xff]   ;;  %v3514_v37 = vld [vmem:[%s5342_s4 + $0xe0] ss:$16 sps:$4 sm:$0xff]   ;;  %v3517_v38 = vld [vmem:[%s5342_s4 + $0xe8] ss:$16 sps:$4 sm:$0xff]  }
  0x42   : > { %875 = vmatpush1.bf16.msra.mxu0 %v3431_v40  ;;  %928 = vmatpush1.bf16.msra.mxu1 %v3432_v41  ;;  %v3522_v40 = vld [vmem:[%s5342_s4 + $0x104] ss:$16 sps:$4 sm:$0xff]   ;;  %v3525_v41 = vld [vmem:[%s5342_s4 + $0x10c] ss:$16 sps:$4 sm:$0xff]  }
  0x43   : > { %876 = vmatprep.subr.bf16.mxu0 %v3433_v42  ;;  %929 = vmatprep.subr.bf16.mxu1 %v3435_v43  ;;  %v3520_v42 = vld [vmem:[%s5342_s4 + $0x100] ss:$16 sps:$4 sm:$0xff]   ;;  %v3523_v43 = vld [vmem:[%s5342_s4 + $0x108] ss:$16 sps:$4 sm:$0xff]  }
  0x46   : > { %877 = vmatpush1.bf16.msra.mxu0 %v3437_v44  ;;  %930 = vmatpush1.bf16.msra.mxu1 %v3438_v45  ;;  %v3528_v44 = vld [vmem:[%s5342_s4 + $0x124] ss:$16 sps:$4 sm:$0xff]   ;;  %v3531_v45 = vld [vmem:[%s5342_s4 + $0x12c] ss:$16 sps:$4 sm:$0xff]  }
  0x47   : > { %878 = vmatprep.subr.bf16.mxu0 %v3439_v46  ;;  %931 = vmatprep.subr.bf16.mxu1 %v3441_v47  ;;  %v3526_v46 = vld [vmem:[%s5342_s4 + $0x120] ss:$16 sps:$4 sm:$0xff]   ;;  %v3529_v47 = vld [vmem:[%s5342_s4 + $0x128] ss:$16 sps:$4 sm:$0xff]  }
  0x4a   : > { %879 = vmatpush1.bf16.msra.mxu0 %v3443_v48  ;;  %932 = vmatpush1.bf16.msra.mxu1 %v3444_v49  ;;  %v3534_v48 = vld [vmem:[%s5342_s4 + $0x144] ss:$16 sps:$4 sm:$0xff]   ;;  %v3537_v49 = vld [vmem:[%s5342_s4 + $0x14c] ss:$16 sps:$4 sm:$0xff]  }
  0x4b   : > { %880 = vmatprep.subr.bf16.mxu0 %v3445_v51  ;;  %933 = vmatprep.subr.bf16.mxu1 %v3447_v52  ;;  %v3535_v51 = vld [vmem:[%s5342_s4 + $0x148] ss:$16 sps:$4 sm:$0xff]   ;;  %v3540_v52 = vld [vmem:[%s5342_s4 + $0x164] ss:$16 sps:$4 sm:$0xff]  }
  0x4e   : > { %881 = vmatpush1.bf16.msra.mxu0 %v3449_v53  ;;  %934 = vmatpush1.bf16.msra.mxu1 %v3450_v54  ;;  %v3543_v53 = vld [vmem:[%s5342_s4 + $0x16c] ss:$16 sps:$4 sm:$0xff]   ;;  %v3538_v54 = vld [vmem:[%s5342_s4 + $0x160] ss:$16 sps:$4 sm:$0xff]  }
  0x4f   : > { %882 = vmatprep.subr.bf16.mxu0 %v3451_v55  ;;  %935 = vmatprep.subr.bf16.mxu1 %v3453_v56  ;;  %v3541_v55 = vld [vmem:[%s5342_s4 + $0x168] ss:$16 sps:$4 sm:$0xff]   ;;  %v3546_v56 = vld [vmem:[%s5342_s4 + $0x184] ss:$16 sps:$4 sm:$0xff]  }
  0x52   : > { %883 = vmatpush1.bf16.msra.mxu0 %v3455_v57  ;;  %936 = vmatpush1.bf16.msra.mxu1 %v3456_v58  ;;  %v3549_v57 = vld [vmem:[%s5342_s4 + $0x18c] ss:$16 sps:$4 sm:$0xff]   ;;  %v3544_v58 = vld [vmem:[%s5342_s4 + $0x180] ss:$16 sps:$4 sm:$0xff]  }
  0x53   : > { %884 = vmatprep.subr.bf16.mxu0 %v3457_v59  ;;  %937 = vmatprep.subr.bf16.mxu1 %v3459_v60  ;;  %v3547_v59 = vld [vmem:[%s5342_s4 + $0x188] ss:$16 sps:$4 sm:$0xff]   ;;  %v3552_v60 = vld [vmem:[%s5342_s4 + $0x1a4] ss:$16 sps:$4 sm:$0xff]  }
  0x56   : > { %885 = vmatpush1.bf16.msra.mxu0 %v3461_v61  ;;  %938 = vmatpush1.bf16.msra.mxu1 %v3462_v62  ;;  %v3555_v61 = vld [vmem:[%s5342_s4 + $0x1ac] ss:$16 sps:$4 sm:$0xff]   ;;  %v3550_v62 = vld [vmem:[%s5342_s4 + $0x1a0] ss:$16 sps:$4 sm:$0xff]  }
  0x57   : > { %886 = vmatprep.subr.bf16.mxu0 %v3463_v63  ;;  %939 = vmatprep.subr.bf16.mxu1 %v3465_v0  ;;  %v3553_v63 = vld [vmem:[%s5342_s4 + $0x1a8] ss:$16 sps:$4 sm:$0xff]   ;;  %v3561_v0 = vld [vmem:[%s5342_s4 + $0x1c4] ss:$16 sps:$4 sm:$0xff]  }
  0x5a   : > { %887 = vmatpush1.bf16.msra.mxu0 %v3467_v1  ;;  %940 = vmatpush1.bf16.msra.mxu1 %v3468_v2  ;;  %v3564_v1 = vld [vmem:[%s5342_s4 + $0x1cc] ss:$16 sps:$4 sm:$0xff]   ;;  %v3559_v2 = vld [vmem:[%s5342_s4 + $0x1c0] ss:$16 sps:$4 sm:$0xff]  }
  0x5b   : > { %1408 = vmatprep.subr.bf16.mxu0 %v3474_v3  ;;  %1461 = vmatprep.subr.bf16.mxu1 %v3477_v4  ;;  %v3562_v3 = vld [vmem:[%s5342_s4 + $0x1c8] ss:$16 sps:$4 sm:$0xff]   ;;  %v3567_v4 = vld [vmem:[%s5342_s4 + $0x1e4] ss:$16 sps:$4 sm:$0xff]  }
  0x5d   : > { %889 = vmatmul.mubr.bf16.vlgmr.msra.gmra.mrb[0].mxu0 %v3469_v5  ;;  %942 = vmatmul.mubr.bf16.vlgmr.msra.gmra.mrb[0].mxu1 %v3469_v5  ;;  %v3570_v5 = vld [vmem:[%s5342_s4 + $0x1ec] ss:$16 sps:$4 sm:$0xff]  }
  0x5e   : > { %1409 = vmatpush1.bf16.msra.mxu0 %v3472_v6  ;;  %1462 = vmatpush1.bf16.msra.mxu1 %v3475_v7  ;;  %v3565_v6 = vld [vmem:[%s5342_s4 + $0x1e0] ss:$16 sps:$4 sm:$0xff]   ;;  %v3568_v7 = vld [vmem:[%s5342_s4 + $0x1e8] ss:$16 sps:$4 sm:$0xff]  }
  0x5f   : > { %1410 = vmatprep.subr.bf16.mxu0 %v3480_v8  ;;  %1463 = vmatprep.subr.bf16.mxu1 %v3483_v9  ;;  %v4360_v8 = vld [vmem:[%s5343_s5 + $0x4] ss:$16 sps:$4 sm:$0xff]   ;;  %v4365_v9 = vld [vmem:[%s5343_s5 + $0xc] ss:$16 sps:$4 sm:$0xff]  }
  0x60   : > { %898 = vmatprep.mubr.bf16.mxu0 %v3556_v27  ;;  %951 = vmatprep.mubr.bf16.mxu1 %v3556_v27  ;;  %v4457_v27 = vld [vmem:[%s5343_s5 + $0x84] ss:$16 sps:$4 sm:$0xff]  }
  0x61   : > { %5403 = vst [vmem:[#allocation22_spill] sm:$0xff] %v4457_v27 }
  0x62   : > { %1411 = vmatpush1.bf16.msra.mxu0 %v3478_v10  ;;  %1464 = vmatpush1.bf16.msra.mxu1 %v3481_v11  ;;  %v3571_v10 = vld [vmem:[%s3954_s28] ss:$8 sps:$4 sm:$0xff]  }
  0x63   : > { %1412 = vmatprep.subr.bf16.mxu0 %v3486_v12  ;;  %1465 = vmatprep.subr.bf16.mxu1 %v3489_v13  ;;  %v4371_v11 = vld [vmem:[%s5343_s5] ss:$16 sps:$4 sm:$0xff]   ;;  %v4376_v12 = vld [vmem:[%s5343_s5 + $0x8] ss:$16 sps:$4 sm:$0xff]   ;;  %v4381_v13 = vld [vmem:[%s5343_s5 + $0x24] ss:$16 sps:$4 sm:$0xff]  }
  0x65   : > { %899 = vmatmul.mubr.bf16.gmra.mrb[4].mxu0 %v3558_v29  ;;  %952 = vmatmul.mubr.bf16.gmra.mrb[4].mxu1 %v3558_v29  ;;  %v4471_v29 = vld [vmem:[%s5343_s5 + $0x80] ss:$16 sps:$4 sm:$0xff]  }
  0x66   : > { %1413 = vmatpush1.bf16.msra.mxu0 %v3484_v14  ;;  %1466 = vmatpush1.bf16.msra.mxu1 %v3487_v15  ;;  %v4388_v14 = vld [vmem:[%s5343_s5 + $0x2c] ss:$16 sps:$4 sm:$0xff]   ;;  %5405 = vst [vmem:[#allocation24_spill] sm:$0xff] %v4471_v29 }
  0x67   : > { %1414 = vmatprep.subr.bf16.mxu0 %v3492_v16  ;;  %1467 = vmatprep.subr.bf16.mxu1 %v3495_v17  ;;  %5392 = vst [vmem:[#allocation11_spill] sm:$0xff] %v4388_v14  ;;  %v3608_v15 = vld [vmem:[%s3954_s28 + $0x14] ss:$8 sps:$4 sm:$0xff]   ;;  %v4394_v16 = vld [vmem:[%s5343_s5 + $0x20] ss:$16 sps:$4 sm:$0xff]  }
  0x68   : > { %1440 = vmatprep.mubr.bf16.mxu0 %v3573_v36  ;;  %1493 = vmatprep.mubr.bf16.mxu1 %v3573_v36  ;;  %5393 = vst [vmem:[#allocation12_spill] sm:$0xff] %v4394_v16  ;;  %v4401_v17 = vld [vmem:[%s5343_s5 + $0x28] ss:$16 sps:$4 sm:$0xff]   ;;  %v1880_v36 = vstv %s3938_s15 }
  0x69   : > { %5394 = vst [vmem:[#allocation13_spill] sm:$0xff] %v4401_v17 }
  0x6a   : > { %1415 = vmatpush1.bf16.msra.mxu0 %v3490_v18  ;;  %1468 = vmatpush1.bf16.msra.mxu1 %v3493_v19  ;;  %v4408_v18 = vld [vmem:[%s5343_s5 + $0x44] ss:$16 sps:$4 sm:$0xff]   ;;  %v4413_v19 = vld [vmem:[%s5343_s5 + $0x4c] ss:$16 sps:$4 sm:$0xff]  }
  0x6b   : > { %1416 = vmatprep.subr.bf16.mxu0 %v3498_v20  ;;  %1469 = vmatprep.subr.bf16.mxu1 %v3501_v21  ;;  %5395 = vst [vmem:[#allocation14_spill] sm:$0xff] %v4408_v18  ;;  %5396 = vst [vmem:[#allocation15_spill] sm:$0xff] %v4413_v19  ;;  %v3612_v20 = vld [vmem:[%s3954_s28 + $0x10] ss:$8 sps:$4 sm:$0xff]   ;;  %s2815_s28 = sadd.s32 3, %s3938_s15 }
  0x6c   : > { %v4421_v21 = vld [vmem:[%s5343_s5 + $0x40] ss:$16 sps:$4 sm:$0xff]  }
  0x6d   : > { %5397 = vst [vmem:[#allocation16_spill] sm:$0xff] %v4421_v21 }
  0x6e   : > { %1417 = vmatpush1.bf16.msra.mxu0 %v3496_v22  ;;  %1470 = vmatpush1.bf16.msra.mxu1 %v3499_v23  ;;  %v4426_v22 = vld [vmem:[%s5343_s5 + $0x48] ss:$16 sps:$4 sm:$0xff]   ;;  %v4433_v23 = vld [vmem:[%s5343_s5 + $0x64] ss:$16 sps:$4 sm:$0xff]  }
  0x6f   : > { %1418 = vmatprep.subr.bf16.mxu0 %v3504_v24  ;;  %1471 = vmatprep.subr.bf16.mxu1 %v3507_v25  ;;  %5398 = vst [vmem:[#allocation17_spill] sm:$0xff] %v4426_v22  ;;  %5399 = vst [vmem:[#allocation18_spill] sm:$0xff] %v4433_v23  ;;  %v4438_v24 = vld [vmem:[%s5343_s5 + $0x6c] ss:$16 sps:$4 sm:$0xff]   ;;  %v4445_v25 = vld [vmem:[%s5343_s5 + $0x60] ss:$16 sps:$4 sm:$0xff]  }
  0x70   : > { %5400 = vst [vmem:[#allocation19_spill] sm:$0xff] %v4438_v24  ;;  %5401 = vst [vmem:[#allocation20_spill] sm:$0xff] %v4445_v25 }
  0x72   : > { %1419 = vmatpush1.bf16.msra.mxu0 %v3502_v26  ;;  %1472 = vmatpush1.bf16.msra.mxu1 %v3505_v28  ;;  %v4450_v26 = vld [vmem:[%s5343_s5 + $0x68] ss:$16 sps:$4 sm:$0xff]   ;;  %v4462_v28 = vld [vmem:[%s5343_s5 + $0x8c] ss:$16 sps:$4 sm:$0xff]  }
  0x73   : > { %1420 = vmatprep.subr.bf16.mxu0 %v3510_v30  ;;  %1473 = vmatprep.subr.bf16.mxu1 %v3513_v31  ;;  %5402 = vst [vmem:[#allocation21_spill] sm:$0xff] %v4450_v26  ;;  %5404 = vst [vmem:[#allocation23_spill] sm:$0xff] %v4462_v28  ;;  %v4476_v30 = vld [vmem:[%s5343_s5 + $0x88] ss:$16 sps:$4 sm:$0xff]   ;;  %v4483_v31 = vld [vmem:[%s5343_s5 + $0xa4] ss:$16 sps:$4 sm:$0xff]  }
  0x74   : > { %5406 = vst [vmem:[#allocation25_spill] sm:$0xff] %v4476_v30  ;;  %5407 = vst [vmem:[#allocation26_spill] sm:$0xff] %v4483_v31 }
  0x76   : > { %1421 = vmatpush1.bf16.msra.mxu0 %v3508_v32  ;;  %1474 = vmatpush1.bf16.msra.mxu1 %v3511_v33  ;;  %v4488_v32 = vld [vmem:[%s5343_s5 + $0xac] ss:$16 sps:$4 sm:$0xff]   ;;  %v4495_v33 = vld [vmem:[%s5343_s5 + $0xa0] ss:$16 sps:$4 sm:$0xff]  }
  0x77   : > { %1422 = vmatprep.subr.bf16.mxu0 %v3516_v34  ;;  %1475 = vmatprep.subr.bf16.mxu1 %v3519_v35  ;;  %5408 = vst [vmem:[#allocation27_spill] sm:$0xff] %v4488_v32  ;;  %5409 = vst [vmem:[#allocation28_spill] sm:$0xff] %v4495_v33  ;;  %v4500_v34 = vld [vmem:[%s5343_s5 + $0xa8] ss:$16 sps:$4 sm:$0xff]   ;;  %v4505_v35 = vld [vmem:[%s5338_s0] sm:$0xff] }
  0x78   : > { %5410 = vst [vmem:[#allocation29_spill] sm:$0xff] %v4500_v34  ;;  %vm1881_vm0 = vcmp.lt.s32.totalorder %v1880_v36, %v4505_v35  ;;  %v4698_v36 = vld [vmem:[%s5344_s6 + $0xa4] ss:$16 sps:$4 sm:$0xff]  }
  0x7a   : > { %1423 = vmatpush1.bf16.msra.mxu0 %v3514_v37  ;;  %1476 = vmatpush1.bf16.msra.mxu1 %v3517_v38  ;;  %v4513_v37 = vld [vmem:[%s5343_s5 + $0xc4] ss:$16 sps:$4 sm:$0xff]   ;;  %v4518_v38 = vld [vmem:[%s5343_s5 + $0xcc] ss:$16 sps:$4 sm:$0xff]  }
  0x7b   : > { %1424 = vmatprep.subr.bf16.mxu0 %v3522_v40  ;;  %1477 = vmatprep.subr.bf16.mxu1 %v3525_v41  ;;  %5411 = vst [vmem:[#allocation30_spill] sm:$0xff] %v4513_v37  ;;  %5412 = vst [vmem:[#allocation31_spill] sm:$0xff] %v4518_v38  ;;  %v1882_v40 = vsel %vm1881_vm0, 1, %v5350_v39  ;;  %v4527_v41 = vld [vmem:[%s5343_s5 + $0xc0] ss:$16 sps:$4 sm:$0xff]  }
  0x7c   : > { %1884 = vperm.xlu0 %3371, %v1882_v40   ;;  %5413 = vst [vmem:[#allocation32_spill] sm:$0xff] %v4527_v41  ;;  %v4703_v40 = vld [vmem:[%s5344_s6 + $0xac] ss:$16 sps:$4 sm:$0xff]  }
  0x7e   : > { %1425 = vmatpush1.bf16.msra.mxu0 %v3520_v42  ;;  %1478 = vmatpush1.bf16.msra.mxu1 %v3523_v43  ;;  %v4532_v42 = vld [vmem:[%s5343_s5 + $0xc8] ss:$16 sps:$4 sm:$0xff]   ;;  %v4539_v43 = vld [vmem:[%s5343_s5 + $0xe4] ss:$16 sps:$4 sm:$0xff]  }
  0x7f   : > { %1426 = vmatprep.subr.bf16.mxu0 %v3528_v44  ;;  %1479 = vmatprep.subr.bf16.mxu1 %v3531_v45  ;;  %5414 = vst [vmem:[#allocation33_spill] sm:$0xff] %v4532_v42  ;;  %5415 = vst [vmem:[#allocation34_spill] sm:$0xff] %v4539_v43  ;;  %v4544_v44 = vld [vmem:[%s5343_s5 + $0xec] ss:$16 sps:$4 sm:$0xff]   ;;  %v2169_v45 = vstv %s2168_s12 }
  0x80   : > { %5416 = vst [vmem:[#allocation35_spill] sm:$0xff] %v4544_v44  ;;  %vm2170_vm1 = vcmp.lt.s32.totalorder %v2169_v45, %v4505_v35  ;;  %v4710_v45 = vld [vmem:[%s5344_s6 + $0xa0] ss:$16 sps:$4 sm:$0xff]  }
  0x82   : > { %1427 = vmatpush1.bf16.msra.mxu0 %v3526_v46  ;;  %1480 = vmatpush1.bf16.msra.mxu1 %v3529_v47  ;;  %v2558_v46 = vstv %s2557_s16  ;;  %v4554_v47 = vld [vmem:[%s5343_s5 + $0xe0] ss:$16 sps:$4 sm:$0xff]  }
  0x83   : > { %1428 = vmatprep.subr.bf16.mxu0 %v3534_v48  ;;  %1481 = vmatprep.subr.bf16.mxu1 %v3537_v49  ;;  %5417 = vst [vmem:[#allocation36_spill] sm:$0xff] %v4554_v47  ;;  %v4559_v48 = vld [vmem:[%s5343_s5 + $0xe8] ss:$16 sps:$4 sm:$0xff]   ;;  %v4561_v49 = vld [vmem:[#allocation6] sm:$0xff]  ;;  %vm2559_vm2 = vcmp.lt.s32.totalorder %v2558_v46, %v4505_v35 }
  0x84   : > { %5418 = vst [vmem:[#allocation37_spill] sm:$0xff] %v4559_v48  ;;  %v4715_v46 = vld [vmem:[%s5344_s6 + $0xa8] ss:$16 sps:$4 sm:$0xff]  }
  0x85   : > { %5421 = vst [vmem:[#allocation40_spill] sm:$0xff] %v4715_v46 }
  0x86   : > { %1429 = vmatpush1.bf16.msra.mxu0 %v3532_v50  ;;  %1482 = vmatpush1.bf16.msra.mxu1 %v3535_v51  ;;  %v2171_v50 = vsel %vm2170_vm1, 1, %v5350_v39  ;;  %v4570_v51 = vld [vmem:[%s5344_s6 + $0x4] ss:$16 sps:$4 sm:$0xff]  }
  0x87   : > { %1430 = vmatprep.subr.bf16.mxu0 %v3540_v52  ;;  %1483 = vmatprep.subr.bf16.mxu1 %v3543_v53  ;;  %5419 = vst [vmem:[#allocation38_spill] sm:$0xff] %v4570_v51  ;;  %v4575_v52 = vld [vmem:[%s5344_s6 + $0xc] ss:$16 sps:$4 sm:$0xff]   ;;  %v2944_v53 = vstv %s3941_s17 }
  0x88   : > { %5420 = vst [vmem:[#allocation39_spill] sm:$0xff] %v4575_v52  ;;  %2173 = vperm.xlu0 %3371, %v2171_v50   ;;  %vm2945_vm3 = vcmp.lt.s32.totalorder %v2944_v53, %v4505_v35  ;;  %v4722_v50 = vld [vmem:[%s5344_s6 + $0xc4] ss:$16 sps:$4 sm:$0xff]   ;;  %v4727_v53 = vld [vmem:[%s5344_s6 + $0xcc] ss:$16 sps:$4 sm:$0xff]  }
  0x89   : > { %5422 = vst [vmem:[#allocation41_spill] sm:$0xff] %v4722_v50  ;;  %5423 = vst [vmem:[#allocation42_spill] sm:$0xff] %v4727_v53 }
  0x8a   : > { %1431 = vmatpush1.bf16.msra.mxu0 %v3538_v54  ;;  %1484 = vmatpush1.bf16.msra.mxu1 %v3541_v55  ;;  %v1609_v54 = vpack.c.bf16 %v4561_v49, %v4561_v49  ;;  %v2560_v55 = vsel %vm2559_vm2, 1, %v5350_v39 }
  0x8b   : > { %1432 = vmatprep.subr.bf16.mxu0 %v3546_v56  ;;  %1485 = vmatprep.subr.bf16.mxu1 %v3549_v57  ;;  %v4586_v56 = vld [vmem:[%s5344_s6] ss:$16 sps:$4 sm:$0xff]   ;;  %v4591_v57 = vld [vmem:[%s5344_s6 + $0x8] ss:$16 sps:$4 sm:$0xff]  }
  0x8c   : > { %2562 = vperm.xlu0 %3371, %v2560_v55   ;;  %v4739_v55 = vld [vmem:[%s5344_s6 + $0xc8] ss:$16 sps:$4 sm:$0xff]  }
  0x8e   : > { %1433 = vmatpush1.bf16.msra.mxu0 %v3544_v58  ;;  %1486 = vmatpush1.bf16.msra.mxu1 %v3547_v59  ;;  %v4598_v58 = vld [vmem:[%s5344_s6 + $0x24] ss:$16 sps:$4 sm:$0xff]   ;;  %v4603_v59 = vld [vmem:[%s5344_s6 + $0x2c] ss:$16 sps:$4 sm:$0xff]  }
  0x8f   : > { %1434 = vmatprep.subr.bf16.mxu0 %v3552_v60  ;;  %1487 = vmatprep.subr.bf16.mxu1 %v3555_v61  ;;  %v4611_v60 = vld [vmem:[%s5344_s6 + $0x20] ss:$16 sps:$4 sm:$0xff]   ;;  %v4616_v61 = vld [vmem:[%s5344_s6 + $0x28] ss:$16 sps:$4 sm:$0xff]  }
  0x92   : > { %1435 = vmatpush1.bf16.msra.mxu0 %v3550_v62  ;;  %1488 = vmatpush1.bf16.msra.mxu1 %v3553_v63  ;;  %v2946_v62 = vsel %vm2945_vm3, 1, %v5350_v39  ;;  %v4624_v63 = vld [vmem:[%s5344_s6 + $0x44] ss:$16 sps:$4 sm:$0xff]  }
  0x93   : > { %1436 = vmatprep.subr.bf16.mxu0 %v3561_v0  ;;  %1489 = vmatprep.subr.bf16.mxu1 %v3564_v1  ;;  %v4629_v0 = vld [vmem:[%s5344_s6 + $0x4c] ss:$16 sps:$4 sm:$0xff]   ;;  %v4638_v1 = vld [vmem:[%s5344_s6 + $0x40] ss:$16 sps:$4 sm:$0xff]  }
  0x94   : > { %2948 = vperm.xlu0 %3371, %v2946_v62   ;;  %v4746_v62 = vld [vmem:[%s5344_s6 + $0xe4] ss:$16 sps:$4 sm:$0xff]  }
  0x96   : > { %1437 = vmatpush1.bf16.msra.mxu0 %v3559_v2  ;;  %1490 = vmatpush1.bf16.msra.mxu1 %v3562_v3  ;;  %v4643_v2 = vld [vmem:[%s5344_s6 + $0x48] ss:$16 sps:$4 sm:$0xff]   ;;  %v4650_v3 = vld [vmem:[%s5344_s6 + $0x64] ss:$16 sps:$4 sm:$0xff]  }
  0x97   : > { %1438 = vmatprep.subr.bf16.mxu0 %v3567_v4  ;;  %1491 = vmatprep.subr.bf16.mxu1 %v3570_v5  ;;  %v4655_v4 = vld [vmem:[%s5344_s6 + $0x6c] ss:$16 sps:$4 sm:$0xff]   ;;  %v4662_v5 = vld [vmem:[%s5344_s6 + $0x60] ss:$16 sps:$4 sm:$0xff]  }
  0x9a   : > { %1439 = vmatpush1.bf16.msra.mxu0 %v3565_v6  ;;  %1492 = vmatpush1.bf16.msra.mxu1 %v3568_v7  ;;  %v4667_v6 = vld [vmem:[%s5344_s6 + $0x68] ss:$16 sps:$4 sm:$0xff]   ;;  %v4674_v7 = vld [vmem:[%s5344_s6 + $0x84] ss:$16 sps:$4 sm:$0xff]  }
  0x9b   : > { %1770 = vmatprep.subr.bf16.mxu0 %v4360_v8  ;;  %1811 = vmatprep.subr.bf16.mxu1 %v4365_v9 }
  0x9d   : > { %1441 = vmatmul.mubr.bf16.vlgmr.msra.gmra.mrb[8].mxu0 %v3571_v10  ;;  %1494 = vmatmul.mubr.bf16.vlgmr.msra.gmra.mrb[8].mxu1 %v3571_v10  ;;  %v4679_v10 = vld [vmem:[%s5344_s6 + $0x8c] ss:$16 sps:$4 sm:$0xff]  }
  0x9e   : > { %1771 = vmatpush1.bf16.msra.mxu0 %v4371_v11  ;;  %1812 = vmatpush1.bf16.msra.mxu1 %v4376_v12 }
  0x9f   : > { %1772 = vmatprep.subr.bf16.mxu0 %v4381_v13  ;;  %1813 = vmatprep.subr.bf16.mxu1 %v4388_v14 }
  0xa0   : > { %1450 = vmatprep.mubr.bf16.mxu0 %v3608_v15  ;;  %1503 = vmatprep.mubr.bf16.mxu1 %v3608_v15  ;;  %v4686_v15 = vld [vmem:[%s5344_s6 + $0x80] ss:$16 sps:$4 sm:$0xff]  }
  0xa2   : > { %1773 = vmatpush1.bf16.msra.mxu0 %v4394_v16  ;;  %1814 = vmatpush1.bf16.msra.mxu1 %v4401_v17 }
  0xa3   : > { %1774 = vmatprep.subr.bf16.mxu0 %v4408_v18  ;;  %1815 = vmatprep.subr.bf16.mxu1 %v4413_v19 }
  0xa5   : > { %1451 = vmatmul.mubr.bf16.gmra.mrb[12].mxu0 %v3612_v20  ;;  %1504 = vmatmul.mubr.bf16.gmra.mrb[12].mxu1 %v3612_v20  ;;  %v4691_v20 = vld [vmem:[%s5344_s6 + $0x88] ss:$16 sps:$4 sm:$0xff]  }
  0xa6   : > { %1775 = vmatpush1.bf16.msra.mxu0 %v4421_v21  ;;  %1816 = vmatpush1.bf16.msra.mxu1 %v4426_v22 }
  0xa7   : > { %1776 = vmatprep.subr.bf16.mxu0 %v4433_v23  ;;  %1817 = vmatprep.subr.bf16.mxu1 %v4438_v24 }
  0xa8   : > { %1802 = vmatprep.mubr.bf16.mxu0 %v5350_v39  ;;  %1843 = vmatprep.mubr.bf16.mxu1 %v5350_v39 }
  0xaa   : > { %1777 = vmatpush1.bf16.msra.mxu0 %v4445_v25  ;;  %1818 = vmatpush1.bf16.msra.mxu1 %v4450_v26 }
  0xab   : > { %1778 = vmatprep.subr.bf16.mxu0 %v4457_v27  ;;  %1819 = vmatprep.subr.bf16.mxu1 %v4462_v28 }
  0xae   : > { %1779 = vmatpush1.bf16.msra.mxu0 %v4471_v29  ;;  %1820 = vmatpush1.bf16.msra.mxu1 %v4476_v30 }
  0xaf   : > { %1780 = vmatprep.subr.bf16.mxu0 %v4483_v31  ;;  %1821 = vmatprep.subr.bf16.mxu1 %v4488_v32 }
  0xb2   : > { %1781 = vmatpush1.bf16.msra.mxu0 %v4495_v33  ;;  %1822 = vmatpush1.bf16.msra.mxu1 %v4500_v34 }
  0xb3   : > { %1782 = vmatprep.subr.bf16.mxu0 %v4513_v37  ;;  %1823 = vmatprep.subr.bf16.mxu1 %v4518_v38 }
  0xb6   : > { %1783 = vmatpush1.bf16.msra.mxu0 %v4527_v41  ;;  %1824 = vmatpush1.bf16.msra.mxu1 %v4532_v42 }
  0xb7   : > { %1784 = vmatprep.subr.bf16.mxu0 %v4539_v43  ;;  %1825 = vmatprep.subr.bf16.mxu1 %v4544_v44 }
  0xba   : > { %1785 = vmatpush1.bf16.msra.mxu0 %v4554_v47  ;;  %1826 = vmatpush1.bf16.msra.mxu1 %v4559_v48 }
  0xbb   : > { %2058 = vmatprep.subr.bf16.mxu0 %v4570_v51  ;;  %2099 = vmatprep.subr.bf16.mxu1 %v4575_v52 }
  0xbd   : > { %1803 = vmatmul.mubr.bf16.vlgmr.msra.gmra.mrb[16].mxu0 %v1609_v54  ;;  %1844 = vmatmul.mubr.bf16.vlgmr.msra.gmra.mrb[16].mxu1 %v1609_v54  ;;  %v4734_v54 = vld [vmem:[%s5344_s6 + $0xc0] ss:$16 sps:$4 sm:$0xff]  }
  0xbe   : > { %2059 = vmatpush1.bf16.msra.mxu0 %v4586_v56  ;;  %2100 = vmatpush1.bf16.msra.mxu1 %v4591_v57  ;;  %5424 = vst [vmem:[#allocation43_spill] sm:$0xff] %v4734_v54 }
  0xbf   : > { %2060 = vmatprep.subr.bf16.mxu0 %v4598_v58  ;;  %2101 = vmatprep.subr.bf16.mxu1 %v4603_v59 }
  0xc0   : > { %2090 = vmatprep.mubr.bf16.mxu0 %v5350_v39  ;;  %2131 = vmatprep.mubr.bf16.mxu1 %v5350_v39  ;;  %v4751_v39 = vld [vmem:[%s5344_s6 + $0xec] ss:$16 sps:$4 sm:$0xff]  }
  0xc1   : > { %5425 = vst [vmem:[#allocation44_spill] sm:$0xff] %v4751_v39 }
  0xc2   : > { %2061 = vmatpush1.bf16.msra.mxu0 %v4611_v60  ;;  %2102 = vmatpush1.bf16.msra.mxu1 %v4616_v61 }
  0xc3   : > { %2062 = vmatprep.subr.bf16.mxu0 %v4624_v63  ;;  %2103 = vmatprep.subr.bf16.mxu1 %v4629_v0 }
  0xc6   : > { %2063 = vmatpush1.bf16.msra.mxu0 %v4638_v1  ;;  %2104 = vmatpush1.bf16.msra.mxu1 %v4643_v2 }
  0xc7   : > { %2064 = vmatprep.subr.bf16.mxu0 %v4650_v3  ;;  %2105 = vmatprep.subr.bf16.mxu1 %v4655_v4 }
  0xca   : > { %2065 = vmatpush1.bf16.msra.mxu0 %v4662_v5  ;;  %2106 = vmatpush1.bf16.msra.mxu1 %v4667_v6 }
  0xcb   : > { %2066 = vmatprep.subr.bf16.mxu0 %v4674_v7  ;;  %2107 = vmatprep.subr.bf16.mxu1 %v4679_v10 }
  0xce   : > { %2067 = vmatpush1.bf16.msra.mxu0 %v4686_v15  ;;  %2108 = vmatpush1.bf16.msra.mxu1 %v4691_v20 }
  0xcf   : > { %2068 = vmatprep.subr.bf16.mxu0 %v4698_v36  ;;  %2109 = vmatprep.subr.bf16.mxu1 %v4703_v40 }
  0xd2   : > { %2069 = vmatpush1.bf16.msra.mxu0 %v4710_v45  ;;  %2110 = vmatpush1.bf16.msra.mxu1 %v4715_v46  ;;  %v4765_v46 = vld [vmem:[#allocation8] sm:$0xff] }
  0xd3   : > { %2070 = vmatprep.subr.bf16.mxu0 %v4722_v50  ;;  %2111 = vmatprep.subr.bf16.mxu1 %v4727_v53  ;;  %v4758_v50 = vld [vmem:[%s5344_s6 + $0xe0] ss:$16 sps:$4 sm:$0xff]   ;;  %v4763_v53 = vld [vmem:[%s5344_s6 + $0xe8] ss:$16 sps:$4 sm:$0xff]  }
  0xd6   : > { %2071 = vmatpush1.bf16.msra.mxu0 %v4734_v54  ;;  %2112 = vmatpush1.bf16.msra.mxu1 %v4739_v55  ;;  %v1897_v54 = vpack.c.bf16 %v4765_v46, %v4765_v46 }
  0xd7   : > { %2072 = vmatprep.subr.bf16.mxu0 %v4746_v62  ;;  %2113 = vmatprep.subr.bf16.mxu1 %v4751_v39  ;;  %v5426_v39 = vmov 0  }
  0xda   : > { %2073 = vmatpush1.bf16.msra.mxu0 %v4758_v50  ;;  %2114 = vmatpush1.bf16.msra.mxu1 %v4763_v53 }
  0xdb   : > { %2188 = vmatprep.subr.bf16.mxu0 %v4360_v8  ;;  %2229 = vmatprep.subr.bf16.mxu1 %v4365_v9 }
  0xdd   : > { %2091 = vmatmul.mubr.bf16.vlgmr.msra.gmra.mrb[20].mxu0 %v1897_v54  ;;  %2132 = vmatmul.mubr.bf16.vlgmr.msra.gmra.mrb[20].mxu1 %v1897_v54  ;;  %v496_v54 = vlaneseq }
  0xde   : > { %2189 = vmatpush1.bf16.msra.mxu0 %v4371_v11  ;;  %2230 = vmatpush1.bf16.msra.mxu1 %v4376_v12 }
  0xdf   : > { %2190 = vmatprep.subr.bf16.mxu0 %v4381_v13  ;;  %2231 = vmatprep.subr.bf16.mxu1 %v4388_v14 }
  0xe0   : > { %2220 = vmatprep.mubr.bf16.mxu0 %v5426_v39  ;;  %2261 = vmatprep.mubr.bf16.mxu1 %v5426_v39 }
  0xe2   : > { %2191 = vmatpush1.bf16.msra.mxu0 %v4394_v16  ;;  %2232 = vmatpush1.bf16.msra.mxu1 %v4401_v17 }
  0xe3   : > { %2192 = vmatprep.subr.bf16.mxu0 %v4408_v18  ;;  %2233 = vmatprep.subr.bf16.mxu1 %v4413_v19 }
  0xe6   : > { %2193 = vmatpush1.bf16.msra.mxu0 %v4421_v21  ;;  %2234 = vmatpush1.bf16.msra.mxu1 %v4426_v22 }
  0xe7   : > { %2194 = vmatprep.subr.bf16.mxu0 %v4433_v23  ;;  %2235 = vmatprep.subr.bf16.mxu1 %v4438_v24 }
  0xea   : > { %2195 = vmatpush1.bf16.msra.mxu0 %v4445_v25  ;;  %2236 = vmatpush1.bf16.msra.mxu1 %v4450_v26 }
  0xeb   : > { %2196 = vmatprep.subr.bf16.mxu0 %v4457_v27  ;;  %2237 = vmatprep.subr.bf16.mxu1 %v4462_v28 }
  0xee   : > { %2197 = vmatpush1.bf16.msra.mxu0 %v4471_v29  ;;  %2238 = vmatpush1.bf16.msra.mxu1 %v4476_v30 }
  0xef   : > { %2198 = vmatprep.subr.bf16.mxu0 %v4483_v31  ;;  %2239 = vmatprep.subr.bf16.mxu1 %v4488_v32 }
  0xf2   : > { %2199 = vmatpush1.bf16.msra.mxu0 %v4495_v33  ;;  %2240 = vmatpush1.bf16.msra.mxu1 %v4500_v34 }
  0xf3   : > { %2200 = vmatprep.subr.bf16.mxu0 %v4513_v37  ;;  %2241 = vmatprep.subr.bf16.mxu1 %v4518_v38  ;;  %v497_v37 = vshrl.u32 %v496_v54, 7 }
  0xf5   : > { %v498_v34 = vsub.s32 0, %v497_v37  ;;  %v506_v38 = vsub.s32 2, %v497_v37 }
  0xf6   : > { %2201 = vmatpush1.bf16.msra.mxu0 %v4527_v41  ;;  %2242 = vmatpush1.bf16.msra.mxu1 %v4532_v42  ;;  %v494_v42 = vld [vmem:[%s5345_s7] sm:$0xf]  ;;  %v510_v41 = vsub.s32 3, %v497_v37 }
  0xf7   : > { %2202 = vmatprep.subr.bf16.mxu0 %v4539_v43  ;;  %2243 = vmatprep.subr.bf16.mxu1 %v4544_v44  ;;  %v502_v43 = vsub.s32 1, %v497_v37  ;;  %v4812_v33 = vrot.slane %v494_v42, %v498_v34  ;;  %v4814_v44 = vrot.slane %v494_v42, %v506_v38 }
  0xf9   : > { %v4826_v32 = vrot.slane %v494_v42, %v502_v43 }
  0xfa   : > { %2203 = vmatpush1.bf16.msra.mxu0 %v4554_v47  ;;  %2244 = vmatpush1.bf16.msra.mxu1 %v4559_v48 }
  0xfb   : > { %2318 = vmatprep.subr.bf16.mxu0 %v4570_v51  ;;  %2359 = vmatprep.subr.bf16.mxu1 %v4575_v52  ;;  %v4820_v51 = vrot.slane %v494_v42, %v510_v41 }
 0x130   : > { %v4816_v47 = vpop.f32.mrb[0].mxu0  ;;  %v4818_v48 = vpop.f32.mrb[0].mxu1 }
 0x131   : > { %v4822_v52 = vpop.f32.mrb[1].mxu0  ;;  %v4824_v54 = vpop.f32.mrb[1].mxu1 }
 0x132   : > { %v894_v31 = vpop.f32.mrb[2].mxu0  ;;  %v947_v30 = vpop.f32.mrb[2].mxu1 }
 0x133   : > { %v4829_v37 = vadd.f32 %v894_v31, %v4812_v33  ;;  %v896_v29 = vpop.f32.mrb[3].mxu0  ;;  %v4832_v28 = vadd.f32 %v947_v30, %v4814_v44  ;;  %v949_v27 = vpop.f32.mrb[3].mxu1 }
 0x134   : > { %v4835_v26 = vadd.f32 %v896_v29, %v4826_v32  ;;  %v4838_v25 = vadd.f32 %v949_v27, %v4820_v51 }
 0x135   : > { %5427 = vst [vmem:[#allocation45_spill] sm:$0xff] %v4829_v37  ;;  %5428 = vst [vmem:[#allocation46_spill] sm:$0xff] %v4832_v28 }
 0x136   : > { %5429 = vst [vmem:[#allocation47_spill] sm:$0xff] %v4835_v26  ;;  %5430 = vst [vmem:[#allocation48_spill] sm:$0xff] %v4838_v25 }
 0x138   : > { %v900_v24 = vpop.f32.mrb[4].mxu0  ;;  %v953_v42 = vpop.f32.mrb[4].mxu1 }
 0x139   : > { %v4841_v23 = vadd.f32 %v900_v24, %v4812_v33  ;;  %v902_v31 = vpop.f32.mrb[5].mxu0  ;;  %v4844_v37 = vadd.f32 %v953_v42, %v4814_v44  ;;  %v955_v30 = vpop.f32.mrb[5].mxu1 }
 0x13a   : > { %v4847_v28 = vadd.f32 %v902_v31, %v4826_v32  ;;  %v904_v29 = vpop.f32.mrb[6].mxu0  ;;  %v4850_v27 = vadd.f32 %v955_v30, %v4820_v51  ;;  %v957_v25 = vpop.f32.mrb[6].mxu1  ;;  %v2299_v30 = vstv %s2298_s19 }
 0x13b   : > { %5431 = vst [vmem:[#allocation49_spill] sm:$0xff] %v4841_v23  ;;  %5432 = vst [vmem:[#allocation50_spill] sm:$0xff] %v4844_v37  ;;  %v4853_v26 = vadd.f32 %v904_v29, %v4812_v33  ;;  %v906_v24 = vpop.f32.mrb[7].mxu0  ;;  %v4856_v23 = vadd.f32 %v957_v25, %v4814_v44  ;;  %v959_v42 = vpop.f32.mrb[7].mxu1  ;;  %vm2300_vm4 = vcmp.lt.s32.totalorder %v2299_v30, %v4505_v35  ;;  %v2687_v25 = vstv %s2686_s25 }
 0x13c   : > { %5433 = vst [vmem:[#allocation51_spill] sm:$0xff] %v4847_v28  ;;  %5434 = vst [vmem:[#allocation52_spill] sm:$0xff] %v4850_v27  ;;  %v4859_v37 = vadd.f32 %v906_v24, %v4826_v32  ;;  %v4862_v31 = vadd.f32 %v959_v42, %v4820_v51  ;;  %v2429_v27 = vstv %s2428_s14  ;;  %v2301_v29 = vsel %vm2300_vm4, 1, %v5426_v39  ;;  %v1046_v42 = vld [vmem:[%s5346_s8] sm:$0xf] }
 0x13d   : > { %5435 = vst [vmem:[#allocation53_spill] sm:$0xff] %v4853_v26  ;;  %5436 = vst [vmem:[#allocation54_spill] sm:$0xff] %v4856_v23  ;;  %vm2430_vm5 = vcmp.lt.s32.totalorder %v2429_v27, %v4505_v35  ;;  %2303 = vperm.xlu1 %3372, %v2301_v29   ;;  %vm2688_vm6 = vcmp.lt.s32.totalorder %v2687_v25, %v4505_v35  ;;  %v4877_v30 = vrot.slane %v1046_v42, %v498_v34 }
 0x13e   : > { %5437 = vst [vmem:[#allocation55_spill] sm:$0xff] %v4859_v37  ;;  %5438 = vst [vmem:[#allocation56_spill] sm:$0xff] %v4862_v31  ;;  %v2431_v24 = vsel %vm2430_vm5, 1, %v5426_v39  ;;  %v2816_v31 = vstv %s2815_s28  ;;  %v2689_v37 = vsel %vm2688_vm6, 1, %v5426_v39  ;;  %v4879_v27 = vrot.slane %v1046_v42, %v506_v38 }
 0x13f   : > { %vm2817_vm7 = vcmp.lt.s32.totalorder %v2816_v31, %v4505_v35  ;;  %v4882_v29 = vrot.slane %v1046_v42, %v502_v43  ;;  %v4884_v23 = vrot.slane %v1046_v42, %v510_v41 }
 0x140   : > { %v2818_v28 = vsel %vm2817_vm7, 1, %v5426_v39 }
 0x141   : > { %2433 = vperm.xlu1 %3372, %v2431_v24  }
 0x145   : > { %2691 = vperm.xlu1 %3372, %v2689_v37  }
 0x149   : > { %2820 = vperm.xlu1 %3372, %v2818_v28  }
 0x170   : > { %v1442_v25 = vpop.f32.mrb[8].mxu0  ;;  %v1495_v26 = vpop.f32.mrb[8].mxu1 }
 0x171   : > { %v4888_v22 = vadd.f32 %v1442_v25, %v4877_v30  ;;  %v1444_v24 = vpop.f32.mrb[9].mxu0  ;;  %v4891_v34 = vadd.f32 %v1495_v26, %v4879_v27  ;;  %v1497_v38 = vpop.f32.mrb[9].mxu1 }
 0x172   : > { %v4894_v21 = vadd.f32 %v1444_v24, %v4882_v29  ;;  %v1446_v35 = vpop.f32.mrb[10].mxu0  ;;  %v4897_v41 = vadd.f32 %v1497_v38, %v4884_v23  ;;  %v1499_v43 = vpop.f32.mrb[10].mxu1 }
 0x173   : > { %5439 = vst [vmem:[#allocation57_spill] sm:$0xff] %v4888_v22  ;;  %5440 = vst [vmem:[#allocation58_spill] sm:$0xff] %v4891_v34  ;;  %v4900_v37 = vadd.f32 %v1446_v35, %v4877_v30  ;;  %v1448_v31 = vpop.f32.mrb[11].mxu0  ;;  %v4903_v42 = vadd.f32 %v1499_v43, %v4879_v27  ;;  %v1501_v25 = vpop.f32.mrb[11].mxu1 }
 0x174   : > { %5441 = vst [vmem:[#allocation59_spill] sm:$0xff] %v4894_v21  ;;  %5442 = vst [vmem:[#allocation60_spill] sm:$0xff] %v4897_v41  ;;  %v4906_v26 = vadd.f32 %v1448_v31, %v4882_v29  ;;  %v4909_v24 = vadd.f32 %v1501_v25, %v4884_v23 }
 0x175   : > { %5443 = vst [vmem:[#allocation61_spill] sm:$0xff] %v4900_v37  ;;  %5444 = vst [vmem:[#allocation62_spill] sm:$0xff] %v4903_v42  ;;  %v891_v42 = vadd.f32 %v4816_v47, %v4812_v33 }
 0x176   : > { %5445 = vst [vmem:[#allocation63_spill] sm:$0xff] %v4906_v26  ;;  %5446 = vst [vmem:[#allocation64_spill] sm:$0xff] %v4909_v24 }
 0x178   : > { %v1452_v21 = vpop.f32.mrb[12].mxu0  ;;  %v1505_v34 = vpop.f32.mrb[12].mxu1 }
 0x179   : > { %v4912_v38 = vadd.f32 %v1452_v21, %v4877_v30  ;;  %v1454_v41 = vpop.f32.mrb[13].mxu0  ;;  %v4915_v35 = vadd.f32 %v1505_v34, %v4879_v27  ;;  %v1507_v22 = vpop.f32.mrb[13].mxu1  ;;  %v944_v21 = vadd.f32 %v4818_v48, %v4814_v44  ;;  %v893_v34 = vadd.f32 %v4822_v52, %v4826_v32 }
 0x17a   : > { %v4918_v43 = vadd.f32 %v1454_v41, %v4882_v29  ;;  %v1456_v28 = vpop.f32.mrb[14].mxu0  ;;  %v4921_v31 = vadd.f32 %v1507_v22, %v4884_v23  ;;  %v1509_v26 = vpop.f32.mrb[14].mxu1  ;;  %v946_v41 = vadd.f32 %v4824_v54, %v4820_v51 }
 0x17b   : > { %5447 = vst [vmem:[#allocation65_spill] sm:$0xff] %v4912_v38  ;;  %5448 = vst [vmem:[#allocation66_spill] sm:$0xff] %v4915_v35  ;;  %v1458_v25 = vpop.f32.mrb[15].mxu0  ;;  %v1511_v24 = vpop.f32.mrb[15].mxu1 }
 0x17c   : > { %5449 = vst [vmem:[#allocation67_spill] sm:$0xff] %v4918_v43  ;;  %5450 = vst [vmem:[#allocation68_spill] sm:$0xff] %v4921_v31 }
 0x190   : > { %v1804_v37 = vpop.f32.mrb[16].mxu0  ;;  %v1845_v43 = vpop.f32.mrb[16].mxu1 }
 0x191   : > { %v1852_v35 = vadd.f32 %v1804_v37, %v891_v42  ;;  %v1854_v22 = vadd.f32 %v1845_v43, %v944_v21  ;;  %v1806_v31 = vpop.f32.mrb[17].mxu0  ;;  %v1847_v38 = vpop.f32.mrb[17].mxu1 }
 0x192   : > { %v1853_v19 = vadd.f32 %v1806_v31, %v893_v34  ;;  %v1855_v18 = vadd.f32 %v1847_v38, %v946_v41  ;;  %v1808_v17 = vpop.f32.mrb[18].mxu0  ;;  %v1849_v16 = vpop.f32.mrb[18].mxu1  ;;  %v1510_v31 = vadd.f32 %v1509_v26, %v4879_v27  ;;  %v1512_v34 = vadd.f32 %v1511_v24, %v4884_v23 }
 0x193   : > { %v3279_v33 = vmul.f32 -1.442695, %v1852_v35  ;;  %v1809_v47 = vpop.f32.mrb[19].mxu0  ;;  %v1850_v14 = vpop.f32.mrb[19].mxu1  ;;  %v3281_v32 = vmul.f32 -1.442695, %v1854_v22 }
 0x194   : > { %v3280_v44 = vmul.f32 -1.442695, %v1853_v19  ;;  %v1599_v17 = vld [vmem:[#allocation7] sm:$0xff]  ;;  %v1885_v16 = vpop.permute.xlu0 %1884  ;;  %v1457_v19 = vadd.f32 %v1456_v28, %v4877_v30 }
 0x195   : > { %3673 = vpow2.f32 %v3279_v33  ;;  %vm1886_vm8 = vcmp.eq.s32.totalorder %v1885_v16, 1 }
 0x196   : > { %3675 = vpow2.f32 %v3280_v44 }
 0x197   : > { %3677 = vtanh.f32 %v1855_v18  ;;  %v1459_v18 = vadd.f32 %v1458_v25, %v4882_v29 }
 0x198   : > { %3679 = vpow2.f32 %v3281_v32 }
 0x19f   : > { %v3674_v48 = vpop.eup %3673 }
 0x1a0   : > { %v1865_v52 = vadd.f32 1.0, %v3674_v48  ;;  %v3676_v51 = vpop.eup %3675 }
 0x1a1   : > { %v1866_v54 = vadd.f32 1.0, %v3676_v51  ;;  %v3678_v37 = vpop.eup %3677 }
 0x1a2   : > { %3681 = vrcp.f32 %v1865_v52  ;;  %v3680_v42 = vpop.eup %3679 }
 0x1a3   : > { %3683 = vrcp.f32 %v1866_v54  ;;  %v1867_v14 = vadd.f32 1.0, %v3680_v42 }
 0x1a5   : > { %3685 = vrcp.f32 %v1867_v14 }
 0x1ac   : > { %v3682_v38 = vpop.eup %3681 }
 0x1ad   : > { %v1876_v35 = vmul.f32 %v3682_v38, %v3678_v37  ;;  %v3684_v43 = vpop.eup %3683 }
 0x1ae   : > { %v1875_v21 = vmul.f32 %v3684_v43, %v1599_v17 }
 0x1af   : > { %v3686_v28 = vpop.eup %3685 }
 0x1b0   : > { %v2092_v41 = vpop.f32.mrb[20].mxu0  ;;  %v2133_v22 = vpop.f32.mrb[20].mxu1  ;;  %v1877_v33 = vadd.f32 %v1876_v35, %v1875_v21  ;;  %v1601_v21 = vld [vmem:[#allocation9] sm:$0xff] }
 0x1b1   : > { %v2140_v47 = vadd.f32 %v2092_v41, %v1457_v19  ;;  %v2142_v44 = vadd.f32 %v2133_v22, %v1510_v31  ;;  %v2094_v32 = vpop.f32.mrb[21].mxu0  ;;  %v2135_v48 = vpop.f32.mrb[21].mxu1 }
 0x1b2   : > { %v2141_v52 = vadd.f32 %v2094_v32, %v1459_v18  ;;  %v2143_v51 = vadd.f32 %v2135_v48, %v1512_v34  ;;  %v2096_v54 = vpop.f32.mrb[22].mxu0  ;;  %v2137_v30 = vpop.f32.mrb[22].mxu1  ;;  %3687 = vtanh.f32 %v1877_v33  ;;  %v4936_v27 = vsel %vm1886_vm8, %v1877_v33, %v1599_v17  ;;  %v5451_v32 = vld [vmem:[#allocation40_spill] sm:$0xff]  ;;  %v5452_v48 = vld [vmem:[#allocation41_spill] sm:$0xff] }
 0x1b3   : > { %v3314_v29 = vmul.f32 -1.442695, %v2140_v47  ;;  %v2097_v26 = vpop.f32.mrb[23].mxu0  ;;  %v2138_v23 = vpop.f32.mrb[23].mxu1  ;;  %v3316_v37 = vmul.f32 -1.442695, %v2142_v44 }
 0x1b4   : > { %v3315_v24 = vmul.f32 -1.442695, %v2141_v52  ;;  %v2174_v33 = vpop.permute.xlu0 %2173  ;;  %v5453_v52 = vld [vmem:[#allocation42_spill] sm:$0xff]  ;;  %v5454_v54 = vld [vmem:[#allocation43_spill] sm:$0xff] }
 0x1b5   : > { %3689 = vpow2.f32 %v3314_v29  ;;  %vm2175_vm9 = vcmp.eq.s32.totalorder %v2174_v33, 1  ;;  %v5455_v29 = vld [vmem:[#allocation44_spill] sm:$0xff]  ;;  %v5479_v33 = vld [vmem:[#allocation34_spill] sm:$0xff] }
 0x1b6   : > { %3691 = vpow2.f32 %v3315_v24 }
 0x1b7   : > { %3693 = vtanh.f32 %v2143_v51 }
 0x1b8   : > { %3695 = vpow2.f32 %v3316_v37  ;;  %v5461_v37 = vld [vmem:[#allocation16_spill] sm:$0xff] }
 0x1bc   : > { %v3688_v25 = vpop.eup %3687 }
 0x1bd   : > { %v1879_v42 = vmul.f32 %v3688_v25, %v3686_v28  ;;  %v5457_v28 = vld [vmem:[#allocation12_spill] sm:$0xff]  ;;  %v5458_v25 = vld [vmem:[#allocation13_spill] sm:$0xff] }
 0x1bf   : > { %v3690_v38 = vpop.eup %3689  ;;  %v4940_v35 = vsel %vm1886_vm8, %v1879_v42, %v4561_v49  ;;  %v5465_v42 = vld [vmem:[#allocation20_spill] sm:$0xff] }
 0x1c0   : > { %v2153_v43 = vadd.f32 1.0, %v3690_v38  ;;  %v3692_v14 = vpop.eup %3691  ;;  %v2187_v17 = vpack.c.bf16 %v4940_v35, %v4940_v35  ;;  %v5466_v38 = vld [vmem:[#allocation21_spill] sm:$0xff] }
 0x1c1   : > { %v2154_v19 = vadd.f32 1.0, %v3692_v14  ;;  %v3694_v49 = vpop.eup %3693  ;;  %v5468_v14 = vld [vmem:[#allocation23_spill] sm:$0xff] }
 0x1c2   : > { %3697 = vrcp.f32 %v2153_v43  ;;  %2221 = vmatmul.mubr.bf16.vlgmr.msra.gmra.mrb[24].mxu0 %v2187_v17  ;;  %2262 = vmatmul.mubr.bf16.vlgmr.msra.gmra.mrb[24].mxu1 %v2187_v17  ;;  %v3696_v16 = vpop.eup %3695  ;;  %v5467_v43 = vld [vmem:[#allocation22_spill] sm:$0xff]  ;;  %v5469_v17 = vld [vmem:[#allocation24_spill] sm:$0xff] }
 0x1c3   : > { %3699 = vrcp.f32 %v2154_v19  ;;  %2319 = vmatpush1.bf16.msra.mxu0 %v4586_v56  ;;  %2360 = vmatpush1.bf16.msra.mxu1 %v4591_v57  ;;  %v2155_v41 = vadd.f32 1.0, %v3696_v16  ;;  %v5470_v19 = vld [vmem:[#allocation25_spill] sm:$0xff]  ;;  %v5472_v16 = vld [vmem:[#allocation27_spill] sm:$0xff] }
 0x1c4   : > { %2320 = vmatprep.subr.bf16.mxu0 %v4598_v58  ;;  %2361 = vmatprep.subr.bf16.mxu1 %v4603_v59 }
 0x1c5   : > { %2350 = vmatprep.mubr.bf16.mxu0 %v5426_v39  ;;  %2391 = vmatprep.mubr.bf16.mxu1 %v5426_v39  ;;  %3701 = vrcp.f32 %v2155_v41  ;;  %v5477_v41 = vld [vmem:[#allocation32_spill] sm:$0xff] }
 0x1c7   : > { %2321 = vmatpush1.bf16.msra.mxu0 %v4611_v60  ;;  %2362 = vmatpush1.bf16.msra.mxu1 %v4616_v61 }
 0x1c8   : > { %2322 = vmatprep.subr.bf16.mxu0 %v4624_v63  ;;  %2363 = vmatprep.subr.bf16.mxu1 %v4629_v0 }
 0x1cb   : > { %2323 = vmatpush1.bf16.msra.mxu0 %v4638_v1  ;;  %2364 = vmatpush1.bf16.msra.mxu1 %v4643_v2 }
 0x1cc   : > { %v3698_v31 = vpop.eup %3697  ;;  %2324 = vmatprep.subr.bf16.mxu0 %v4650_v3  ;;  %2365 = vmatprep.subr.bf16.mxu1 %v4655_v4 }
 0x1cd   : > { %v2164_v18 = vmul.f32 %v3698_v31, %v3694_v49  ;;  %v3700_v34 = vpop.eup %3699  ;;  %v5471_v49 = vld [vmem:[#allocation26_spill] sm:$0xff]  ;;  %v5473_v31 = vld [vmem:[#allocation28_spill] sm:$0xff] }
 0x1ce   : > { %v2163_v22 = vmul.f32 %v3700_v34, %v1601_v21  ;;  %v5476_v34 = vld [vmem:[#allocation31_spill] sm:$0xff] }
 0x1cf   : > { %2325 = vmatpush1.bf16.msra.mxu0 %v4662_v5  ;;  %2366 = vmatpush1.bf16.msra.mxu1 %v4667_v6  ;;  %v3702_v51 = vpop.eup %3701 }
 0x1d0   : > { %v2165_v47 = vadd.f32 %v2164_v18, %v2163_v22  ;;  %2326 = vmatprep.subr.bf16.mxu0 %v4674_v7  ;;  %2367 = vmatprep.subr.bf16.mxu1 %v4679_v10  ;;  %v5475_v18 = vld [vmem:[#allocation30_spill] sm:$0xff]  ;;  %v5478_v22 = vld [vmem:[#allocation33_spill] sm:$0xff] }
 0x1d2   : > { %3703 = vtanh.f32 %v2165_v47  ;;  %v4963_v44 = vsel %vm2175_vm9, %v2165_v47, %v1601_v21  ;;  %v5474_v21 = vld [vmem:[#allocation29_spill] sm:$0xff]  ;;  %v5480_v47 = vld [vmem:[#allocation35_spill] sm:$0xff] }
 0x1d3   : > { %2327 = vmatpush1.bf16.msra.mxu0 %v4686_v15  ;;  %2368 = vmatpush1.bf16.msra.mxu1 %v4691_v20 }
 0x1d4   : > { %2328 = vmatprep.subr.bf16.mxu0 %v4698_v36  ;;  %2369 = vmatprep.subr.bf16.mxu1 %v4703_v40 }
 0x1d7   : > { %2329 = vmatpush1.bf16.msra.mxu0 %v4710_v45  ;;  %2370 = vmatpush1.bf16.msra.mxu1 %v5451_v32 }
 0x1d8   : > { %2330 = vmatprep.subr.bf16.mxu0 %v5452_v48  ;;  %2371 = vmatprep.subr.bf16.mxu1 %v5453_v52 }
 0x1db   : > { %2331 = vmatpush1.bf16.msra.mxu0 %v5454_v54  ;;  %2372 = vmatpush1.bf16.msra.mxu1 %v4739_v55 }
 0x1dc   : > { %v3704_v30 = vpop.eup %3703  ;;  %2332 = vmatprep.subr.bf16.mxu0 %v4746_v62  ;;  %2373 = vmatprep.subr.bf16.mxu1 %v5455_v29 }
 0x1dd   : > { %v2167_v26 = vmul.f32 %v3704_v30, %v3702_v51  ;;  %v5481_v51 = vld [vmem:[#allocation36_spill] sm:$0xff]  ;;  %v5482_v30 = vld [vmem:[#allocation37_spill] sm:$0xff] }
 0x1df   : > { %v4979_v23 = vsel %vm2175_vm9, %v2167_v26, %v4765_v46  ;;  %2333 = vmatpush1.bf16.msra.mxu0 %v4758_v50  ;;  %2374 = vmatpush1.bf16.msra.mxu1 %v4763_v53  ;;  %v5456_v46 = vld [vmem:[#allocation11_spill] sm:$0xff]  ;;  %v5483_v26 = vld [vmem:[#allocation38_spill] sm:$0xff] }
 0x1e0   : > { %v2317_v24 = vpack.c.bf16 %v4979_v23, %v4979_v23  ;;  %2447 = vmatprep.subr.bf16.mxu0 %v4360_v8  ;;  %2488 = vmatprep.subr.bf16.mxu1 %v4365_v9  ;;  %v5459_v8 = vld [vmem:[#allocation14_spill] sm:$0xff]  ;;  %v5460_v9 = vld [vmem:[#allocation15_spill] sm:$0xff] }
 0x1e2   : > { %2351 = vmatmul.mubr.bf16.vlgmr.msra.gmra.mrb[28].mxu0 %v2317_v24  ;;  %2392 = vmatmul.mubr.bf16.vlgmr.msra.gmra.mrb[28].mxu1 %v2317_v24  ;;  %v5484_v24 = vld [vmem:[#allocation39_spill] sm:$0xff] }
 0x1e3   : > { %2448 = vmatpush1.bf16.msra.mxu0 %v4371_v11  ;;  %2489 = vmatpush1.bf16.msra.mxu1 %v4376_v12  ;;  %v5462_v11 = vld [vmem:[#allocation17_spill] sm:$0xff]  ;;  %v5463_v12 = vld [vmem:[#allocation18_spill] sm:$0xff] }
 0x1e4   : > { %2449 = vmatprep.subr.bf16.mxu0 %v4381_v13  ;;  %2490 = vmatprep.subr.bf16.mxu1 %v5456_v46  ;;  %v5464_v13 = vld [vmem:[#allocation19_spill] sm:$0xff] }
 0x1e5   : > { %2479 = vmatprep.mubr.bf16.mxu0 %v5426_v39  ;;  %2520 = vmatprep.mubr.bf16.mxu1 %v5426_v39 }
 0x1e7   : > { %2450 = vmatpush1.bf16.msra.mxu0 %v5457_v28  ;;  %2491 = vmatpush1.bf16.msra.mxu1 %v5458_v25  ;;  %v5485_v25 = vld [vmem:[#allocation45_spill] sm:$0xff] }
 0x1e8   : > { %2451 = vmatprep.subr.bf16.mxu0 %v5459_v8  ;;  %2492 = vmatprep.subr.bf16.mxu1 %v5460_v9  ;;  %v5486_v9 = vld [vmem:[#allocation46_spill] sm:$0xff] }
 0x1eb   : > { %2452 = vmatpush1.bf16.msra.mxu0 %v5461_v37  ;;  %2493 = vmatpush1.bf16.msra.mxu1 %v5462_v11 }
 0x1ec   : > { %2453 = vmatprep.subr.bf16.mxu0 %v5463_v12  ;;  %2494 = vmatprep.subr.bf16.mxu1 %v5464_v13  ;;  %v5487_v13 = vld [vmem:[#allocation47_spill] sm:$0xff] }
 0x1ef   : > { %2454 = vmatpush1.bf16.msra.mxu0 %v5465_v42  ;;  %2495 = vmatpush1.bf16.msra.mxu1 %v5466_v38  ;;  %v5488_v38 = vld [vmem:[#allocation48_spill] sm:$0xff] }
 0x1f0   : > { %2455 = vmatprep.subr.bf16.mxu0 %v5467_v43  ;;  %2496 = vmatprep.subr.bf16.mxu1 %v5468_v14 }
 0x1f3   : > { %2456 = vmatpush1.bf16.msra.mxu0 %v5469_v17  ;;  %2497 = vmatpush1.bf16.msra.mxu1 %v5470_v19 }
 0x1f4   : > { %2457 = vmatprep.subr.bf16.mxu0 %v5471_v49  ;;  %2498 = vmatprep.subr.bf16.mxu1 %v5472_v16 }
 0x1f7   : > { %2458 = vmatpush1.bf16.msra.mxu0 %v5473_v31  ;;  %2499 = vmatpush1.bf16.msra.mxu1 %v5474_v21 }
 0x1f8   : > { %2459 = vmatprep.subr.bf16.mxu0 %v5475_v18  ;;  %2500 = vmatprep.subr.bf16.mxu1 %v5476_v34 }
 0x1fb   : > { %2460 = vmatpush1.bf16.msra.mxu0 %v5477_v41  ;;  %2501 = vmatpush1.bf16.msra.mxu1 %v5478_v22 }
 0x1fc   : > { %2461 = vmatprep.subr.bf16.mxu0 %v5479_v33  ;;  %2502 = vmatprep.subr.bf16.mxu1 %v5480_v47 }
 0x1ff   : > { %2462 = vmatpush1.bf16.msra.mxu0 %v5481_v51  ;;  %2503 = vmatpush1.bf16.msra.mxu1 %v5482_v30  ;;  %v2304_v30 = vpop.permute.xlu1 %2303 }
 0x200   : > { %2576 = vmatprep.subr.bf16.mxu0 %v5483_v26  ;;  %2617 = vmatprep.subr.bf16.mxu1 %v5484_v24  ;;  %vm2305_vm10 = vcmp.eq.s32.totalorder %v2304_v30, 1 }
 0x295   : > { %v2222_v46 = vpop.f32.mrb[24].mxu0  ;;  %v2263_v28 = vpop.f32.mrb[24].mxu1 }
 0x296   : > { %v2270_v8 = vadd.f32 %v2222_v46, %v5485_v25  ;;  %v2272_v37 = vadd.f32 %v2263_v28, %v5486_v9  ;;  %v2224_v11 = vpop.f32.mrb[25].mxu0  ;;  %v2265_v12 = vpop.f32.mrb[25].mxu1 }
 0x297   : > { %v2271_v42 = vadd.f32 %v2224_v11, %v5487_v13  ;;  %v2273_v43 = vadd.f32 %v2265_v12, %v5488_v38  ;;  %v2226_v14 = vpop.f32.mrb[26].mxu0  ;;  %v2267_v17 = vpop.f32.mrb[26].mxu1  ;;  %v5490_v12 = vld [vmem:[#allocation66_spill] sm:$0xff] }
 0x298   : > { %v3317_v19 = vmul.f32 -1.442695, %v2270_v8  ;;  %v2227_v49 = vpop.f32.mrb[27].mxu0  ;;  %v2268_v16 = vpop.f32.mrb[27].mxu1  ;;  %v3319_v21 = vmul.f32 -1.442695, %v2272_v37 }
 0x299   : > { %v3318_v31 = vmul.f32 -1.442695, %v2271_v42  ;;  %v5489_v37 = vld [vmem:[#allocation65_spill] sm:$0xff]  ;;  %v5492_v17 = vld [vmem:[#allocation68_spill] sm:$0xff] }
 0x29a   : > { %3705 = vpow2.f32 %v3317_v19 }
 0x29b   : > { %3707 = vpow2.f32 %v3318_v31 }
 0x29c   : > { %3709 = vtanh.f32 %v2273_v43  ;;  %v5491_v43 = vld [vmem:[#allocation67_spill] sm:$0xff] }
 0x29d   : > { %3711 = vpow2.f32 %v3319_v21 }
 0x2a4   : > { %v3706_v18 = vpop.eup %3705 }
 0x2a5   : > { %v2283_v34 = vadd.f32 1.0, %v3706_v18  ;;  %v3708_v41 = vpop.eup %3707 }
 0x2a6   : > { %v2284_v22 = vadd.f32 1.0, %v3708_v41  ;;  %v3710_v33 = vpop.eup %3709 }
 0x2a7   : > { %3713 = vrcp.f32 %v2283_v34  ;;  %v3712_v47 = vpop.eup %3711 }
 0x2a8   : > { %3715 = vrcp.f32 %v2284_v22  ;;  %v2285_v46 = vadd.f32 1.0, %v3712_v47 }
 0x2aa   : > { %3717 = vrcp.f32 %v2285_v46 }
 0x2b1   : > { %v3714_v51 = vpop.eup %3713 }
 0x2b2   : > { %v2294_v26 = vmul.f32 %v3714_v51, %v3710_v33  ;;  %v3716_v24 = vpop.eup %3715 }
 0x2b3   : > { %v2293_v28 = vmul.f32 %v3716_v24, %v4936_v27 }
 0x2b4   : > { %v3718_v22 = vpop.eup %3717 }
 0x2b5   : > { %v2352_v25 = vpop.f32.mrb[28].mxu0  ;;  %v2393_v8 = vpop.f32.mrb[28].mxu1  ;;  %v2295_v9 = vadd.f32 %v2294_v26, %v2293_v28 }
 0x2b6   : > { %v2400_v11 = vadd.f32 %v2352_v25, %v5489_v37  ;;  %v2402_v13 = vadd.f32 %v2393_v8, %v5490_v12  ;;  %v2354_v42 = vpop.f32.mrb[29].mxu0  ;;  %v2395_v38 = vpop.f32.mrb[29].mxu1  ;;  %v3820_v37 = vld [vmem:[%s5343_s5 + $0x88] ss:$16 sps:$4 sm:$0xff]   ;;  %v3822_v12 = vld [vmem:[%s5343_s5 + $0xac] ss:$16 sps:$4 sm:$0xff]  }
 0x2b7   : > { %v2401_v14 = vadd.f32 %v2354_v42, %v5491_v43  ;;  %v2403_v19 = vadd.f32 %v2395_v38, %v5492_v17  ;;  %v2356_v49 = vpop.f32.mrb[30].mxu0  ;;  %v2397_v16 = vpop.f32.mrb[30].mxu1  ;;  %3719 = vtanh.f32 %v2295_v9  ;;  %v5032_v31 = vsel %vm2305_vm10, %v2295_v9, %v4936_v27  ;;  %v3819_v9 = vld [vmem:[%s5343_s5 + $0x80] ss:$16 sps:$4 sm:$0xff]   ;;  %v3824_v42 = vld [vmem:[%s5343_s5 + $0xa8] ss:$16 sps:$4 sm:$0xff]  }
 0x2b8   : > { %v3320_v21 = vmul.f32 -1.442695, %v2400_v11  ;;  %v2357_v18 = vpop.f32.mrb[31].mxu0  ;;  %v2398_v34 = vpop.f32.mrb[31].mxu1  ;;  %v3322_v47 = vmul.f32 -1.442695, %v2402_v13 }
 0x2b9   : > { %v3321_v41 = vmul.f32 -1.442695, %v2401_v14  ;;  %v3821_v11 = vld [vmem:[%s5343_s5 + $0xa4] ss:$16 sps:$4 sm:$0xff]   ;;  %v3823_v13 = vld [vmem:[%s5343_s5 + $0xa0] ss:$16 sps:$4 sm:$0xff]  }
 0x2ba   : > { %3721 = vpow2.f32 %v3320_v21  ;;  %v3825_v38 = vld [vmem:[%s5343_s5 + $0xc4] ss:$16 sps:$4 sm:$0xff]   ;;  %v3826_v43 = vld [vmem:[%s5343_s5 + $0xcc] ss:$16 sps:$4 sm:$0xff]   ;;  %v3827_v14 = vld [vmem:[%s5343_s5 + $0xc0] ss:$16 sps:$4 sm:$0xff]  }
 0x2bb   : > { %3723 = vpow2.f32 %v3321_v41  ;;  %v3828_v17 = vld [vmem:[%s5343_s5 + $0xc8] ss:$16 sps:$4 sm:$0xff]   ;;  %v3830_v49 = vld [vmem:[%s5343_s5 + $0xec] ss:$16 sps:$4 sm:$0xff]   ;;  %v3831_v16 = vld [vmem:[%s5343_s5 + $0xe0] ss:$16 sps:$4 sm:$0xff]  }
 0x2bc   : > { %3725 = vtanh.f32 %v2403_v19  ;;  %v3829_v19 = vld [vmem:[%s5343_s5 + $0xe4] ss:$16 sps:$4 sm:$0xff]   ;;  %v3832_v21 = vld [vmem:[%s5343_s5 + $0xe8] ss:$16 sps:$4 sm:$0xff]   ;;  %v3834_v34 = vld [vmem:[%s5344_s6 + $0xc] ss:$16 sps:$4 sm:$0xff]  }
 0x2bd   : > { %3727 = vpow2.f32 %v3322_v47  ;;  %v3833_v18 = vld [vmem:[%s5344_s6 + $0x4] ss:$16 sps:$4 sm:$0xff]  }
 0x2c1   : > { %v3720_v33 = vpop.eup %3719 }
 0x2c2   : > { %v2297_v51 = vmul.f32 %v3720_v33, %v3718_v22  ;;  %v5493_v33 = vld [vmem:[#allocation49_spill] sm:$0xff] }
 0x2c4   : > { %v3722_v26 = vpop.eup %3721  ;;  %v5036_v24 = vsel %vm2305_vm10, %v2297_v51, %v4940_v35  ;;  %v5494_v51 = vld [vmem:[#allocation50_spill] sm:$0xff] }
 0x2c5   : > { %v2413_v46 = vadd.f32 1.0, %v3722_v26  ;;  %v3724_v27 = vpop.eup %3723  ;;  %v2446_v28 = vpack.c.bf16 %v5036_v24, %v5036_v24  ;;  %v3342_v25 = vpack.c.bf16 %v5036_v24, %v4940_v35 }
 0x2c6   : > { %v2414_v8 = vadd.f32 1.0, %v3724_v27  ;;  %v3726_v35 = vpop.eup %3725 }
 0x2c7   : > { %3729 = vrcp.f32 %v2413_v46  ;;  %3343 = vst [vmem:[%s3959_s11] sm:$0xff] %v3342_v25   ;;  %2480 = vmatmul.mubr.bf16.vlgmr.msra.gmra.mrb[32].mxu0 %v2446_v28  ;;  %2521 = vmatmul.mubr.bf16.vlgmr.msra.gmra.mrb[32].mxu1 %v2446_v28  ;;  %v5495_v28 = vld [vmem:[#allocation51_spill] sm:$0xff] }
 0x2c8   : > { %3731 = vrcp.f32 %v2414_v8  ;;  %2577 = vmatpush1.bf16.msra.mxu0 %v4586_v56  ;;  %2618 = vmatpush1.bf16.msra.mxu1 %v4591_v57  ;;  %v3728_v56 = vpop.eup %3727  ;;  %v5496_v8 = vld [vmem:[#allocation52_spill] sm:$0xff] }
 0x2c9   : > { %2578 = vmatprep.subr.bf16.mxu0 %v4598_v58  ;;  %2619 = vmatprep.subr.bf16.mxu1 %v4603_v59  ;;  %v2415_v59 = vadd.f32 1.0, %v3728_v56 }
 0x2ca   : > { %2608 = vmatprep.mubr.bf16.mxu0 %v5426_v39  ;;  %2649 = vmatprep.mubr.bf16.mxu1 %v5426_v39 }
 0x2cb   : > { %3733 = vrcp.f32 %v2415_v59 }
 0x2cc   : > { %2579 = vmatpush1.bf16.msra.mxu0 %v4611_v60  ;;  %2620 = vmatpush1.bf16.msra.mxu1 %v4616_v61  ;;  %v2434_v61 = vpop.permute.xlu1 %2433 }
 0x2cd   : > { %2580 = vmatprep.subr.bf16.mxu0 %v4624_v63  ;;  %2621 = vmatprep.subr.bf16.mxu1 %v4629_v0  ;;  %vm2435_vm11 = vcmp.eq.s32.totalorder %v2434_v61, 1 }
 0x2d0   : > { %2581 = vmatpush1.bf16.msra.mxu0 %v4638_v1  ;;  %2622 = vmatpush1.bf16.msra.mxu1 %v4643_v2 }
 0x2d1   : > { %v3730_v30 = vpop.eup %3729  ;;  %2582 = vmatprep.subr.bf16.mxu0 %v4650_v3  ;;  %2623 = vmatprep.subr.bf16.mxu1 %v4655_v4 }
 0x2d2   : > { %v2424_v57 = vmul.f32 %v3730_v30, %v3726_v35  ;;  %v3732_v58 = vpop.eup %3731 }
 0x2d3   : > { %v2423_v60 = vmul.f32 %v3732_v58, %v4963_v44 }
 0x2d4   : > { %2583 = vmatpush1.bf16.msra.mxu0 %v4662_v5  ;;  %2624 = vmatpush1.bf16.msra.mxu1 %v4667_v6  ;;  %v3801_v6 = vld [vmem:[%s5343_s5 + $0x4] ss:$16 sps:$4 sm:$0xff]  }
 0x2d5   : > { %v2425_v63 = vadd.f32 %v2424_v57, %v2423_v60  ;;  %2584 = vmatprep.subr.bf16.mxu0 %v4674_v7  ;;  %2625 = vmatprep.subr.bf16.mxu1 %v4679_v10  ;;  %v3734_v1 = vpop.eup %3733  ;;  %v3802_v7 = vld [vmem:[%s5343_s5 + $0xc] ss:$16 sps:$4 sm:$0xff]   ;;  %v3803_v10 = vld [vmem:[%s5343_s5] ss:$16 sps:$4 sm:$0xff]  }
 0x2d7   : > { %3735 = vtanh.f32 %v2425_v63  ;;  %v5064_v0 = vsel %vm2435_vm11, %v2425_v63, %v4963_v44  ;;  %v3813_v44 = vld [vmem:[%s5343_s5 + $0x64] ss:$16 sps:$4 sm:$0xff]  }
 0x2d8   : > { %2585 = vmatpush1.bf16.msra.mxu0 %v4686_v15  ;;  %2626 = vmatpush1.bf16.msra.mxu1 %v4691_v20  ;;  %v3804_v15 = vld [vmem:[%s5343_s5 + $0x8] ss:$16 sps:$4 sm:$0xff]   ;;  %v3805_v20 = vld [vmem:[%s5343_s5 + $0x24] ss:$16 sps:$4 sm:$0xff]  }
 0x2d9   : > { %2586 = vmatprep.subr.bf16.mxu0 %v4698_v36  ;;  %2627 = vmatprep.subr.bf16.mxu1 %v4703_v40  ;;  %v3806_v36 = vld [vmem:[%s5343_s5 + $0x2c] ss:$16 sps:$4 sm:$0xff]   ;;  %v3807_v40 = vld [vmem:[%s5343_s5 + $0x20] ss:$16 sps:$4 sm:$0xff]  }
 0x2dc   : > { %2587 = vmatpush1.bf16.msra.mxu0 %v4710_v45  ;;  %2628 = vmatpush1.bf16.msra.mxu1 %v5451_v32  ;;  %v3808_v45 = vld [vmem:[%s5343_s5 + $0x28] ss:$16 sps:$4 sm:$0xff]   ;;  %v3814_v32 = vld [vmem:[%s5343_s5 + $0x6c] ss:$16 sps:$4 sm:$0xff]  }
 0x2dd   : > { %2588 = vmatprep.subr.bf16.mxu0 %v5452_v48  ;;  %2629 = vmatprep.subr.bf16.mxu1 %v5453_v52  ;;  %v3815_v48 = vld [vmem:[%s5343_s5 + $0x60] ss:$16 sps:$4 sm:$0xff]   ;;  %v3816_v52 = vld [vmem:[%s5343_s5 + $0x68] ss:$16 sps:$4 sm:$0xff]  }
 0x2e0   : > { %2589 = vmatpush1.bf16.msra.mxu0 %v5454_v54  ;;  %2630 = vmatpush1.bf16.msra.mxu1 %v4739_v55  ;;  %v3811_v55 = vld [vmem:[%s5343_s5 + $0x40] ss:$16 sps:$4 sm:$0xff]   ;;  %v3817_v54 = vld [vmem:[%s5343_s5 + $0x84] ss:$16 sps:$4 sm:$0xff]  }
 0x2e1   : > { %v3736_v2 = vpop.eup %3735  ;;  %2590 = vmatprep.subr.bf16.mxu0 %v4746_v62  ;;  %2631 = vmatprep.subr.bf16.mxu1 %v5455_v29  ;;  %v3812_v62 = vld [vmem:[%s5343_s5 + $0x48] ss:$16 sps:$4 sm:$0xff]   ;;  %v3818_v29 = vld [vmem:[%s5343_s5 + $0x8c] ss:$16 sps:$4 sm:$0xff]  }
 0x2e2   : > { %v2427_v3 = vmul.f32 %v3736_v2, %v3734_v1 }
 0x2e4   : > { %v5080_v4 = vsel %vm2435_vm11, %v2427_v3, %v4979_v23  ;;  %2591 = vmatpush1.bf16.msra.mxu0 %v4758_v50  ;;  %2632 = vmatpush1.bf16.msra.mxu1 %v4763_v53  ;;  %v3809_v50 = vld [vmem:[%s5343_s5 + $0x44] ss:$16 sps:$4 sm:$0xff]   ;;  %v3810_v53 = vld [vmem:[%s5343_s5 + $0x4c] ss:$16 sps:$4 sm:$0xff]  }
 0x2e5   : > { %v2575_v5 = vpack.c.bf16 %v5080_v4, %v5080_v4  ;;  %2705 = vmatprep.subr.bf16.mxu0 %v3801_v6  ;;  %2746 = vmatprep.subr.bf16.mxu1 %v3802_v7 }
 0x2e7   : > { %2609 = vmatmul.mubr.bf16.vlgmr.msra.gmra.mrb[36].mxu0 %v2575_v5  ;;  %2650 = vmatmul.mubr.bf16.vlgmr.msra.gmra.mrb[36].mxu1 %v2575_v5 }
 0x2e8   : > { %2706 = vmatpush1.bf16.msra.mxu0 %v3803_v10  ;;  %2747 = vmatpush1.bf16.msra.mxu1 %v3804_v15 }
 0x2e9   : > { %2707 = vmatprep.subr.bf16.mxu0 %v3805_v20  ;;  %2748 = vmatprep.subr.bf16.mxu1 %v3806_v36  ;;  %v2563_v36 = vpop.permute.xlu0 %2562 }
 0x2ea   : > { %2737 = vmatprep.mubr.bf16.mxu0 %v5426_v39  ;;  %2778 = vmatprep.mubr.bf16.mxu1 %v5426_v39  ;;  %vm2564_vm12 = vcmp.eq.s32.totalorder %v2563_v36, 1  ;;  %v3855_v36 = vld [vmem:[%s5344_s6 + $0xa0] ss:$16 sps:$4 sm:$0xff]  }
 0x2ec   : > { %2708 = vmatpush1.bf16.msra.mxu0 %v3807_v40  ;;  %2749 = vmatpush1.bf16.msra.mxu1 %v3808_v45 }
 0x2ed   : > { %2709 = vmatprep.subr.bf16.mxu0 %v3809_v50  ;;  %2750 = vmatprep.subr.bf16.mxu1 %v3810_v53 }
 0x2f0   : > { %2710 = vmatpush1.bf16.msra.mxu0 %v3811_v55  ;;  %2751 = vmatpush1.bf16.msra.mxu1 %v3812_v62  ;;  %v5497_v55 = vld [vmem:[#allocation61_spill] sm:$0xff] }
 0x2f1   : > { %2711 = vmatprep.subr.bf16.mxu0 %v3813_v44  ;;  %2752 = vmatprep.subr.bf16.mxu1 %v3814_v32  ;;  %v5498_v44 = vld [vmem:[#allocation62_spill] sm:$0xff] }
 0x2f4   : > { %2712 = vmatpush1.bf16.msra.mxu0 %v3815_v48  ;;  %2753 = vmatpush1.bf16.msra.mxu1 %v3816_v52 }
 0x2f5   : > { %2713 = vmatprep.subr.bf16.mxu0 %v3817_v54  ;;  %2754 = vmatprep.subr.bf16.mxu1 %v3818_v29  ;;  %v5499_v54 = vld [vmem:[#allocation63_spill] sm:$0xff] }
 0x2f8   : > { %2714 = vmatpush1.bf16.msra.mxu0 %v3819_v9  ;;  %2755 = vmatpush1.bf16.msra.mxu1 %v3820_v37  ;;  %v5500_v9 = vld [vmem:[#allocation64_spill] sm:$0xff] }
 0x2f9   : > { %2715 = vmatprep.subr.bf16.mxu0 %v3821_v11  ;;  %2756 = vmatprep.subr.bf16.mxu1 %v3822_v12 }
 0x2fc   : > { %2716 = vmatpush1.bf16.msra.mxu0 %v3823_v13  ;;  %2757 = vmatpush1.bf16.msra.mxu1 %v3824_v42 }
 0x2fd   : > { %2717 = vmatprep.subr.bf16.mxu0 %v3825_v38  ;;  %2758 = vmatprep.subr.bf16.mxu1 %v3826_v43 }
 0x300   : > { %2718 = vmatpush1.bf16.msra.mxu0 %v3827_v14  ;;  %2759 = vmatpush1.bf16.msra.mxu1 %v3828_v17 }
 0x301   : > { %2719 = vmatprep.subr.bf16.mxu0 %v3829_v19  ;;  %2760 = vmatprep.subr.bf16.mxu1 %v3830_v49 }
 0x304   : > { %2720 = vmatpush1.bf16.msra.mxu0 %v3831_v16  ;;  %2761 = vmatpush1.bf16.msra.mxu1 %v3832_v21 }
 0x305   : > { %2834 = vmatprep.subr.bf16.mxu0 %v3833_v18  ;;  %2875 = vmatprep.subr.bf16.mxu1 %v3834_v34 }
 0x39a   : > { %v2481_v41 = vpop.f32.mrb[32].mxu0  ;;  %v2522_v22 = vpop.f32.mrb[32].mxu1 }
 0x39b   : > { %v2529_v47 = vadd.f32 %v2481_v41, %v5493_v33  ;;  %v2531_v26 = vadd.f32 %v2522_v22, %v5494_v51  ;;  %v2483_v46 = vpop.f32.mrb[33].mxu0  ;;  %v2524_v27 = vpop.f32.mrb[33].mxu1  ;;  %v3835_v33 = vld [vmem:[%s5344_s6] ss:$16 sps:$4 sm:$0xff]   ;;  %v3838_v51 = vld [vmem:[%s5344_s6 + $0x2c] ss:$16 sps:$4 sm:$0xff]  }
 0x39c   : > { %v2530_v25 = vadd.f32 %v2483_v46, %v5495_v28  ;;  %v2532_v35 = vadd.f32 %v2524_v27, %v5496_v8  ;;  %v2485_v56 = vpop.f32.mrb[34].mxu0  ;;  %v2526_v30 = vpop.f32.mrb[34].mxu1  ;;  %v3840_v46 = vld [vmem:[%s5344_s6 + $0x28] ss:$16 sps:$4 sm:$0xff]   ;;  %v3841_v27 = vld [vmem:[%s5344_s6 + $0x44] ss:$16 sps:$4 sm:$0xff]  }
 0x39d   : > { %v3323_v57 = vmul.f32 -1.442695, %v2529_v47  ;;  %v2486_v58 = vpop.f32.mrb[35].mxu0  ;;  %v2527_v59 = vpop.f32.mrb[35].mxu1  ;;  %v3325_v61 = vmul.f32 -1.442695, %v2531_v26 }
 0x39e   : > { %v3324_v60 = vmul.f32 -1.442695, %v2530_v25  ;;  %v3837_v47 = vld [vmem:[%s5344_s6 + $0x24] ss:$16 sps:$4 sm:$0xff]   ;;  %v3839_v26 = vld [vmem:[%s5344_s6 + $0x20] ss:$16 sps:$4 sm:$0xff]  }
 0x39f   : > { %3737 = vpow2.f32 %v3323_v57  ;;  %v3842_v28 = vld [vmem:[%s5344_s6 + $0x4c] ss:$16 sps:$4 sm:$0xff]   ;;  %v3844_v56 = vld [vmem:[%s5344_s6 + $0x48] ss:$16 sps:$4 sm:$0xff]   ;;  %v3845_v57 = vld [vmem:[%s5344_s6 + $0x64] ss:$16 sps:$4 sm:$0xff]  }
 0x3a0   : > { %3739 = vpow2.f32 %v3324_v60  ;;  %v3846_v58 = vld [vmem:[%s5344_s6 + $0x6c] ss:$16 sps:$4 sm:$0xff]  }
 0x3a1   : > { %3741 = vtanh.f32 %v2532_v35  ;;  %v3843_v35 = vld [vmem:[%s5344_s6 + $0x40] ss:$16 sps:$4 sm:$0xff]  }
 0x3a2   : > { %3743 = vpow2.f32 %v3325_v61 }
 0x3a9   : > { %v3738_v63 = vpop.eup %3737 }
 0x3aa   : > { %v2542_v1 = vadd.f32 1.0, %v3738_v63  ;;  %v3740_v2 = vpop.eup %3739  ;;  %v3847_v63 = vld [vmem:[%s5344_s6 + $0x60] ss:$16 sps:$4 sm:$0xff]  }
 0x3ab   : > { %v2543_v3 = vadd.f32 1.0, %v3740_v2  ;;  %v3742_v5 = vpop.eup %3741  ;;  %v2692_v2 = vpop.permute.xlu1 %2691 }
 0x3ac   : > { %3745 = vrcp.f32 %v2542_v1  ;;  %v3744_v6 = vpop.eup %3743  ;;  %v3848_v1 = vld [vmem:[%s5344_s6 + $0x68] ss:$16 sps:$4 sm:$0xff]   ;;  %vm2693_vm13 = vcmp.eq.s32.totalorder %v2692_v2, 1 }
 0x3ad   : > { %3747 = vrcp.f32 %v2543_v3  ;;  %v2544_v20 = vadd.f32 1.0, %v3744_v6  ;;  %v3850_v6 = vld [vmem:[%s5344_s6 + $0x8c] ss:$16 sps:$4 sm:$0xff]  }
 0x3ae   : > { %v5506_v2 = vld [vmem:[#allocation58_spill] sm:$0xff] }
 0x3af   : > { %3749 = vrcp.f32 %v2544_v20  ;;  %v3853_v20 = vld [vmem:[%s5344_s6 + $0xa4] ss:$16 sps:$4 sm:$0xff]  }
 0x3b6   : > { %v3746_v7 = vpop.eup %3745 }
 0x3b7   : > { %v2553_v10 = vmul.f32 %v3746_v7, %v3742_v5  ;;  %v3748_v15 = vpop.eup %3747  ;;  %v3849_v5 = vld [vmem:[%s5344_s6 + $0x84] ss:$16 sps:$4 sm:$0xff]  }
 0x3b8   : > { %v2552_v40 = vmul.f32 %v3748_v15, %v5032_v31  ;;  %v3852_v15 = vld [vmem:[%s5344_s6 + $0x88] ss:$16 sps:$4 sm:$0xff]  }
 0x3b9   : > { %v3750_v17 = vpop.eup %3749 }
 0x3ba   : > { %v2610_v45 = vpop.f32.mrb[36].mxu0  ;;  %v2651_v50 = vpop.f32.mrb[36].mxu1  ;;  %v2554_v53 = vadd.f32 %v2553_v10, %v2552_v40  ;;  %v3851_v10 = vld [vmem:[%s5344_s6 + $0x80] ss:$16 sps:$4 sm:$0xff]   ;;  %v3856_v40 = vld [vmem:[%s5344_s6 + $0xa8] ss:$16 sps:$4 sm:$0xff]  }
 0x3bb   : > { %v2658_v62 = vadd.f32 %v2610_v45, %v5497_v55  ;;  %v2660_v32 = vadd.f32 %v2651_v50, %v5498_v44  ;;  %v2612_v48 = vpop.f32.mrb[37].mxu0  ;;  %v2653_v52 = vpop.f32.mrb[37].mxu1  ;;  %v3857_v45 = vld [vmem:[%s5344_s6 + $0xc4] ss:$16 sps:$4 sm:$0xff]   ;;  %v3858_v50 = vld [vmem:[%s5344_s6 + $0xcc] ss:$16 sps:$4 sm:$0xff]  }
 0x3bc   : > { %v2659_v29 = vadd.f32 %v2612_v48, %v5499_v54  ;;  %v2661_v37 = vadd.f32 %v2653_v52, %v5500_v9  ;;  %v2614_v11 = vpop.f32.mrb[38].mxu0  ;;  %v2655_v12 = vpop.f32.mrb[38].mxu1  ;;  %3751 = vtanh.f32 %v2554_v53  ;;  %v5201_v43 = vsel %vm2564_vm12, %v2554_v53, %v5032_v31  ;;  %v3859_v55 = vld [vmem:[%s5344_s6 + $0xc0] ss:$16 sps:$4 sm:$0xff]   ;;  %v3862_v48 = vld [vmem:[%s5344_s6 + $0xec] ss:$16 sps:$4 sm:$0xff]  }
 0x3bd   : > { %v3326_v13 = vmul.f32 -1.442695, %v2658_v62  ;;  %v2615_v42 = vpop.f32.mrb[39].mxu0  ;;  %v2656_v38 = vpop.f32.mrb[39].mxu1  ;;  %v3328_v49 = vmul.f32 -1.442695, %v2660_v32 }
 0x3be   : > { %v3327_v14 = vmul.f32 -1.442695, %v2659_v29  ;;  %v3860_v62 = vld [vmem:[%s5344_s6 + $0xc8] ss:$16 sps:$4 sm:$0xff]   ;;  %v3861_v32 = vld [vmem:[%s5344_s6 + $0xe4] ss:$16 sps:$4 sm:$0xff]  }
 0x3bf   : > { %3753 = vpow2.f32 %v3326_v13  ;;  %v3863_v54 = vld [vmem:[%s5344_s6 + $0xe0] ss:$16 sps:$4 sm:$0xff]   ;;  %v3864_v29 = vld [vmem:[%s5344_s6 + $0xe8] ss:$16 sps:$4 sm:$0xff]  }
 0x3c0   : > { %3755 = vpow2.f32 %v3327_v14  ;;  %v5501_v13 = vld [vmem:[#allocation53_spill] sm:$0xff]  ;;  %v5502_v38 = vld [vmem:[#allocation54_spill] sm:$0xff] }
 0x3c1   : > { %3757 = vtanh.f32 %v2661_v37 }
 0x3c2   : > { %3759 = vpow2.f32 %v3328_v49  ;;  %v5503_v49 = vld [vmem:[#allocation55_spill] sm:$0xff] }
 0x3c6   : > { %v3752_v19 = vpop.eup %3751 }
 0x3c7   : > { %v2556_v16 = vmul.f32 %v3752_v19, %v3750_v17 }
 0x3c9   : > { %v3754_v21 = vpop.eup %3753  ;;  %v5205_v34 = vsel %vm2564_vm12, %v2556_v16, %v5036_v24  ;;  %v3836_v24 = vld [vmem:[%s5344_s6 + $0x8] ss:$16 sps:$4 sm:$0xff]  }
 0x3ca   : > { %v2671_v18 = vadd.f32 1.0, %v3754_v21  ;;  %v3756_v41 = vpop.eup %3755  ;;  %v2704_v31 = vpack.c.bf16 %v5205_v34, %v5205_v34  ;;  %v5504_v21 = vld [vmem:[#allocation56_spill] sm:$0xff] }
 0x3cb   : > { %v2672_v22 = vadd.f32 1.0, %v3756_v41 }
 0x3cc   : > { %3761 = vrcp.f32 %v2671_v18  ;;  %2738 = vmatmul.mubr.bf16.vlgmr.msra.gmra.mrb[40].mxu0 %v2704_v31  ;;  %2779 = vmatmul.mubr.bf16.vlgmr.msra.gmra.mrb[40].mxu1 %v2704_v31 }
 0x3cd   : > { %3763 = vrcp.f32 %v2672_v22  ;;  %2835 = vmatpush1.bf16.msra.mxu0 %v3835_v33  ;;  %2876 = vmatpush1.bf16.msra.mxu1 %v3836_v24 }
 0x3ce   : > { %2836 = vmatprep.subr.bf16.mxu0 %v3837_v47  ;;  %2877 = vmatprep.subr.bf16.mxu1 %v3838_v51 }
 0x3cf   : > { %2866 = vmatprep.mubr.bf16.mxu0 %v5426_v39  ;;  %2907 = vmatprep.mubr.bf16.mxu1 %v5426_v39  ;;  %v3758_v39 = vpop.eup %3757 }
 0x3d0   : > { %v3760_v25 = vpop.eup %3759 }
 0x3d1   : > { %2837 = vmatpush1.bf16.msra.mxu0 %v3839_v26  ;;  %2878 = vmatpush1.bf16.msra.mxu1 %v3840_v46  ;;  %v2673_v60 = vadd.f32 1.0, %v3760_v25 }
 0x3d2   : > { %2838 = vmatprep.subr.bf16.mxu0 %v3841_v27  ;;  %2879 = vmatprep.subr.bf16.mxu1 %v3842_v28 }
 0x3d3   : > { %3765 = vrcp.f32 %v2673_v60 }
 0x3d5   : > { %2839 = vmatpush1.bf16.msra.mxu0 %v3843_v35  ;;  %2880 = vmatpush1.bf16.msra.mxu1 %v3844_v56 }
 0x3d6   : > { %v3762_v8 = vpop.eup %3761  ;;  %2840 = vmatprep.subr.bf16.mxu0 %v3845_v57  ;;  %2881 = vmatprep.subr.bf16.mxu1 %v3846_v58  ;;  %v2821_v57 = vpop.permute.xlu1 %2820 }
 0x3d7   : > { %v2682_v30 = vmul.f32 %v3762_v8, %v3758_v39  ;;  %v3764_v59 = vpop.eup %3763  ;;  %vm2822_vm14 = vcmp.eq.s32.totalorder %v2821_v57, 1 }
 0x3d8   : > { %v2681_v61 = vmul.f32 %v3764_v59, %v5064_v0 }
 0x3d9   : > { %2841 = vmatpush1.bf16.msra.mxu0 %v3847_v63  ;;  %2882 = vmatpush1.bf16.msra.mxu1 %v3848_v1  ;;  %v5505_v63 = vld [vmem:[#allocation57_spill] sm:$0xff] }
 0x3da   : > { %v2683_v3 = vadd.f32 %v2682_v30, %v2681_v61  ;;  %2842 = vmatprep.subr.bf16.mxu0 %v3849_v5  ;;  %2883 = vmatprep.subr.bf16.mxu1 %v3850_v6 }
 0x3dc   : > { %3767 = vtanh.f32 %v2683_v3  ;;  %v5262_v7 = vsel %vm2693_vm13, %v2683_v3, %v5064_v0  ;;  %v3854_v0 = vld [vmem:[%s5344_s6 + $0xac] ss:$16 sps:$4 sm:$0xff]  }
 0x3dd   : > { %2843 = vmatpush1.bf16.msra.mxu0 %v3851_v10  ;;  %2884 = vmatpush1.bf16.msra.mxu1 %v3852_v15  ;;  %v3766_v53 = vpop.eup %3765  ;;  %v5507_v10 = vld [vmem:[#allocation59_spill] sm:$0xff] }
 0x3de   : > { %2844 = vmatprep.subr.bf16.mxu0 %v3853_v20  ;;  %2885 = vmatprep.subr.bf16.mxu1 %v3854_v0  ;;  %v5508_v20 = vld [vmem:[#allocation60_spill] sm:$0xff] }
 0x3e1   : > { %2845 = vmatpush1.bf16.msra.mxu0 %v3855_v36  ;;  %2886 = vmatpush1.bf16.msra.mxu1 %v3856_v40 }
 0x3e2   : > { %2846 = vmatprep.subr.bf16.mxu0 %v3857_v45  ;;  %2887 = vmatprep.subr.bf16.mxu1 %v3858_v50 }
 0x3e5   : > { %2847 = vmatpush1.bf16.msra.mxu0 %v3859_v55  ;;  %2888 = vmatpush1.bf16.msra.mxu1 %v3860_v62 }
 0x3e6   : > { %v3768_v44 = vpop.eup %3767  ;;  %2848 = vmatprep.subr.bf16.mxu0 %v3861_v32  ;;  %2889 = vmatprep.subr.bf16.mxu1 %v3862_v48 }
 0x3e7   : > { %v2685_v52 = vmul.f32 %v3768_v44, %v3766_v53 }
 0x3e9   : > { %2849 = vmatpush1.bf16.msra.mxu0 %v3863_v54  ;;  %2890 = vmatpush1.bf16.msra.mxu1 %v3864_v29  ;;  %v5308_v9 = vsel %vm2693_vm13, %v2685_v52, %v5080_v4 }
 0x3ea   : > { %v2833_v37 = vpack.c.bf16 %v5308_v9, %v5308_v9 }
 0x3ec   : > { %2867 = vmatmul.mubr.bf16.vlgmr.msra.gmra.mrb[44].mxu0 %v2833_v37  ;;  %2908 = vmatmul.mubr.bf16.vlgmr.msra.gmra.mrb[44].mxu1 %v2833_v37 }
 0x49f   : > { %v2739_v11 = vpop.f32.mrb[40].mxu0  ;;  %v2780_v12 = vpop.f32.mrb[40].mxu1 }
 0x4a0   : > { %v2787_v42 = vadd.f32 %v2739_v11, %v5501_v13  ;;  %v2789_v14 = vadd.f32 %v2780_v12, %v5502_v38  ;;  %v2741_v17 = vpop.f32.mrb[41].mxu0  ;;  %v2782_v19 = vpop.f32.mrb[41].mxu1 }
 0x4a1   : > { %v2788_v16 = vadd.f32 %v2741_v17, %v5503_v49  ;;  %v2790_v18 = vadd.f32 %v2782_v19, %v5504_v21  ;;  %v2743_v41 = vpop.f32.mrb[42].mxu0  ;;  %v2784_v31 = vpop.f32.mrb[42].mxu1 }
 0x4a2   : > { %v3329_v22 = vmul.f32 -1.442695, %v2787_v42  ;;  %v2744_v33 = vpop.f32.mrb[43].mxu0  ;;  %v2785_v24 = vpop.f32.mrb[43].mxu1  ;;  %v3331_v51 = vmul.f32 -1.442695, %v2789_v14 }
 0x4a3   : > { %v3330_v47 = vmul.f32 -1.442695, %v2788_v16  ;;  %v2949_v49 = vpop.permute.xlu0 %2948  ;;  %v3357_v24 = vpack.c.bf16 %v4979_v23, %v5080_v4 }
 0x4a4   : > { %3769 = vpow2.f32 %v3329_v22  ;;  %vm2950_vm15 = vcmp.eq.s32.totalorder %v2949_v49, 1 }
 0x4a5   : > { %3771 = vpow2.f32 %v3330_v47  ;;  %3360 = vst [vmem:[%s3964_s18 + $0x8] sm:$0xff] %v3357_v24  }
 0x4a6   : > { %3773 = vtanh.f32 %v2790_v18 }
 0x4a7   : > { %3775 = vpow2.f32 %v3331_v51 }
 0x4ae   : > { %v3770_v26 = vpop.eup %3769 }
 0x4af   : > { %v2800_v46 = vadd.f32 1.0, %v3770_v26  ;;  %v3772_v27 = vpop.eup %3771 }
 0x4b0   : > { %v2801_v28 = vadd.f32 1.0, %v3772_v27  ;;  %v3774_v39 = vpop.eup %3773 }
 0x4b1   : > { %3777 = vrcp.f32 %v2800_v46  ;;  %v3776_v25 = vpop.eup %3775 }
 0x4b2   : > { %3779 = vrcp.f32 %v2801_v28  ;;  %v2802_v30 = vadd.f32 1.0, %v3776_v25 }
 0x4b4   : > { %3781 = vrcp.f32 %v2802_v30 }
 0x4bb   : > { %v3778_v8 = vpop.eup %3777 }
 0x4bc   : > { %v2811_v35 = vmul.f32 %v3778_v8, %v3774_v39  ;;  %v3780_v56 = vpop.eup %3779 }
 0x4bd   : > { %v2810_v58 = vmul.f32 %v3780_v56, %v5201_v43 }
 0x4be   : > { %v3782_v44 = vpop.eup %3781 }
 0x4bf   : > { %v2868_v59 = vpop.f32.mrb[44].mxu0  ;;  %v2909_v60 = vpop.f32.mrb[44].mxu1  ;;  %v2812_v61 = vadd.f32 %v2811_v35, %v2810_v58 }
 0x4c0   : > { %v2916_v1 = vadd.f32 %v2868_v59, %v5505_v63  ;;  %v2918_v3 = vadd.f32 %v2909_v60, %v5506_v2  ;;  %v2870_v5 = vpop.f32.mrb[45].mxu0  ;;  %v2911_v6 = vpop.f32.mrb[45].mxu1 }
 0x4c1   : > { %v2917_v15 = vadd.f32 %v2870_v5, %v5507_v10  ;;  %v2919_v0 = vadd.f32 %v2911_v6, %v5508_v20  ;;  %v2872_v36 = vpop.f32.mrb[46].mxu0  ;;  %v2913_v40 = vpop.f32.mrb[46].mxu1  ;;  %3783 = vtanh.f32 %v2812_v61  ;;  %v2824_v45 = vsel %vm2822_vm14, %v2812_v61, %v5201_v43 }
 0x4c2   : > { %v3332_v50 = vmul.f32 -1.442695, %v2916_v1  ;;  %v2873_v53 = vpop.f32.mrb[47].mxu0  ;;  %v2914_v55 = vpop.f32.mrb[47].mxu1  ;;  %2979 = vst [vmem:[#allocation7] sm:$0xff] %v2824_v45 }
 0x4c3   : > { %v3333_v62 = vmul.f32 -1.442695, %v2917_v15  ;;  %v3334_v48 = vmul.f32 -1.442695, %v2918_v3 }
 0x4c4   : > { %3785 = vpow2.f32 %v3332_v50 }
 0x4c5   : > { %3787 = vpow2.f32 %v3333_v62 }
 0x4c6   : > { %3789 = vtanh.f32 %v2919_v0 }
 0x4c7   : > { %3791 = vpow2.f32 %v3334_v48 }
 0x4cb   : > { %v3784_v32 = vpop.eup %3783 }
 0x4cc   : > { %v2814_v52 = vmul.f32 %v3784_v32, %v3782_v44 }
 0x4ce   : > { %v3786_v54 = vpop.eup %3785  ;;  %v2823_v29 = vsel %vm2822_vm14, %v2814_v52, %v5205_v34 }
 0x4cf   : > { %v2929_v37 = vadd.f32 1.0, %v3786_v54  ;;  %v3788_v11 = vpop.eup %3787  ;;  %v3347_v43 = vpack.c.bf16 %v2823_v29, %v5205_v34  ;;  %2978 = vst [vmem:[#allocation6] sm:$0xff] %v2823_v29 }
 0x4d0   : > { %v2930_v12 = vadd.f32 1.0, %v3788_v11  ;;  %v3790_v13 = vpop.eup %3789 }
 0x4d1   : > { %3793 = vrcp.f32 %v2929_v37  ;;  %3359 = vst [vmem:[%s3959_s11 + $0x8] sm:$0xff] %v3347_v43   ;;  %v3792_v42 = vpop.eup %3791 }
 0x4d2   : > { %3795 = vrcp.f32 %v2930_v12  ;;  %v2931_v19 = vadd.f32 1.0, %v3792_v42 }
 0x4d4   : > { %3797 = vrcp.f32 %v2931_v19 }
 0x4db   : > { %v3794_v38 = vpop.eup %3793 }
 0x4dc   : > { %v2940_v14 = vmul.f32 %v3794_v38, %v3790_v13  ;;  %v3796_v17 = vpop.eup %3795 }
 0x4dd   : > { %v2939_v16 = vmul.f32 %v3796_v17, %v5262_v7 }
 0x4de   : > { %v3798_v18 = vpop.eup %3797 }
 0x4df   : > { %v2941_v21 = vadd.f32 %v2940_v14, %v2939_v16 }
 0x4e1   : > { %3799 = vtanh.f32 %v2941_v21  ;;  %v2952_v34 = vsel %vm2950_vm15, %v2941_v21, %v5262_v7 }
 0x4e2   : > { %2981 = vst [vmem:[#allocation9] sm:$0xff] %v2952_v34 }
 0x4eb   : > { %v3800_v41 = vpop.eup %3799 }
 0x4ec   : > { %v2943_v31 = vmul.f32 %v3800_v41, %v3798_v18 }
 0x4ee   : > { %v2951_v22 = vsel %vm2950_vm15, %v2943_v31, %v5308_v9 }
 0x4ef   : > { %v3352_v33 = vpack.c.bf16 %v5308_v9, %v2951_v22  ;;  %2980 = vst [vmem:[#allocation8] sm:$0xff] %v2951_v22 }
 0x4f1   : > { %3353 = vst [vmem:[%s3964_s18] sm:$0xff] %v3352_v33  }
 0x4f2 PF: > { %s5509_s11 = sld [smem:[#allocation10_spill]] }
 0x4f8   : > { %s21_s13 = sadd.s32 1, %s5509_s11  }
 0x4f9   : > { %p18_p6 = scmp.ge.s32.totalorder %s21_s13, 4  }
 0x4fb   :  { %20 = sbr.rel (!%p18_p6) target bundleno = 1 (0x1), region = 119 }

</bundles_post_ra>
